<compile_context>
chip_gen: v7x
topology: tpu7x:2x2x1
jax: 0.10.0
libtpu: 0.0.40
codegen_flags: <defaults>
</compile_context>

<pallas_src>
import jax
import jax.numpy as jnp
from jax import lax
from jax.experimental import pallas as pl
from jax.experimental.pallas import tpu as pltpu

_B = 8  # images per conv grid step; must be a multiple of 8 (sublane alignment)


# ---------------------------------------------------------------------------
# Pallas kernels
# ---------------------------------------------------------------------------

def _pair_selectors(w_in, w_out):
    """Exact 0/1 matrices: (m @ Se)[:, j] = m[:, 2j], (m @ So)[:, j] = m[:, 2j+1]."""
    wi = lax.broadcasted_iota(jnp.int32, (w_in, w_out), 0)
    ji = lax.broadcasted_iota(jnp.int32, (w_in, w_out), 1)
    se = (wi == 2 * ji).astype(jnp.float32)
    so = (wi == 2 * ji + 1).astype(jnp.float32)
    return se, so


def _conv_tower_kernel(x_ref, m1_ref, b1_ref, m2_ref, b2_ref, o_ref, p1_ref):
    """conv1(5x5,1->6)+ReLU+pool -> conv2(5x5,6->16)+ReLU+pool for B samples.

    Layouts (B = batch-block size, rows ordered (h, b), cols channel-major):
      x_ref  : (28*B, 28)    input images
      m1_ref : (5, 28, 144)  banded conv1 weights, cols (oc1, w_out)
      b1_ref : (1, 144)      conv1 bias broadcast over w_out
      m2_ref : (5, 72, 128)  banded conv2 weights, rows (ic, w_in), cols (oc2, w_out)
      b2_ref : (1, 128)      conv2 bias broadcast over w_out
      o_ref  : (B, 256)      pooled conv2 features, cols (h_out, oc2, w_out)
      p1_ref : (12*B, 72)    scratch: pooled conv1, rows (h, b), cols (oc1, w)
    """
    f32 = jnp.float32
    B = o_ref.shape[0]

    # ---- conv1: 5 banded MXU matmuls (one per kernel row kh) -> (24B, 144) ----
    acc1 = jnp.dot(x_ref[pl.ds(0, 24 * B), :], m1_ref[0], preferred_element_type=f32)
    for kh in range(1, 5):
        acc1 = acc1 + jnp.dot(x_ref[pl.ds(kh * B, 24 * B), :], m1_ref[kh],
                              preferred_element_type=f32)
    a1 = jnp.maximum(acc1 + b1_ref[...], 0.0)

    # 2x2 max-pool: W-pairs via 0/1 selector matmuls, H-pairs via aligned
    # row-block max (rows are (h, b) with B a multiple of 8).
    s1e, s1o = _pair_selectors(144, 72)
    a1 = jnp.maximum(jnp.dot(a1, s1e, preferred_element_type=f32),
                     jnp.dot(a1, s1o, preferred_element_type=f32))      # (24B, 72)
    for i in range(12):
        p1_ref[pl.ds(i * B, B), :] = jnp.maximum(
            a1[(2 * i) * B:(2 * i + 1) * B, :],
            a1[(2 * i + 1) * B:(2 * i + 2) * B, :])

    # ---- conv2: 5 banded MXU matmuls with a 128-wide lane dim -> (8B, 128) ----
    acc2 = jnp.dot(p1_ref[pl.ds(0, 8 * B), :], m2_ref[0], preferred_element_type=f32)
    for kh in range(1, 5):
        acc2 = acc2 + jnp.dot(p1_ref[pl.ds(kh * B, 8 * B), :], m2_ref[kh],
                              preferred_element_type=f32)
    a2 = jnp.maximum(acc2 + b2_ref[...], 0.0)

    s2e, s2o = _pair_selectors(128, 64)
    a2 = jnp.maximum(jnp.dot(a2, s2e, preferred_element_type=f32),
                     jnp.dot(a2, s2o, preferred_element_type=f32))      # (8B, 64)
    # H-pool + flatten straight into the lane-dense (B, 256) output block.
    for i in range(4):
        o_ref[:, pl.ds(i * 64, 64)] = jnp.maximum(
            a2[(2 * i) * B:(2 * i + 1) * B, :],
            a2[(2 * i + 1) * B:(2 * i + 2) * B, :])


def _fc_stack_kernel(x_ref, w1_ref, b1_ref, g1_ref, be1_ref,
                     w2_ref, b2_ref, g2_ref, be2_ref,
                     w3_ref, b3_ref, g3_ref, be3_ref, o_ref):
    """Three fused Linear + BatchNorm1d(training batch stats) + ReLU layers.

    All feature dims are zero-padded to 128; padded weights/bias/gamma/beta are
    exactly zero, so padded lanes stay zero and per-column BN stats of the real
    columns are unchanged.
    """
    # TODO(synk): eval-mode BatchNorm (running statistics) path not implemented.
    f32 = jnp.float32

    def lin_bn_relu(h, w_ref, b_ref, g_ref, be_ref):
        y = jnp.dot(h, w_ref[...], preferred_element_type=f32) + b_ref[...]
        mu = jnp.mean(y, axis=0, keepdims=True)
        var = jnp.mean((y - mu) * (y - mu), axis=0, keepdims=True)
        y = (y - mu) * lax.rsqrt(var + 1e-5) * g_ref[...] + be_ref[...]
        return jnp.maximum(y, 0.0)

    h = lin_bn_relu(x_ref[...], w1_ref, b1_ref, g1_ref, be1_ref)
    h = lin_bn_relu(h, w2_ref, b2_ref, g2_ref, be2_ref)
    o_ref[...] = lin_bn_relu(h, w3_ref, b3_ref, g3_ref, be3_ref)


# ---------------------------------------------------------------------------
# pallas_call wrappers
# ---------------------------------------------------------------------------

def conv_tower(x, m1, b1r, m2, b2r):
    """x: (N, 1, 28, 28) -> (N, 256) pooled conv2 features, cols (h, oc2, w)."""
    n = x.shape[0]
    g = (n + _B - 1) // _B
    n_pad = g * _B
    xt = jnp.transpose(x.reshape(n, 28, 28).astype(jnp.float32), (1, 0, 2))  # (28,N,28)
    if n_pad != n:
        # Conv is per-sample independent, so zero-padding the batch here is safe
        # (padded rows are sliced off before the BatchNorm-coupled FC stack).
        xt = jnp.pad(xt, ((0, 0), (0, n_pad - n), (0, 0)))
    # Rows ordered (batch-block, h, b) so each grid step reads one contiguous,
    # sublane-aligned (28*_B, 28) slab and all kh-shifted slices are aligned.
    x2d = xt.reshape(28, g, _B, 28).transpose(1, 0, 2, 3).reshape(g * 28 * _B, 28)
    out = pl.pallas_call(
        _conv_tower_kernel,
        out_shape=jax.ShapeDtypeStruct((n_pad, 256), jnp.float32),
        grid=(g,),
        in_specs=[
            pl.BlockSpec((28 * _B, 28), lambda i: (i, 0)),
            pl.BlockSpec((5, 28, 144), lambda i: (0, 0, 0)),
            pl.BlockSpec((1, 144), lambda i: (0, 0)),
            pl.BlockSpec((5, 72, 128), lambda i: (0, 0, 0)),
            pl.BlockSpec((1, 128), lambda i: (0, 0)),
        ],
        out_specs=pl.BlockSpec((_B, 256), lambda i: (i, 0)),
        scratch_shapes=[pltpu.VMEM((12 * _B, 72), jnp.float32)],
        compiler_params=pltpu.CompilerParams(dimension_semantics=("parallel",)),
    )(x2d, m1, b1r, m2, b2r)
    return out[:n]


def fc_stack(feat, fc_args):
    """feat: (N, 256) -> (N, 128); the real logits are the first 10 columns."""
    n = feat.shape[0]
    args = (feat,) + tuple(fc_args)
    in_specs = [pl.BlockSpec(a.shape, lambda i, nd=a.ndim: (0,) * nd) for a in args]
    return pl.pallas_call(
        _fc_stack_kernel,
        out_shape=jax.ShapeDtypeStruct((n, 128), jnp.float32),
        grid=(1,),                     # BatchNorm couples the batch -> one block
        in_specs=in_specs,
        out_specs=pl.BlockSpec((n, 128), lambda i: (0, 0)),
        compiler_params=pltpu.CompilerParams(dimension_semantics=("arbitrary",)),
    )(*args)


# ---------------------------------------------------------------------------
# Parameters (PyTorch-shaped init, then one-time re-layout for the kernels)
# ---------------------------------------------------------------------------

def init_params(key):
    ks = jax.random.split(key, 10)
    f32 = jnp.float32

    def rnd(k, shape, scale):
        return (scale * jax.random.normal(k, shape)).astype(f32)

    return {
        "conv1_w": rnd(ks[0], (6, 1, 5, 5), 0.1),
        "conv1_b": rnd(ks[1], (6,), 0.1),
        "conv2_w": rnd(ks[2], (16, 6, 5, 5), 0.05),
        "conv2_b": rnd(ks[3], (16,), 0.05),
        "fc1_w": rnd(ks[4], (120, 256), 0.05),
        "fc1_b": rnd(ks[5], (120,), 0.05),
        "fc2_w": rnd(ks[6], (84, 120), 0.05),
        "fc2_b": rnd(ks[7], (84,), 0.05),
        "fc3_w": rnd(ks[8], (10, 84), 0.05),
        "fc3_b": rnd(ks[9], (10,), 0.05),
        # BatchNorm1d default init: gamma=1, beta=0
        "bn1_g": jnp.ones((120,), f32), "bn1_b": jnp.zeros((120,), f32),
        "bn2_g": jnp.ones((84,), f32), "bn2_b": jnp.zeros((84,), f32),
        "bn3_g": jnp.ones((10,), f32), "bn3_b": jnp.zeros((10,), f32),
    }


def _band_matrices(w, in_w, out_w):
    """Conv weight (OC, IC, 5, 5) -> (5, IC*in_w, OC*out_w) banded matrices.

    band[kh][ic*in_w + j, oc*out_w + wo] = w[oc, ic, kh, j - wo] for 0 <= j-wo < 5,
    so  out[(h,b),(oc,wo)] = sum_kh  X[(h+kh,b),(ic,j)] @ band[kh].
    """
    w = jnp.asarray(w, jnp.float32)
    oc_n, ic_n = w.shape[0], w.shape[1]
    rows, cols = ic_n * in_w, oc_n * out_w
    j = jnp.arange(rows)
    c = jnp.arange(cols)
    ic, jl = j // in_w, j % in_w
    oc, wc = c // out_w, c % out_w
    kw = jl[:, None] - wc[None, :]
    valid = (kw >= 0) & (kw < 5)
    kw_c = jnp.clip(kw, 0, 4)
    bands = [jnp.where(valid, w[:, :, kh, :][oc[None, :], ic[:, None], kw_c], 0.0)
             for kh in range(5)]
    return jnp.stack(bands).astype(jnp.float32)


def _pad2(a, rows, cols):
    a = jnp.asarray(a, jnp.float32)
    return jnp.pad(a, ((0, rows - a.shape[0]), (0, cols - a.shape[1])))


def prepare_params(p):
    """One-time re-layout of PyTorch-shaped parameters into kernel layouts."""
    f32 = jnp.float32
    m1 = _band_matrices(p["conv1_w"], 28, 24)                    # (5, 28, 144)
    m2 = _band_matrices(p["conv2_w"], 12, 8)                     # (5, 72, 128)
    b1r = jnp.repeat(p["conv1_b"].astype(f32), 24)[None, :]      # (1, 144)
    b2r = jnp.repeat(p["conv2_b"].astype(f32), 8)[None, :]       # (1, 128)

    # fc1 columns re-ordered to the conv output's (h, oc2, w) flatten order,
    # then padded 120 -> 128 on the output features.
    w1p = (p["fc1_w"].astype(f32).reshape(120, 16, 4, 4)
           .transpose(2, 1, 3, 0).reshape(256, 120))
    fc = (
        jnp.pad(w1p, ((0, 0), (0, 8))),
        _pad2(p["fc1_b"][None, :], 1, 128), _pad2(p["bn1_g"][None, :], 1, 128),
        _pad2(p["bn1_b"][None, :], 1, 128),
        _pad2(p["fc2_w"].T, 128, 128),
        _pad2(p["fc2_b"][None, :], 1, 128), _pad2(p["bn2_g"][None, :], 1, 128),
        _pad2(p["bn2_b"][None, :], 1, 128),
        _pad2(p["fc3_w"].T, 128, 128),
        _pad2(p["fc3_b"][None, :], 1, 128), _pad2(p["bn3_g"][None, :], 1, 128),
        _pad2(p["bn3_b"][None, :], 1, 128),
    )
    return {"m1": m1, "b1r": b1r, "m2": m2, "b2r": b2r, "fc": fc}


# ---------------------------------------------------------------------------
# Model forward
# ---------------------------------------------------------------------------

@jax.jit
def cnn_forward(prep, x):
    feat = conv_tower(x, prep["m1"], prep["b1r"], prep["m2"], prep["b2r"])  # (N, 256)
    out = fc_stack(feat, prep["fc"])                                        # (N, 128)
    return out[:, :10]                                                      # logits


if __name__ == "__main__":
    key = jax.random.PRNGKey(0)
    pkey, xkey = jax.random.split(key)
    params = init_params(pkey)
    prep = prepare_params(params)
    # MNIST-shaped input (the 16*4*4 flatten implies 28x28 single-channel).
    x = jax.random.normal(xkey, (16, 1, 28, 28), dtype=jnp.float32)
    out = cnn_forward(prep, x)
    jax.block_until_ready(out)
    assert out.shape == (16, 10), out.shape
    print("KERNEL_OK")
</pallas_src>

<mosaic_0001>
module attributes {stable_mosaic.version = 11 : i64} {
  func.func @_conv_tower_kernel(%arg0: i32, %arg1: memref<224x28xf32, #tpu.memory_space<vmem>>, %arg2: memref<5x28x144xf32, #tpu.memory_space<vmem>>, %arg3: memref<1x144xf32, #tpu.memory_space<vmem>>, %arg4: memref<5x72x128xf32, #tpu.memory_space<vmem>>, %arg5: memref<1x128xf32, #tpu.memory_space<vmem>>, %arg6: memref<8x256xf32, #tpu.memory_space<vmem>>, %arg7: memref<96x72xf32, #tpu.memory_space<vmem>>) attributes {dimension_semantics = [#tpu.dimension_semantics<parallel>], iteration_bounds = array<i64: 2>, scalar_prefetch = 0 : i64, scratch_operands = 1 : i64, tpu.core_type = #tpu.core_type<tc>, window_params = [{transform_indices = @transform_0, window_bounds = array<i64: 224, 28>}, {pipeline_mode = #tpu.pipeline_mode<synchronous>, transform_indices = @transform_1, window_bounds = array<i64: 5, 28, 144>}, {pipeline_mode = #tpu.pipeline_mode<synchronous>, transform_indices = @transform_2, window_bounds = array<i64: 1, 144>}, {pipeline_mode = #tpu.pipeline_mode<synchronous>, transform_indices = @transform_3, window_bounds = array<i64: 5, 72, 128>}, {pipeline_mode = #tpu.pipeline_mode<synchronous>, transform_indices = @transform_4, window_bounds = array<i64: 1, 128>}, {transform_indices = @transform_5, window_bounds = array<i64: 8, 256>}]} {
    %c0 = arith.constant 0 : index
    %c0_0 = arith.constant 0 : index
    %0 = vector.load %arg1[%c0, %c0_0] : memref<224x28xf32, #tpu.memory_space<vmem>>, vector<192x28xf32>
    %c0_1 = arith.constant 0 : index
    %c0_2 = arith.constant 0 : index
    %c0_3 = arith.constant 0 : index
    %1 = vector.load %arg2[%c0_1, %c0_2, %c0_3] : memref<5x28x144xf32, #tpu.memory_space<vmem>>, vector<1x28x144xf32>
    %2 = vector.shape_cast %1 : vector<1x28x144xf32> to vector<28x144xf32>
    %cst = arith.constant dense<0.000000e+00> : vector<192x144xf32>
    %3 = tpu.matmul %0, %2, %cst {dimension_numbers = #tpu.dot_dimension_numbers<[1], [0], [0], [1], [0, 0, 1, 1], [], []>} : vector<192x28xf32>, vector<28x144xf32>, vector<192x144xf32> -> vector<192x144xf32>
    %c8 = arith.constant 8 : index
    %c0_4 = arith.constant 0 : index
    %4 = vector.load %arg1[%c8, %c0_4] : memref<224x28xf32, #tpu.memory_space<vmem>>, vector<192x28xf32>
    %c1 = arith.constant 1 : index
    %c0_5 = arith.constant 0 : index
    %c0_6 = arith.constant 0 : index
    %5 = vector.load %arg2[%c1, %c0_5, %c0_6] : memref<5x28x144xf32, #tpu.memory_space<vmem>>, vector<1x28x144xf32>
    %6 = vector.shape_cast %5 : vector<1x28x144xf32> to vector<28x144xf32>
    %cst_7 = arith.constant dense<0.000000e+00> : vector<192x144xf32>
    %7 = tpu.matmul %4, %6, %cst_7 {dimension_numbers = #tpu.dot_dimension_numbers<[1], [0], [0], [1], [0, 0, 1, 1], [], []>} : vector<192x28xf32>, vector<28x144xf32>, vector<192x144xf32> -> vector<192x144xf32>
    %8 = arith.addf %3, %7 : vector<192x144xf32>
    %c16 = arith.constant 16 : index
    %c0_8 = arith.constant 0 : index
    %9 = vector.load %arg1[%c16, %c0_8] : memref<224x28xf32, #tpu.memory_space<vmem>>, vector<192x28xf32>
    %c2 = arith.constant 2 : index
    %c0_9 = arith.constant 0 : index
    %c0_10 = arith.constant 0 : index
    %10 = vector.load %arg2[%c2, %c0_9, %c0_10] : memref<5x28x144xf32, #tpu.memory_space<vmem>>, vector<1x28x144xf32>
    %11 = vector.shape_cast %10 : vector<1x28x144xf32> to vector<28x144xf32>
    %cst_11 = arith.constant dense<0.000000e+00> : vector<192x144xf32>
    %12 = tpu.matmul %9, %11, %cst_11 {dimension_numbers = #tpu.dot_dimension_numbers<[1], [0], [0], [1], [0, 0, 1, 1], [], []>} : vector<192x28xf32>, vector<28x144xf32>, vector<192x144xf32> -> vector<192x144xf32>
    %13 = arith.addf %8, %12 : vector<192x144xf32>
    %c24 = arith.constant 24 : index
    %c0_12 = arith.constant 0 : index
    %14 = vector.load %arg1[%c24, %c0_12] : memref<224x28xf32, #tpu.memory_space<vmem>>, vector<192x28xf32>
    %c3 = arith.constant 3 : index
    %c0_13 = arith.constant 0 : index
    %c0_14 = arith.constant 0 : index
    %15 = vector.load %arg2[%c3, %c0_13, %c0_14] : memref<5x28x144xf32, #tpu.memory_space<vmem>>, vector<1x28x144xf32>
    %16 = vector.shape_cast %15 : vector<1x28x144xf32> to vector<28x144xf32>
    %cst_15 = arith.constant dense<0.000000e+00> : vector<192x144xf32>
    %17 = tpu.matmul %14, %16, %cst_15 {dimension_numbers = #tpu.dot_dimension_numbers<[1], [0], [0], [1], [0, 0, 1, 1], [], []>} : vector<192x28xf32>, vector<28x144xf32>, vector<192x144xf32> -> vector<192x144xf32>
    %18 = arith.addf %13, %17 : vector<192x144xf32>
    %c32 = arith.constant 32 : index
    %c0_16 = arith.constant 0 : index
    %19 = vector.load %arg1[%c32, %c0_16] : memref<224x28xf32, #tpu.memory_space<vmem>>, vector<192x28xf32>
    %c4 = arith.constant 4 : index
    %c0_17 = arith.constant 0 : index
    %c0_18 = arith.constant 0 : index
    %20 = vector.load %arg2[%c4, %c0_17, %c0_18] : memref<5x28x144xf32, #tpu.memory_space<vmem>>, vector<1x28x144xf32>
    %21 = vector.shape_cast %20 : vector<1x28x144xf32> to vector<28x144xf32>
    %cst_19 = arith.constant dense<0.000000e+00> : vector<192x144xf32>
    %22 = tpu.matmul %19, %21, %cst_19 {dimension_numbers = #tpu.dot_dimension_numbers<[1], [0], [0], [1], [0, 0, 1, 1], [], []>} : vector<192x28xf32>, vector<28x144xf32>, vector<192x144xf32> -> vector<192x144xf32>
    %23 = arith.addf %18, %22 : vector<192x144xf32>
    %c0_20 = arith.constant 0 : index
    %c0_21 = arith.constant 0 : index
    %24 = vector.load %arg3[%c0_20, %c0_21] : memref<1x144xf32, #tpu.memory_space<vmem>>, vector<1x144xf32>
    %25 = vector.broadcast %24 : vector<1x144xf32> to vector<192x144xf32>
    %26 = arith.addf %23, %25 : vector<192x144xf32>
    %cst_22 = arith.constant 0.000000e+00 : f32
    %27 = vector.broadcast %cst_22 : f32 to vector<192x144xf32>
    %28 = arith.maximumf %26, %27 : vector<192x144xf32>
    %29 = tpu.iota {dimensions = array<i32: 0>} : vector<144x72xi32>
    %30 = tpu.iota {dimensions = array<i32: 1>} : vector<144x72xi32>
    %c2_i32 = arith.constant 2 : i32
    %31 = vector.broadcast %c2_i32 : i32 to vector<144x72xi32>
    %32 = arith.muli %31, %30 : vector<144x72xi32>
    %33 = arith.cmpi eq, %29, %32 : vector<144x72xi32>
    %34 = arith.extui %33 : vector<144x72xi1> to vector<144x72xi32>
    %35 = arith.sitofp %34 : vector<144x72xi32> to vector<144x72xf32>
    %c2_i32_23 = arith.constant 2 : i32
    %36 = vector.broadcast %c2_i32_23 : i32 to vector<144x72xi32>
    %37 = arith.muli %36, %30 : vector<144x72xi32>
    %c1_i32 = arith.constant 1 : i32
    %38 = vector.broadcast %c1_i32 : i32 to vector<144x72xi32>
    %39 = arith.addi %37, %38 : vector<144x72xi32>
    %40 = arith.cmpi eq, %29, %39 : vector<144x72xi32>
    %41 = arith.extui %40 : vector<144x72xi1> to vector<144x72xi32>
    %42 = arith.sitofp %41 : vector<144x72xi32> to vector<144x72xf32>
    %cst_24 = arith.constant dense<0.000000e+00> : vector<192x72xf32>
    %43 = tpu.matmul %28, %35, %cst_24 {dimension_numbers = #tpu.dot_dimension_numbers<[1], [0], [0], [1], [0, 0, 1, 1], [], []>} : vector<192x144xf32>, vector<144x72xf32>, vector<192x72xf32> -> vector<192x72xf32>
    %cst_25 = arith.constant dense<0.000000e+00> : vector<192x72xf32>
    %44 = tpu.matmul %28, %42, %cst_25 {dimension_numbers = #tpu.dot_dimension_numbers<[1], [0], [0], [1], [0, 0, 1, 1], [], []>} : vector<192x144xf32>, vector<144x72xf32>, vector<192x72xf32> -> vector<192x72xf32>
    %45 = arith.maximumf %43, %44 : vector<192x72xf32>
    %46 = vector.extract_strided_slice %45 {offsets = [0, 0], sizes = [8, 72], strides = [1, 1]} : vector<192x72xf32> to vector<8x72xf32>
    %47 = vector.extract_strided_slice %45 {offsets = [8, 0], sizes = [8, 72], strides = [1, 1]} : vector<192x72xf32> to vector<8x72xf32>
    %48 = arith.maximumf %46, %47 : vector<8x72xf32>
    %c0_26 = arith.constant 0 : index
    %c0_27 = arith.constant 0 : index
    %49 = vector.load %arg7[%c0_26, %c0_27] : memref<96x72xf32, #tpu.memory_space<vmem>>, vector<8x72xf32>
    tpu.vector_store %arg7[%c0_26, %c0_27], %48 {strides = array<i32>} : memref<96x72xf32, #tpu.memory_space<vmem>>, vector<8x72xf32>,
    %50 = vector.extract_strided_slice %45 {offsets = [16, 0], sizes = [8, 72], strides = [1, 1]} : vector<192x72xf32> to vector<8x72xf32>
    %51 = vector.extract_strided_slice %45 {offsets = [24, 0], sizes = [8, 72], strides = [1, 1]} : vector<192x72xf32> to vector<8x72xf32>
    %52 = arith.maximumf %50, %51 : vector<8x72xf32>
    %c8_28 = arith.constant 8 : index
    %c0_29 = arith.constant 0 : index
    %53 = vector.load %arg7[%c8_28, %c0_29] : memref<96x72xf32, #tpu.memory_space<vmem>>, vector<8x72xf32>
    tpu.vector_store %arg7[%c8_28, %c0_29], %52 {strides = array<i32>} : memref<96x72xf32, #tpu.memory_space<vmem>>, vector<8x72xf32>,
    %54 = vector.extract_strided_slice %45 {offsets = [32, 0], sizes = [8, 72], strides = [1, 1]} : vector<192x72xf32> to vector<8x72xf32>
    %55 = vector.extract_strided_slice %45 {offsets = [40, 0], sizes = [8, 72], strides = [1, 1]} : vector<192x72xf32> to vector<8x72xf32>
    %56 = arith.maximumf %54, %55 : vector<8x72xf32>
    %c16_30 = arith.constant 16 : index
    %c0_31 = arith.constant 0 : index
    %57 = vector.load %arg7[%c16_30, %c0_31] : memref<96x72xf32, #tpu.memory_space<vmem>>, vector<8x72xf32>
    tpu.vector_store %arg7[%c16_30, %c0_31], %56 {strides = array<i32>} : memref<96x72xf32, #tpu.memory_space<vmem>>, vector<8x72xf32>,
    %58 = vector.extract_strided_slice %45 {offsets = [48, 0], sizes = [8, 72], strides = [1, 1]} : vector<192x72xf32> to vector<8x72xf32>
    %59 = vector.extract_strided_slice %45 {offsets = [56, 0], sizes = [8, 72], strides = [1, 1]} : vector<192x72xf32> to vector<8x72xf32>
    %60 = arith.maximumf %58, %59 : vector<8x72xf32>
    %c24_32 = arith.constant 24 : index
    %c0_33 = arith.constant 0 : index
    %61 = vector.load %arg7[%c24_32, %c0_33] : memref<96x72xf32, #tpu.memory_space<vmem>>, vector<8x72xf32>
    tpu.vector_store %arg7[%c24_32, %c0_33], %60 {strides = array<i32>} : memref<96x72xf32, #tpu.memory_space<vmem>>, vector<8x72xf32>,
    %62 = vector.extract_strided_slice %45 {offsets = [64, 0], sizes = [8, 72], strides = [1, 1]} : vector<192x72xf32> to vector<8x72xf32>
    %63 = vector.extract_strided_slice %45 {offsets = [72, 0], sizes = [8, 72], strides = [1, 1]} : vector<192x72xf32> to vector<8x72xf32>
    %64 = arith.maximumf %62, %63 : vector<8x72xf32>
    %c32_34 = arith.constant 32 : index
    %c0_35 = arith.constant 0 : index
    %65 = vector.load %arg7[%c32_34, %c0_35] : memref<96x72xf32, #tpu.memory_space<vmem>>, vector<8x72xf32>
    tpu.vector_store %arg7[%c32_34, %c0_35], %64 {strides = array<i32>} : memref<96x72xf32, #tpu.memory_space<vmem>>, vector<8x72xf32>,
    %66 = vector.extract_strided_slice %45 {offsets = [80, 0], sizes = [8, 72], strides = [1, 1]} : vector<192x72xf32> to vector<8x72xf32>
    %67 = vector.extract_strided_slice %45 {offsets = [88, 0], sizes = [8, 72], strides = [1, 1]} : vector<192x72xf32> to vector<8x72xf32>
    %68 = arith.maximumf %66, %67 : vector<8x72xf32>
    %c40 = arith.constant 40 : index
    %c0_36 = arith.constant 0 : index
    %69 = vector.load %arg7[%c40, %c0_36] : memref<96x72xf32, #tpu.memory_space<vmem>>, vector<8x72xf32>
    tpu.vector_store %arg7[%c40, %c0_36], %68 {strides = array<i32>} : memref<96x72xf32, #tpu.memory_space<vmem>>, vector<8x72xf32>,
    %70 = vector.extract_strided_slice %45 {offsets = [96, 0], sizes = [8, 72], strides = [1, 1]} : vector<192x72xf32> to vector<8x72xf32>
    %71 = vector.extract_strided_slice %45 {offsets = [104, 0], sizes = [8, 72], strides = [1, 1]} : vector<192x72xf32> to vector<8x72xf32>
    %72 = arith.maximumf %70, %71 : vector<8x72xf32>
    %c48 = arith.constant 48 : index
    %c0_37 = arith.constant 0 : index
    %73 = vector.load %arg7[%c48, %c0_37] : memref<96x72xf32, #tpu.memory_space<vmem>>, vector<8x72xf32>
    tpu.vector_store %arg7[%c48, %c0_37], %72 {strides = array<i32>} : memref<96x72xf32, #tpu.memory_space<vmem>>, vector<8x72xf32>,
    %74 = vector.extract_strided_slice %45 {offsets = [112, 0], sizes = [8, 72], strides = [1, 1]} : vector<192x72xf32> to vector<8x72xf32>
    %75 = vector.extract_strided_slice %45 {offsets = [120, 0], sizes = [8, 72], strides = [1, 1]} : vector<192x72xf32> to vector<8x72xf32>
    %76 = arith.maximumf %74, %75 : vector<8x72xf32>
    %c56 = arith.constant 56 : index
    %c0_38 = arith.constant 0 : index
    %77 = vector.load %arg7[%c56, %c0_38] : memref<96x72xf32, #tpu.memory_space<vmem>>, vector<8x72xf32>
    tpu.vector_store %arg7[%c56, %c0_38], %76 {strides = array<i32>} : memref<96x72xf32, #tpu.memory_space<vmem>>, vector<8x72xf32>,
    %78 = vector.extract_strided_slice %45 {offsets = [128, 0], sizes = [8, 72], strides = [1, 1]} : vector<192x72xf32> to vector<8x72xf32>
    %79 = vector.extract_strided_slice %45 {offsets = [136, 0], sizes = [8, 72], strides = [1, 1]} : vector<192x72xf32> to vector<8x72xf32>
    %80 = arith.maximumf %78, %79 : vector<8x72xf32>
    %c64 = arith.constant 64 : index
    %c0_39 = arith.constant 0 : index
    %81 = vector.load %arg7[%c64, %c0_39] : memref<96x72xf32, #tpu.memory_space<vmem>>, vector<8x72xf32>
    tpu.vector_store %arg7[%c64, %c0_39], %80 {strides = array<i32>} : memref<96x72xf32, #tpu.memory_space<vmem>>, vector<8x72xf32>,
    %82 = vector.extract_strided_slice %45 {offsets = [144, 0], sizes = [8, 72], strides = [1, 1]} : vector<192x72xf32> to vector<8x72xf32>
    %83 = vector.extract_strided_slice %45 {offsets = [152, 0], sizes = [8, 72], strides = [1, 1]} : vector<192x72xf32> to vector<8x72xf32>
    %84 = arith.maximumf %82, %83 : vector<8x72xf32>
    %c72 = arith.constant 72 : index
    %c0_40 = arith.constant 0 : index
    %85 = vector.load %arg7[%c72, %c0_40] : memref<96x72xf32, #tpu.memory_space<vmem>>, vector<8x72xf32>
    tpu.vector_store %arg7[%c72, %c0_40], %84 {strides = array<i32>} : memref<96x72xf32, #tpu.memory_space<vmem>>, vector<8x72xf32>,
    %86 = vector.extract_strided_slice %45 {offsets = [160, 0], sizes = [8, 72], strides = [1, 1]} : vector<192x72xf32> to vector<8x72xf32>
    %87 = vector.extract_strided_slice %45 {offsets = [168, 0], sizes = [8, 72], strides = [1, 1]} : vector<192x72xf32> to vector<8x72xf32>
    %88 = arith.maximumf %86, %87 : vector<8x72xf32>
    %c80 = arith.constant 80 : index
    %c0_41 = arith.constant 0 : index
    %89 = vector.load %arg7[%c80, %c0_41] : memref<96x72xf32, #tpu.memory_space<vmem>>, vector<8x72xf32>
    tpu.vector_store %arg7[%c80, %c0_41], %88 {strides = array<i32>} : memref<96x72xf32, #tpu.memory_space<vmem>>, vector<8x72xf32>,
    %90 = vector.extract_strided_slice %45 {offsets = [176, 0], sizes = [8, 72], strides = [1, 1]} : vector<192x72xf32> to vector<8x72xf32>
    %91 = vector.extract_strided_slice %45 {offsets = [184, 0], sizes = [8, 72], strides = [1, 1]} : vector<192x72xf32> to vector<8x72xf32>
    %92 = arith.maximumf %90, %91 : vector<8x72xf32>
    %c88 = arith.constant 88 : index
    %c0_42 = arith.constant 0 : index
    %93 = vector.load %arg7[%c88, %c0_42] : memref<96x72xf32, #tpu.memory_space<vmem>>, vector<8x72xf32>
    tpu.vector_store %arg7[%c88, %c0_42], %92 {strides = array<i32>} : memref<96x72xf32, #tpu.memory_space<vmem>>, vector<8x72xf32>,
    %c0_43 = arith.constant 0 : index
    %c0_44 = arith.constant 0 : index
    %94 = vector.load %arg7[%c0_43, %c0_44] : memref<96x72xf32, #tpu.memory_space<vmem>>, vector<64x72xf32>
    %c0_45 = arith.constant 0 : index
    %c0_46 = arith.constant 0 : index
    %c0_47 = arith.constant 0 : index
    %95 = vector.load %arg4[%c0_45, %c0_46, %c0_47] : memref<5x72x128xf32, #tpu.memory_space<vmem>>, vector<1x72x128xf32>
    %96 = vector.shape_cast %95 : vector<1x72x128xf32> to vector<72x128xf32>
    %cst_48 = arith.constant dense<0.000000e+00> : vector<64x128xf32>
    %97 = tpu.matmul %94, %96, %cst_48 {dimension_numbers = #tpu.dot_dimension_numbers<[1], [0], [0], [1], [0, 0, 1, 1], [], []>} : vector<64x72xf32>, vector<72x128xf32>, vector<64x128xf32> -> vector<64x128xf32>
    %c8_49 = arith.constant 8 : index
    %c0_50 = arith.constant 0 : index
    %98 = vector.load %arg7[%c8_49, %c0_50] : memref<96x72xf32, #tpu.memory_space<vmem>>, vector<64x72xf32>
    %c1_51 = arith.constant 1 : index
    %c0_52 = arith.constant 0 : index
    %c0_53 = arith.constant 0 : index
    %99 = vector.load %arg4[%c1_51, %c0_52, %c0_53] : memref<5x72x128xf32, #tpu.memory_space<vmem>>, vector<1x72x128xf32>
    %100 = vector.shape_cast %99 : vector<1x72x128xf32> to vector<72x128xf32>
    %cst_54 = arith.constant dense<0.000000e+00> : vector<64x128xf32>
    %101 = tpu.matmul %98, %100, %cst_54 {dimension_numbers = #tpu.dot_dimension_numbers<[1], [0], [0], [1], [0, 0, 1, 1], [], []>} : vector<64x72xf32>, vector<72x128xf32>, vector<64x128xf32> -> vector<64x128xf32>
    %102 = arith.addf %97, %101 : vector<64x128xf32>
    %c16_55 = arith.constant 16 : index
    %c0_56 = arith.constant 0 : index
    %103 = vector.load %arg7[%c16_55, %c0_56] : memref<96x72xf32, #tpu.memory_space<vmem>>, vector<64x72xf32>
    %c2_57 = arith.constant 2 : index
    %c0_58 = arith.constant 0 : index
    %c0_59 = arith.constant 0 : index
    %104 = vector.load %arg4[%c2_57, %c0_58, %c0_59] : memref<5x72x128xf32, #tpu.memory_space<vmem>>, vector<1x72x128xf32>
    %105 = vector.shape_cast %104 : vector<1x72x128xf32> to vector<72x128xf32>
    %cst_60 = arith.constant dense<0.000000e+00> : vector<64x128xf32>
    %106 = tpu.matmul %103, %105, %cst_60 {dimension_numbers = #tpu.dot_dimension_numbers<[1], [0], [0], [1], [0, 0, 1, 1], [], []>} : vector<64x72xf32>, vector<72x128xf32>, vector<64x128xf32> -> vector<64x128xf32>
    %107 = arith.addf %102, %106 : vector<64x128xf32>
    %c24_61 = arith.constant 24 : index
    %c0_62 = arith.constant 0 : index
    %108 = vector.load %arg7[%c24_61, %c0_62] : memref<96x72xf32, #tpu.memory_space<vmem>>, vector<64x72xf32>
    %c3_63 = arith.constant 3 : index
    %c0_64 = arith.constant 0 : index
    %c0_65 = arith.constant 0 : index
    %109 = vector.load %arg4[%c3_63, %c0_64, %c0_65] : memref<5x72x128xf32, #tpu.memory_space<vmem>>, vector<1x72x128xf32>
    %110 = vector.shape_cast %109 : vector<1x72x128xf32> to vector<72x128xf32>
    %cst_66 = arith.constant dense<0.000000e+00> : vector<64x128xf32>
    %111 = tpu.matmul %108, %110, %cst_66 {dimension_numbers = #tpu.dot_dimension_numbers<[1], [0], [0], [1], [0, 0, 1, 1], [], []>} : vector<64x72xf32>, vector<72x128xf32>, vector<64x128xf32> -> vector<64x128xf32>
    %112 = arith.addf %107, %111 : vector<64x128xf32>
    %c32_67 = arith.constant 32 : index
    %c0_68 = arith.constant 0 : index
    %113 = vector.load %arg7[%c32_67, %c0_68] : memref<96x72xf32, #tpu.memory_space<vmem>>, vector<64x72xf32>
    %c4_69 = arith.constant 4 : index
    %c0_70 = arith.constant 0 : index
    %c0_71 = arith.constant 0 : index
    %114 = vector.load %arg4[%c4_69, %c0_70, %c0_71] : memref<5x72x128xf32, #tpu.memory_space<vmem>>, vector<1x72x128xf32>
    %115 = vector.shape_cast %114 : vector<1x72x128xf32> to vector<72x128xf32>
    %cst_72 = arith.constant dense<0.000000e+00> : vector<64x128xf32>
    %116 = tpu.matmul %113, %115, %cst_72 {dimension_numbers = #tpu.dot_dimension_numbers<[1], [0], [0], [1], [0, 0, 1, 1], [], []>} : vector<64x72xf32>, vector<72x128xf32>, vector<64x128xf32> -> vector<64x128xf32>
    %117 = arith.addf %112, %116 : vector<64x128xf32>
    %c0_73 = arith.constant 0 : index
    %c0_74 = arith.constant 0 : index
    %118 = vector.load %arg5[%c0_73, %c0_74] : memref<1x128xf32, #tpu.memory_space<vmem>>, vector<1x128xf32>
    %119 = vector.broadcast %118 : vector<1x128xf32> to vector<64x128xf32>
    %120 = arith.addf %117, %119 : vector<64x128xf32>
    %cst_75 = arith.constant 0.000000e+00 : f32
    %121 = vector.broadcast %cst_75 : f32 to vector<64x128xf32>
    %122 = arith.maximumf %120, %121 : vector<64x128xf32>
    %123 = tpu.iota {dimensions = array<i32: 0>} : vector<128x64xi32>
    %124 = tpu.iota {dimensions = array<i32: 1>} : vector<128x64xi32>
    %c2_i32_76 = arith.constant 2 : i32
    %125 = vector.broadcast %c2_i32_76 : i32 to vector<128x64xi32>
    %126 = arith.muli %125, %124 : vector<128x64xi32>
    %127 = arith.cmpi eq, %123, %126 : vector<128x64xi32>
    %128 = arith.extui %127 : vector<128x64xi1> to vector<128x64xi32>
    %129 = arith.sitofp %128 : vector<128x64xi32> to vector<128x64xf32>
    %c2_i32_77 = arith.constant 2 : i32
    %130 = vector.broadcast %c2_i32_77 : i32 to vector<128x64xi32>
    %131 = arith.muli %130, %124 : vector<128x64xi32>
    %c1_i32_78 = arith.constant 1 : i32
    %132 = vector.broadcast %c1_i32_78 : i32 to vector<128x64xi32>
    %133 = arith.addi %131, %132 : vector<128x64xi32>
    %134 = arith.cmpi eq, %123, %133 : vector<128x64xi32>
    %135 = arith.extui %134 : vector<128x64xi1> to vector<128x64xi32>
    %136 = arith.sitofp %135 : vector<128x64xi32> to vector<128x64xf32>
    %cst_79 = arith.constant dense<0.000000e+00> : vector<64x64xf32>
    %137 = tpu.matmul %122, %129, %cst_79 {dimension_numbers = #tpu.dot_dimension_numbers<[1], [0], [0], [1], [0, 0, 1, 1], [], []>} : vector<64x128xf32>, vector<128x64xf32>, vector<64x64xf32> -> vector<64x64xf32>
    %cst_80 = arith.constant dense<0.000000e+00> : vector<64x64xf32>
    %138 = tpu.matmul %122, %136, %cst_80 {dimension_numbers = #tpu.dot_dimension_numbers<[1], [0], [0], [1], [0, 0, 1, 1], [], []>} : vector<64x128xf32>, vector<128x64xf32>, vector<64x64xf32> -> vector<64x64xf32>
    %139 = arith.maximumf %137, %138 : vector<64x64xf32>
    %140 = vector.extract_strided_slice %139 {offsets = [0, 0], sizes = [8, 64], strides = [1, 1]} : vector<64x64xf32> to vector<8x64xf32>
    %141 = vector.extract_strided_slice %139 {offsets = [8, 0], sizes = [8, 64], strides = [1, 1]} : vector<64x64xf32> to vector<8x64xf32>
    %142 = arith.maximumf %140, %141 : vector<8x64xf32>
    %c0_81 = arith.constant 0 : index
    %c0_82 = arith.constant 0 : index
    %143 = vector.load %arg6[%c0_81, %c0_82] : memref<8x256xf32, #tpu.memory_space<vmem>>, vector<8x64xf32>
    tpu.vector_store %arg6[%c0_81, %c0_82], %142 {strides = array<i32>} : memref<8x256xf32, #tpu.memory_space<vmem>>, vector<8x64xf32>,
    %144 = vector.extract_strided_slice %139 {offsets = [16, 0], sizes = [8, 64], strides = [1, 1]} : vector<64x64xf32> to vector<8x64xf32>
    %145 = vector.extract_strided_slice %139 {offsets = [24, 0], sizes = [8, 64], strides = [1, 1]} : vector<64x64xf32> to vector<8x64xf32>
    %146 = arith.maximumf %144, %145 : vector<8x64xf32>
    %c0_83 = arith.constant 0 : index
    %c64_84 = arith.constant 64 : index
    %147 = vector.load %arg6[%c0_83, %c64_84] : memref<8x256xf32, #tpu.memory_space<vmem>>, vector<8x64xf32>
    tpu.vector_store %arg6[%c0_83, %c64_84], %146 {strides = array<i32>} : memref<8x256xf32, #tpu.memory_space<vmem>>, vector<8x64xf32>,
    %148 = vector.extract_strided_slice %139 {offsets = [32, 0], sizes = [8, 64], strides = [1, 1]} : vector<64x64xf32> to vector<8x64xf32>
    %149 = vector.extract_strided_slice %139 {offsets = [40, 0], sizes = [8, 64], strides = [1, 1]} : vector<64x64xf32> to vector<8x64xf32>
    %150 = arith.maximumf %148, %149 : vector<8x64xf32>
    %c0_85 = arith.constant 0 : index
    %c128 = arith.constant 128 : index
    %151 = vector.load %arg6[%c0_85, %c128] : memref<8x256xf32, #tpu.memory_space<vmem>>, vector<8x64xf32>
    tpu.vector_store %arg6[%c0_85, %c128], %150 {strides = array<i32>} : memref<8x256xf32, #tpu.memory_space<vmem>>, vector<8x64xf32>,
    %152 = vector.extract_strided_slice %139 {offsets = [48, 0], sizes = [8, 64], strides = [1, 1]} : vector<64x64xf32> to vector<8x64xf32>
    %153 = vector.extract_strided_slice %139 {offsets = [56, 0], sizes = [8, 64], strides = [1, 1]} : vector<64x64xf32> to vector<8x64xf32>
    %154 = arith.maximumf %152, %153 : vector<8x64xf32>
    %c0_86 = arith.constant 0 : index
    %c192 = arith.constant 192 : index
    %155 = vector.load %arg6[%c0_86, %c192] : memref<8x256xf32, #tpu.memory_space<vmem>>, vector<8x64xf32>
    tpu.vector_store %arg6[%c0_86, %c192], %154 {strides = array<i32>} : memref<8x256xf32, #tpu.memory_space<vmem>>, vector<8x64xf32>,
    return
  }
  func.func @transform_0(%arg0: i32) -> (i32, i32) {
    %c0_i32 = arith.constant 0 : i32
    %c0_i32_0 = arith.constant 0 : i32
    return %arg0, %c0_i32 : i32, i32
  }
  func.func @transform_1(%arg0: i32) -> (i32, i32, i32) {
    %c0_i32 = arith.constant 0 : i32
    %c0_i32_0 = arith.constant 0 : i32
    %c0_i32_1 = arith.constant 0 : i32
    %c0_i32_2 = arith.constant 0 : i32
    return %c0_i32, %c0_i32_0, %c0_i32_1 : i32, i32, i32
  }
  func.func @transform_2(%arg0: i32) -> (i32, i32) {
    %c0_i32 = arith.constant 0 : i32
    %c0_i32_0 = arith.constant 0 : i32
    %c0_i32_1 = arith.constant 0 : i32
    return %c0_i32, %c0_i32_0 : i32, i32
  }
  func.func @transform_3(%arg0: i32) -> (i32, i32, i32) {
    %c0_i32 = arith.constant 0 : i32
    %c0_i32_0 = arith.constant 0 : i32
    %c0_i32_1 = arith.constant 0 : i32
    %c0_i32_2 = arith.constant 0 : i32
    return %c0_i32, %c0_i32_0, %c0_i32_1 : i32, i32, i32
  }
  func.func @transform_4(%arg0: i32) -> (i32, i32) {
    %c0_i32 = arith.constant 0 : i32
    %c0_i32_0 = arith.constant 0 : i32
    %c0_i32_1 = arith.constant 0 : i32
    return %c0_i32, %c0_i32_0 : i32, i32
  }
  func.func @transform_5(%arg0: i32) -> (i32, i32) {
    %c0_i32 = arith.constant 0 : i32
    %c0_i32_0 = arith.constant 0 : i32
    return %arg0, %c0_i32 : i32, i32
  }
}

module attributes {stable_mosaic.version = 11 : i64} {
  func.func @_fc_stack_kernel(%arg0: i32, %arg1: memref<16x256xf32, #tpu.memory_space<vmem>>, %arg2: memref<256x128xf32, #tpu.memory_space<vmem>>, %arg3: memref<1x128xf32, #tpu.memory_space<vmem>>, %arg4: memref<1x128xf32, #tpu.memory_space<vmem>>, %arg5: memref<1x128xf32, #tpu.memory_space<vmem>>, %arg6: memref<128x128xf32, #tpu.memory_space<vmem>>, %arg7: memref<1x128xf32, #tpu.memory_space<vmem>>, %arg8: memref<1x128xf32, #tpu.memory_space<vmem>>, %arg9: memref<1x128xf32, #tpu.memory_space<vmem>>, %arg10: memref<128x128xf32, #tpu.memory_space<vmem>>, %arg11: memref<1x128xf32, #tpu.memory_space<vmem>>, %arg12: memref<1x128xf32, #tpu.memory_space<vmem>>, %arg13: memref<1x128xf32, #tpu.memory_space<vmem>>, %arg14: memref<16x128xf32, #tpu.memory_space<vmem>>) attributes {dimension_semantics = [#tpu.dimension_semantics<arbitrary>], iteration_bounds = array<i64: 1>, scalar_prefetch = 0 : i64, scratch_operands = 0 : i64, tpu.core_type = #tpu.core_type<tc>, window_params = [{pipeline_mode = #tpu.pipeline_mode<synchronous>, transform_indices = @transform_0, window_bounds = array<i64: 16, 256>}, {pipeline_mode = #tpu.pipeline_mode<synchronous>, transform_indices = @transform_1, window_bounds = array<i64: 256, 128>}, {pipeline_mode = #tpu.pipeline_mode<synchronous>, transform_indices = @transform_2, window_bounds = array<i64: 1, 128>}, {pipeline_mode = #tpu.pipeline_mode<synchronous>, transform_indices = @transform_3, window_bounds = array<i64: 1, 128>}, {pipeline_mode = #tpu.pipeline_mode<synchronous>, transform_indices = @transform_4, window_bounds = array<i64: 1, 128>}, {pipeline_mode = #tpu.pipeline_mode<synchronous>, transform_indices = @transform_5, window_bounds = array<i64: 128, 128>}, {pipeline_mode = #tpu.pipeline_mode<synchronous>, transform_indices = @transform_6, window_bounds = array<i64: 1, 128>}, {pipeline_mode = #tpu.pipeline_mode<synchronous>, transform_indices = @transform_7, window_bounds = array<i64: 1, 128>}, {pipeline_mode = #tpu.pipeline_mode<synchronous>, transform_indices = @transform_8, window_bounds = array<i64: 1, 128>}, {pipeline_mode = #tpu.pipeline_mode<synchronous>, transform_indices = @transform_9, window_bounds = array<i64: 128, 128>}, {pipeline_mode = #tpu.pipeline_mode<synchronous>, transform_indices = @transform_10, window_bounds = array<i64: 1, 128>}, {pipeline_mode = #tpu.pipeline_mode<synchronous>, transform_indices = @transform_11, window_bounds = array<i64: 1, 128>}, {pipeline_mode = #tpu.pipeline_mode<synchronous>, transform_indices = @transform_12, window_bounds = array<i64: 1, 128>}, {pipeline_mode = #tpu.pipeline_mode<synchronous>, transform_indices = @transform_13, window_bounds = array<i64: 16, 128>}]} {
    %c0 = arith.constant 0 : index
    %c0_0 = arith.constant 0 : index
    %0 = vector.load %arg1[%c0, %c0_0] : memref<16x256xf32, #tpu.memory_space<vmem>>, vector<16x256xf32>
    %c0_1 = arith.constant 0 : index
    %c0_2 = arith.constant 0 : index
    %1 = vector.load %arg2[%c0_1, %c0_2] : memref<256x128xf32, #tpu.memory_space<vmem>>, vector<256x128xf32>
    %cst = arith.constant dense<0.000000e+00> : vector<16x128xf32>
    %2 = tpu.matmul %0, %1, %cst {dimension_numbers = #tpu.dot_dimension_numbers<[1], [0], [0], [1], [0, 0, 1, 1], [], []>} : vector<16x256xf32>, vector<256x128xf32>, vector<16x128xf32> -> vector<16x128xf32>
    %c0_3 = arith.constant 0 : index
    %c0_4 = arith.constant 0 : index
    %3 = vector.load %arg3[%c0_3, %c0_4] : memref<1x128xf32, #tpu.memory_space<vmem>>, vector<1x128xf32>
    %4 = vector.broadcast %3 : vector<1x128xf32> to vector<16x128xf32>
    %5 = arith.addf %2, %4 : vector<16x128xf32>
    %cst_5 = arith.constant dense<0.000000e+00> : vector<128xf32>
    %6 = vector.multi_reduction <add>, %5, %cst_5 [0] : vector<16x128xf32> to vector<128xf32>
    %7 = vector.shape_cast %6 : vector<128xf32> to vector<1x128xf32>
    %cst_6 = arith.constant 1.600000e+01 : f32
    %8 = vector.broadcast %cst_6 : f32 to vector<1x128xf32>
    %9 = arith.divf %7, %8 : vector<1x128xf32>
    %10 = vector.broadcast %9 : vector<1x128xf32> to vector<16x128xf32>
    %11 = arith.subf %5, %10 : vector<16x128xf32>
    %12 = vector.broadcast %9 : vector<1x128xf32> to vector<16x128xf32>
    %13 = arith.subf %5, %12 : vector<16x128xf32>
    %14 = arith.mulf %11, %13 : vector<16x128xf32>
    %cst_7 = arith.constant dense<0.000000e+00> : vector<128xf32>
    %15 = vector.multi_reduction <add>, %14, %cst_7 [0] : vector<16x128xf32> to vector<128xf32>
    %16 = vector.shape_cast %15 : vector<128xf32> to vector<1x128xf32>
    %cst_8 = arith.constant 1.600000e+01 : f32
    %17 = vector.broadcast %cst_8 : f32 to vector<1x128xf32>
    %18 = arith.divf %16, %17 : vector<1x128xf32>
    %19 = vector.broadcast %9 : vector<1x128xf32> to vector<16x128xf32>
    %20 = arith.subf %5, %19 : vector<16x128xf32>
    %cst_9 = arith.constant 9.99999974E-6 : f32
    %21 = vector.broadcast %cst_9 : f32 to vector<1x128xf32>
    %22 = arith.addf %18, %21 : vector<1x128xf32>
    %23 = math.rsqrt %22 : vector<1x128xf32>
    %24 = vector.broadcast %23 : vector<1x128xf32> to vector<16x128xf32>
    %25 = arith.mulf %20, %24 : vector<16x128xf32>
    %c0_10 = arith.constant 0 : index
    %c0_11 = arith.constant 0 : index
    %26 = vector.load %arg4[%c0_10, %c0_11] : memref<1x128xf32, #tpu.memory_space<vmem>>, vector<1x128xf32>
    %27 = vector.broadcast %26 : vector<1x128xf32> to vector<16x128xf32>
    %28 = arith.mulf %25, %27 : vector<16x128xf32>
    %c0_12 = arith.constant 0 : index
    %c0_13 = arith.constant 0 : index
    %29 = vector.load %arg5[%c0_12, %c0_13] : memref<1x128xf32, #tpu.memory_space<vmem>>, vector<1x128xf32>
    %30 = vector.broadcast %29 : vector<1x128xf32> to vector<16x128xf32>
    %31 = arith.addf %28, %30 : vector<16x128xf32>
    %cst_14 = arith.constant 0.000000e+00 : f32
    %32 = vector.broadcast %cst_14 : f32 to vector<16x128xf32>
    %33 = arith.maximumf %31, %32 : vector<16x128xf32>
    %c0_15 = arith.constant 0 : index
    %c0_16 = arith.constant 0 : index
    %34 = vector.load %arg6[%c0_15, %c0_16] : memref<128x128xf32, #tpu.memory_space<vmem>>, vector<128x128xf32>
    %cst_17 = arith.constant dense<0.000000e+00> : vector<16x128xf32>
    %35 = tpu.matmul %33, %34, %cst_17 {dimension_numbers = #tpu.dot_dimension_numbers<[1], [0], [0], [1], [0, 0, 1, 1], [], []>} : vector<16x128xf32>, vector<128x128xf32>, vector<16x128xf32> -> vector<16x128xf32>
    %c0_18 = arith.constant 0 : index
    %c0_19 = arith.constant 0 : index
    %36 = vector.load %arg7[%c0_18, %c0_19] : memref<1x128xf32, #tpu.memory_space<vmem>>, vector<1x128xf32>
    %37 = vector.broadcast %36 : vector<1x128xf32> to vector<16x128xf32>
    %38 = arith.addf %35, %37 : vector<16x128xf32>
    %cst_20 = arith.constant dense<0.000000e+00> : vector<128xf32>
    %39 = vector.multi_reduction <add>, %38, %cst_20 [0] : vector<16x128xf32> to vector<128xf32>
    %40 = vector.shape_cast %39 : vector<128xf32> to vector<1x128xf32>
    %cst_21 = arith.constant 1.600000e+01 : f32
    %41 = vector.broadcast %cst_21 : f32 to vector<1x128xf32>
    %42 = arith.divf %40, %41 : vector<1x128xf32>
    %43 = vector.broadcast %42 : vector<1x128xf32> to vector<16x128xf32>
    %44 = arith.subf %38, %43 : vector<16x128xf32>
    %45 = vector.broadcast %42 : vector<1x128xf32> to vector<16x128xf32>
    %46 = arith.subf %38, %45 : vector<16x128xf32>
    %47 = arith.mulf %44, %46 : vector<16x128xf32>
    %cst_22 = arith.constant dense<0.000000e+00> : vector<128xf32>
    %48 = vector.multi_reduction <add>, %47, %cst_22 [0] : vector<16x128xf32> to vector<128xf32>
    %49 = vector.shape_cast %48 : vector<128xf32> to vector<1x128xf32>
    %cst_23 = arith.constant 1.600000e+01 : f32
    %50 = vector.broadcast %cst_23 : f32 to vector<1x128xf32>
    %51 = arith.divf %49, %50 : vector<1x128xf32>
    %52 = vector.broadcast %42 : vector<1x128xf32> to vector<16x128xf32>
    %53 = arith.subf %38, %52 : vector<16x128xf32>
    %cst_24 = arith.constant 9.99999974E-6 : f32
    %54 = vector.broadcast %cst_24 : f32 to vector<1x128xf32>
    %55 = arith.addf %51, %54 : vector<1x128xf32>
    %56 = math.rsqrt %55 : vector<1x128xf32>
    %57 = vector.broadcast %56 : vector<1x128xf32> to vector<16x128xf32>
    %58 = arith.mulf %53, %57 : vector<16x128xf32>
    %c0_25 = arith.constant 0 : index
    %c0_26 = arith.constant 0 : index
    %59 = vector.load %arg8[%c0_25, %c0_26] : memref<1x128xf32, #tpu.memory_space<vmem>>, vector<1x128xf32>
    %60 = vector.broadcast %59 : vector<1x128xf32> to vector<16x128xf32>
    %61 = arith.mulf %58, %60 : vector<16x128xf32>
    %c0_27 = arith.constant 0 : index
    %c0_28 = arith.constant 0 : index
    %62 = vector.load %arg9[%c0_27, %c0_28] : memref<1x128xf32, #tpu.memory_space<vmem>>, vector<1x128xf32>
    %63 = vector.broadcast %62 : vector<1x128xf32> to vector<16x128xf32>
    %64 = arith.addf %61, %63 : vector<16x128xf32>
    %cst_29 = arith.constant 0.000000e+00 : f32
    %65 = vector.broadcast %cst_29 : f32 to vector<16x128xf32>
    %66 = arith.maximumf %64, %65 : vector<16x128xf32>
    %c0_30 = arith.constant 0 : index
    %c0_31 = arith.constant 0 : index
    %67 = vector.load %arg10[%c0_30, %c0_31] : memref<128x128xf32, #tpu.memory_space<vmem>>, vector<128x128xf32>
    %cst_32 = arith.constant dense<0.000000e+00> : vector<16x128xf32>
    %68 = tpu.matmul %66, %67, %cst_32 {dimension_numbers = #tpu.dot_dimension_numbers<[1], [0], [0], [1], [0, 0, 1, 1], [], []>} : vector<16x128xf32>, vector<128x128xf32>, vector<16x128xf32> -> vector<16x128xf32>
    %c0_33 = arith.constant 0 : index
    %c0_34 = arith.constant 0 : index
    %69 = vector.load %arg11[%c0_33, %c0_34] : memref<1x128xf32, #tpu.memory_space<vmem>>, vector<1x128xf32>
    %70 = vector.broadcast %69 : vector<1x128xf32> to vector<16x128xf32>
    %71 = arith.addf %68, %70 : vector<16x128xf32>
    %cst_35 = arith.constant dense<0.000000e+00> : vector<128xf32>
    %72 = vector.multi_reduction <add>, %71, %cst_35 [0] : vector<16x128xf32> to vector<128xf32>
    %73 = vector.shape_cast %72 : vector<128xf32> to vector<1x128xf32>
    %cst_36 = arith.constant 1.600000e+01 : f32
    %74 = vector.broadcast %cst_36 : f32 to vector<1x128xf32>
    %75 = arith.divf %73, %74 : vector<1x128xf32>
    %76 = vector.broadcast %75 : vector<1x128xf32> to vector<16x128xf32>
    %77 = arith.subf %71, %76 : vector<16x128xf32>
    %78 = vector.broadcast %75 : vector<1x128xf32> to vector<16x128xf32>
    %79 = arith.subf %71, %78 : vector<16x128xf32>
    %80 = arith.mulf %77, %79 : vector<16x128xf32>
    %cst_37 = arith.constant dense<0.000000e+00> : vector<128xf32>
    %81 = vector.multi_reduction <add>, %80, %cst_37 [0] : vector<16x128xf32> to vector<128xf32>
    %82 = vector.shape_cast %81 : vector<128xf32> to vector<1x128xf32>
    %cst_38 = arith.constant 1.600000e+01 : f32
    %83 = vector.broadcast %cst_38 : f32 to vector<1x128xf32>
    %84 = arith.divf %82, %83 : vector<1x128xf32>
    %85 = vector.broadcast %75 : vector<1x128xf32> to vector<16x128xf32>
    %86 = arith.subf %71, %85 : vector<16x128xf32>
    %cst_39 = arith.constant 9.99999974E-6 : f32
    %87 = vector.broadcast %cst_39 : f32 to vector<1x128xf32>
    %88 = arith.addf %84, %87 : vector<1x128xf32>
    %89 = math.rsqrt %88 : vector<1x128xf32>
    %90 = vector.broadcast %89 : vector<1x128xf32> to vector<16x128xf32>
    %91 = arith.mulf %86, %90 : vector<16x128xf32>
    %c0_40 = arith.constant 0 : index
    %c0_41 = arith.constant 0 : index
    %92 = vector.load %arg12[%c0_40, %c0_41] : memref<1x128xf32, #tpu.memory_space<vmem>>, vector<1x128xf32>
    %93 = vector.broadcast %92 : vector<1x128xf32> to vector<16x128xf32>
    %94 = arith.mulf %91, %93 : vector<16x128xf32>
    %c0_42 = arith.constant 0 : index
    %c0_43 = arith.constant 0 : index
    %95 = vector.load %arg13[%c0_42, %c0_43] : memref<1x128xf32, #tpu.memory_space<vmem>>, vector<1x128xf32>
    %96 = vector.broadcast %95 : vector<1x128xf32> to vector<16x128xf32>
    %97 = arith.addf %94, %96 : vector<16x128xf32>
    %cst_44 = arith.constant 0.000000e+00 : f32
    %98 = vector.broadcast %cst_44 : f32 to vector<16x128xf32>
    %99 = arith.maximumf %97, %98 : vector<16x128xf32>
    %c0_45 = arith.constant 0 : index
    %c0_46 = arith.constant 0 : index
    %100 = vector.load %arg14[%c0_45, %c0_46] : memref<16x128xf32, #tpu.memory_space<vmem>>, vector<16x128xf32>
    tpu.vector_store %arg14[%c0_45, %c0_46], %99 {strides = array<i32>} : memref<16x128xf32, #tpu.memory_space<vmem>>, vector<16x128xf32>,
    return
  }
  func.func @transform_0(%arg0: i32) -> (i32, i32) {
    %c0_i32 = arith.constant 0 : i32
    %c0_i32_0 = arith.constant 0 : i32
    %c0_i32_1 = arith.constant 0 : i32
    return %c0_i32, %c0_i32_0 : i32, i32
  }
  func.func @transform_1(%arg0: i32) -> (i32, i32) {
    %c0_i32 = arith.constant 0 : i32
    %c0_i32_0 = arith.constant 0 : i32
    %c0_i32_1 = arith.constant 0 : i32
    return %c0_i32, %c0_i32_0 : i32, i32
  }
  func.func @transform_2(%arg0: i32) -> (i32, i32) {
    %c0_i32 = arith.constant 0 : i32
    %c0_i32_0 = arith.constant 0 : i32
    %c0_i32_1 = arith.constant 0 : i32
    return %c0_i32, %c0_i32_0 : i32, i32
  }
  func.func @transform_3(%arg0: i32) -> (i32, i32) {
    %c0_i32 = arith.constant 0 : i32
    %c0_i32_0 = arith.constant 0 : i32
    %c0_i32_1 = arith.constant 0 : i32
    return %c0_i32, %c0_i32_0 : i32, i32
  }
  func.func @transform_4(%arg0: i32) -> (i32, i32) {
    %c0_i32 = arith.constant 0 : i32
    %c0_i32_0 = arith.constant 0 : i32
    %c0_i32_1 = arith.constant 0 : i32
    return %c0_i32, %c0_i32_0 : i32, i32
  }
  func.func @transform_5(%arg0: i32) -> (i32, i32) {
    %c0_i32 = arith.constant 0 : i32
    %c0_i32_0 = arith.constant 0 : i32
    %c0_i32_1 = arith.constant 0 : i32
    return %c0_i32, %c0_i32_0 : i32, i32
  }
  func.func @transform_6(%arg0: i32) -> (i32, i32) {
    %c0_i32 = arith.constant 0 : i32
    %c0_i32_0 = arith.constant 0 : i32
    %c0_i32_1 = arith.constant 0 : i32
    return %c0_i32, %c0_i32_0 : i32, i32
  }
  func.func @transform_7(%arg0: i32) -> (i32, i32) {
    %c0_i32 = arith.constant 0 : i32
    %c0_i32_0 = arith.constant 0 : i32
    %c0_i32_1 = arith.constant 0 : i32
    return %c0_i32, %c0_i32_0 : i32, i32
  }
  func.func @transform_8(%arg0: i32) -> (i32, i32) {
    %c0_i32 = arith.constant 0 : i32
    %c0_i32_0 = arith.constant 0 : i32
    %c0_i32_1 = arith.constant 0 : i32
    return %c0_i32, %c0_i32_0 : i32, i32
  }
  func.func @transform_9(%arg0: i32) -> (i32, i32) {
    %c0_i32 = arith.constant 0 : i32
    %c0_i32_0 = arith.constant 0 : i32
    %c0_i32_1 = arith.constant 0 : i32
    return %c0_i32, %c0_i32_0 : i32, i32
  }
  func.func @transform_10(%arg0: i32) -> (i32, i32) {
    %c0_i32 = arith.constant 0 : i32
    %c0_i32_0 = arith.constant 0 : i32
    %c0_i32_1 = arith.constant 0 : i32
    return %c0_i32, %c0_i32_0 : i32, i32
  }
  func.func @transform_11(%arg0: i32) -> (i32, i32) {
    %c0_i32 = arith.constant 0 : i32
    %c0_i32_0 = arith.constant 0 : i32
    %c0_i32_1 = arith.constant 0 : i32
    return %c0_i32, %c0_i32_0 : i32, i32
  }
  func.func @transform_12(%arg0: i32) -> (i32, i32) {
    %c0_i32 = arith.constant 0 : i32
    %c0_i32_0 = arith.constant 0 : i32
    %c0_i32_1 = arith.constant 0 : i32
    return %c0_i32, %c0_i32_0 : i32, i32
  }
  func.func @transform_13(%arg0: i32) -> (i32, i32) {
    %c0_i32 = arith.constant 0 : i32
    %c0_i32_0 = arith.constant 0 : i32
    %c0_i32_1 = arith.constant 0 : i32
    return %c0_i32, %c0_i32_0 : i32, i32
  }
}

</mosaic_0001>

<bundles_post_ra>
// kernel: cnn_forward.3
= control target key start
LH: loop header
LB: loop body
LE: loop exit
PB: predicated region body
PF: predicated region fallthrough
CT: control target
= control target key end

     0   :  { %s1108_s0 = inlined_call_operand.vmem [shape: f32[16,256], index: 0, kind: input, shape index: {}]   ;;  %s1109_s1 = inlined_call_operand.vmem [shape: f32[256,128], index: 1, kind: input, shape index: {}]   ;;  %s1110_s2 = inlined_call_operand.vmem [shape: f32[1,128], index: 2, kind: input, shape index: {}]   ;;  %s1111_s3 = inlined_call_operand.vmem [shape: f32[1,128], index: 3, kind: input, shape index: {}]   ;;  %s1112_s4 = inlined_call_operand.vmem [shape: f32[1,128], index: 4, kind: input, shape index: {}]   ;;  %s1113_s5 = inlined_call_operand.vmem [shape: f32[128,128], index: 5, kind: input, shape index: {}]   ;;  %s1114_s6 = inlined_call_operand.vmem [shape: f32[1,128], index: 6, kind: input, shape index: {}]   ;;  %s1115_s7 = inlined_call_operand.vmem [shape: f32[1,128], index: 7, kind: input, shape index: {}]   ;;  %s1116_s8 = inlined_call_operand.vmem [shape: f32[1,128], index: 8, kind: input, shape index: {}]   ;;  %s1117_s9 = inlined_call_operand.vmem [shape: f32[128,128], index: 9, kind: input, shape index: {}]   ;;  %s1118_s10 = inlined_call_operand.vmem [shape: f32[1,128], index: 10, kind: input, shape index: {}]   ;;  %s1119_s11 = inlined_call_operand.vmem [shape: f32[1,128], index: 11, kind: input, shape index: {}]   ;;  %s1120_s12 = inlined_call_operand.vmem [shape: f32[1,128], index: 12, kind: input, shape index: {}]   ;;  %s1121_s13 = inlined_call_operand.hbm [shape: f32[16,128], index: 13, kind: output, shape index: {}]  }
   0x1   :  { %v65_v0 = vld [vmem:[%s1109_s1 + $0x80] sm:$0xff]  ;;  %v66_v1 = vld [vmem:[%s1109_s1 + $0x88] sm:$0xff]  ;;  %v67_v5 = vld [vmem:[%s1109_s1 + $0x90] sm:$0xff] }
   0x2   :  { %v49_v2 = vld [vmem:[%s1109_s1] sm:$0xff]  ;;  %v663_v3 = vpack.c.bf16 %v66_v1, %v65_v0  ;;  %v50_v4 = vld [vmem:[%s1109_s1 + $0x8] sm:$0xff]  ;;  %v68_v6 = vld [vmem:[%s1109_s1 + $0x98] sm:$0xff] }
   0x3   :  { %v665_v7 = vpack.c.bf16 %v50_v4, %v49_v2  ;;  %v667_v8 = vpack.c.bf16 %v68_v6, %v67_v5  ;;  %v51_v9 = vld [vmem:[%s1109_s1 + $0x10] sm:$0xff]  ;;  %v52_v10 = vld [vmem:[%s1109_s1 + $0x18] sm:$0xff]  ;;  %v69_v11 = vld [vmem:[%s1109_s1 + $0xa0] sm:$0xff] }
   0x4   :  { %664 = vmatprep.subr.bf16.mxu0 %v663_v3  ;;  %v70_v12 = vld [vmem:[%s1109_s1 + $0xa8] sm:$0xff]  ;;  %v669_v13 = vpack.c.bf16 %v52_v10, %v51_v9  ;;  %v53_v15 = vld [vmem:[%s1109_s1 + $0x20] sm:$0xff]  ;;  %v71_v17 = vld [vmem:[%s1109_s1 + $0xb0] sm:$0xff] }
   0x5   :  { %666 = vmatpush3.bf16.msra.mxu0 %v665_v7  ;;  %v671_v14 = vpack.c.bf16 %v70_v12, %v69_v11  ;;  %v54_v16 = vld [vmem:[%s1109_s1 + $0x28] sm:$0xff]  ;;  %v72_v18 = vld [vmem:[%s1109_s1 + $0xb8] sm:$0xff]  ;;  %v55_v21 = vld [vmem:[%s1109_s1 + $0x30] sm:$0xff] }
   0x6   :  { %668 = vmatprep.subr.bf16.mxu0 %v667_v8  ;;  %v673_v19 = vpack.c.bf16 %v54_v16, %v53_v15  ;;  %v675_v20 = vpack.c.bf16 %v72_v18, %v71_v17  ;;  %v56_v22 = vld [vmem:[%s1109_s1 + $0x38] sm:$0xff]  ;;  %v73_v23 = vld [vmem:[%s1109_s1 + $0xc0] sm:$0xff]  ;;  %v74_v24 = vld [vmem:[%s1109_s1 + $0xc8] sm:$0xff] }
   0x7   :  { %v46_v25 = vld [vmem:[%s1108_s0 + $0x8] sm:$0xff]  ;;  %v677_v26 = vpack.c.bf16 %v56_v22, %v55_v21 }
   0x8   :  { %152 = vmatprep.mubr.f32.mxu0 %v46_v25 }
   0x9   :  { %670 = vmatpush3.bf16.msra.mxu0 %v669_v13 }
   0xa   :  { %672 = vmatprep.subr.bf16.mxu0 %v671_v14 }
   0xd   :  { %674 = vmatpush3.bf16.msra.mxu0 %v673_v19 }
   0xe   :  { %18 = vsyncpa [#allocation3], 0  ;;  %676 = vmatprep.subr.bf16.mxu0 %v675_v20  ;;  %v679_v27 = vpack.c.bf16 %v74_v24, %v73_v23  ;;  %v57_v28 = vld [vmem:[%s1109_s1 + $0x40] sm:$0xff]  ;;  %v58_v29 = vld [vmem:[%s1109_s1 + $0x48] sm:$0xff]  ;;  %s792_s22 = smov [#allocation2]  }
   0xf   :  { %v75_v30 = vld [vmem:[%s1109_s1 + $0xd0] sm:$0xff]  ;;  %v76_v31 = vld [vmem:[%s1109_s1 + $0xd8] sm:$0xff]  ;;  %v681_v32 = vpack.c.bf16 %v58_v29, %v57_v28  ;;  %v77_v36 = vld [vmem:[%s1109_s1 + $0xe0] sm:$0xff]  ;;  %s499_s23 = sshll.u32 %s792_s22, 4  ;;  %s500_s23 = int_to_ptr.vmem [resolvable:$true] %s499_s23 }
  0x10   :  { %v683_v33 = vpack.c.bf16 %v76_v31, %v75_v30  ;;  %v59_v34 = vld [vmem:[%s1109_s1 + $0x50] sm:$0xff]  ;;  %v60_v35 = vld [vmem:[%s1109_s1 + $0x58] sm:$0xff]  ;;  %v78_v37 = vld [vmem:[%s1109_s1 + $0xe8] sm:$0xff]  ;;  %s768_s24 = scalar_lea.vmem %s500_s23, 256  ;;  %p773_p1 = scmp.lt.s32.totalorder %s500_s23, %s500_s23 }
  0x11   :  { %678 = vmatpush3.bf16.msra.mxu0 %v677_v26  ;;  %v685_v38 = vpack.c.bf16 %v60_v35, %v59_v34  ;;  %v687_v39 = vpack.c.bf16 %v78_v37, %v77_v36  ;;  %v61_v40 = vld [vmem:[%s1109_s1 + $0x60] sm:$0xff]  ;;  %v62_v41 = vld [vmem:[%s1109_s1 + $0x68] sm:$0xff]  ;;  %v79_v42 = vld [vmem:[%s1109_s1 + $0xf0] sm:$0xff]  ;;  %p769_p0 = scmp.ne.s32.totalorder %s500_s23, %s768_s24  ;;  %p774_p2 = scmp.lt.s32.totalorder %s768_s24, %s768_s24 }
  0x12   :  { %680 = vmatprep.subr.bf16.mxu0 %v679_v27  ;;  %v80_v43 = vld [vmem:[%s1109_s1 + $0xf8] sm:$0xff]  ;;  %v689_v44 = vpack.c.bf16 %v62_v41, %v61_v40  ;;  %v63_v46 = vld [vmem:[%s1109_s1 + $0x70] sm:$0xff]  ;;  %v45_v49 = vld [vmem:[%s1108_s0] sm:$0xff] }
  0x13   :  { %v691_v45 = vpack.c.bf16 %v80_v43, %v79_v42  ;;  %v64_v47 = vld [vmem:[%s1109_s1 + $0x78] sm:$0xff]  ;;  %v47_v51 = vld [vmem:[%s1108_s0 + $0x10] sm:$0xff]  ;;  %v208_v52 = vld [vmem:[%s1113_s5] sm:$0xff]  ;;  %p775_p3 = por %p774_p2, %p773_p1 }
  0x14   :  { %v693_v48 = vpack.c.bf16 %v64_v47, %v63_v46  ;;  %v48_v50 = vld [vmem:[%s1108_s0 + $0x18] sm:$0xff]  ;;  %v209_v53 = vld [vmem:[%s1113_s5 + $0x8] sm:$0xff]  ;;  %v210_v54 = vld [vmem:[%s1113_s5 + $0x10] sm:$0xff] }
  0x15   :  { %682 = vmatpush3.bf16.msra.mxu0 %v681_v32  ;;  %v695_v55 = vpack.c.bf16 %v209_v53, %v208_v52  ;;  %v211_v56 = vld [vmem:[%s1113_s5 + $0x18] sm:$0xff]  ;;  %v212_v58 = vld [vmem:[%s1113_s5 + $0x20] sm:$0xff]  ;;  %v213_v59 = vld [vmem:[%s1113_s5 + $0x28] sm:$0xff]  ;;  %p776_p4 = pnand %p775_p3, %p769_p0 }
  0x16   :  { %684 = vmatprep.subr.bf16.mxu0 %v683_v33  ;;  %v699_v57 = vpack.c.bf16 %v211_v56, %v210_v54  ;;  %v703_v60 = vpack.c.bf16 %v213_v59, %v212_v58  ;;  %v214_v61 = vld [vmem:[%s1113_s5 + $0x30] sm:$0xff]  ;;  %v215_v62 = vld [vmem:[%s1113_s5 + $0x38] sm:$0xff]  ;;  %v216_v0 = vld [vmem:[%s1113_s5 + $0x40] sm:$0xff] }
  0x17   :  { %696 = vmatprep.subr.bf16.mxu1 %v695_v55  ;;  %v707_v63 = vpack.c.bf16 %v215_v62, %v214_v61  ;;  %v217_v1 = vld [vmem:[%s1113_s5 + $0x48] sm:$0xff]  ;;  %v218_v3 = vld [vmem:[%s1113_s5 + $0x50] sm:$0xff]  ;;  %v219_v4 = vld [vmem:[%s1113_s5 + $0x58] sm:$0xff] }
  0x18   :  { %698 = vmatpush3.bf16.msra.mxu1 %v695_v55  ;;  %v711_v2 = vpack.c.bf16 %v217_v1, %v216_v0  ;;  %v715_v5 = vpack.c.bf16 %v219_v4, %v218_v3  ;;  %v220_v6 = vld [vmem:[%s1113_s5 + $0x60] sm:$0xff]  ;;  %v221_v7 = vld [vmem:[%s1113_s5 + $0x68] sm:$0xff]  ;;  %v222_v9 = vld [vmem:[%s1113_s5 + $0x70] sm:$0xff] }
  0x19   :  { %686 = vmatpush3.bf16.msra.mxu0 %v685_v38  ;;  %700 = vmatprep.subr.bf16.mxu1 %v699_v57  ;;  %v719_v8 = vpack.c.bf16 %v221_v7, %v220_v6  ;;  %v223_v10 = vld [vmem:[%s1113_s5 + $0x78] sm:$0xff]  ;;  %v510_v16 = vld [vmem:[%s1110_s2] ss:$0 sm:$0xff]  ;;  %v351_v54 = vld [vmem:[%s1117_s9 + $0x8] sm:$0xff] }
  0x1a   :  { %688 = vmatprep.subr.bf16.mxu0 %v687_v39  ;;  %v723_v11 = vpack.c.bf16 %v223_v10, %v222_v9  ;;  %v511_v43 = vld [vmem:[%s1111_s3] ss:$0 sm:$0xff]  ;;  %v352_v56 = vld [vmem:[%s1117_s9 + $0x10] sm:$0xff] }
  0x1b   :  { %v512_v46 = vld [vmem:[%s1112_s4] ss:$0 sm:$0xff]  ;;  %v356_v62 = vld [vmem:[%s1117_s9 + $0x30] sm:$0xff] }
  0x1c   :  { %702 = vmatpush3.bf16.msra.mxu1 %v699_v57  ;;  %v350_v53 = vld [vmem:[%s1117_s9] sm:$0xff]  ;;  %v353_v57 = vld [vmem:[%s1117_s9 + $0x18] sm:$0xff]  ;;  %v360_v4 = vld [vmem:[%s1117_s9 + $0x50] sm:$0xff] }
  0x1d   :  { %690 = vmatpush3.bf16.msra.mxu0 %v689_v44  ;;  %704 = vmatprep.subr.bf16.mxu1 %v703_v60  ;;  %v727_v55 = vpack.c.bf16 %v351_v54, %v350_v53  ;;  %v731_v58 = vpack.c.bf16 %v353_v57, %v352_v56  ;;  %v354_v59 = vld [vmem:[%s1117_s9 + $0x20] sm:$0xff]  ;;  %v364_v10 = vld [vmem:[%s1117_s9 + $0x70] sm:$0xff] }
  0x1e   :  { %692 = vmatprep.subr.bf16.mxu0 %v691_v45  ;;  %v358_v1 = vld [vmem:[%s1117_s9 + $0x40] sm:$0xff] }
  0x1f   :  { %v362_v7 = vld [vmem:[%s1117_s9 + $0x60] sm:$0xff] }
  0x20   :  { %706 = vmatpush3.bf16.msra.mxu1 %v703_v60  ;;  %v355_v60 = vld [vmem:[%s1117_s9 + $0x28] sm:$0xff] }
  0x21   :  { %694 = vmatpush3.bf16.msra.mxu0 %v693_v48  ;;  %708 = vmatprep.subr.bf16.mxu1 %v707_v63  ;;  %v735_v61 = vpack.c.bf16 %v355_v60, %v354_v59 }
  0x22   :  { %728 = vmatprep.subr.bf16.mxu0 %v727_v55 }
  0x24   :  { %153 = vmatmul.mubr.f32.vlgmr.msra.gmra.mrb[0].mxu0 %v45_v49  ;;  %710 = vmatpush3.bf16.msra.mxu1 %v707_v63  ;;  %v357_v63 = vld [vmem:[%s1117_s9 + $0x38] sm:$0xff] }
  0x25   :  { %157 = vmatprep.mubr.f32.mxu0 %v48_v50  ;;  %712 = vmatprep.subr.bf16.mxu1 %v711_v2  ;;  %v739_v0 = vpack.c.bf16 %v357_v63, %v356_v62 }
  0x26   :  { %730 = vmatpush3.bf16.msra.mxu0 %v727_v55 }
  0x27   :  { %732 = vmatprep.subr.bf16.mxu0 %v731_v58 }
  0x28   :  { %158 = vmatmul.mubr.f32.gmra.mrb[2].mxu0 %v47_v51  ;;  %714 = vmatpush3.bf16.msra.mxu1 %v711_v2  ;;  %v359_v2 = vld [vmem:[%s1117_s9 + $0x48] sm:$0xff] }
  0x29   :  { %716 = vmatprep.subr.bf16.mxu1 %v715_v5  ;;  %v743_v3 = vpack.c.bf16 %v359_v2, %v358_v1 }
  0x2a   :  { %734 = vmatpush3.bf16.msra.mxu0 %v731_v58 }
  0x2b   :  { %736 = vmatprep.subr.bf16.mxu0 %v735_v61 }
  0x2c   :  { %718 = vmatpush3.bf16.msra.mxu1 %v715_v5  ;;  %v361_v5 = vld [vmem:[%s1117_s9 + $0x58] sm:$0xff] }
  0x2d   :  { %720 = vmatprep.subr.bf16.mxu1 %v719_v8  ;;  %v747_v6 = vpack.c.bf16 %v361_v5, %v360_v4 }
  0x2e   :  { %738 = vmatpush3.bf16.msra.mxu0 %v735_v61 }
  0x2f   :  { %740 = vmatprep.subr.bf16.mxu0 %v739_v0 }
  0x30   :  { %722 = vmatpush3.bf16.msra.mxu1 %v719_v8  ;;  %v363_v8 = vld [vmem:[%s1117_s9 + $0x68] sm:$0xff] }
  0x31   :  { %724 = vmatprep.subr.bf16.mxu1 %v723_v11  ;;  %v751_v9 = vpack.c.bf16 %v363_v8, %v362_v7 }
  0x32   :  { %742 = vmatpush3.bf16.msra.mxu0 %v739_v0 }
  0x33   :  { %744 = vmatprep.subr.bf16.mxu0 %v743_v3 }
  0x34   :  { %726 = vmatpush3.bf16.msra.mxu1 %v723_v11  ;;  %v365_v11 = vld [vmem:[%s1117_s9 + $0x78] sm:$0xff] }
  0x36   :  { %746 = vmatpush3.bf16.msra.mxu0 %v743_v3 }
  0x37   :  { %748 = vmatprep.subr.bf16.mxu0 %v747_v6 }
  0x3a   :  { %750 = vmatpush3.bf16.msra.mxu0 %v747_v6 }
  0x3b   :  { %752 = vmatprep.subr.bf16.mxu0 %v751_v9 }
  0x3e   :  { %754 = vmatpush3.bf16.msra.mxu0 %v751_v9 }
  0xf7   :  { %v551_v12 = vpop.f32.mrb[0].mxu0 }
  0xf8   :  { %v552_v13 = vpop.f32.mrb[1].mxu0 }
  0xf9   :  { %v553_v14 = vadd.f32 %v552_v13, %v551_v12  ;;  %v755_v12 = vpack.c.bf16 %v365_v11, %v364_v10  ;;  %v513_v13 = vld [vmem:[%s1114_s6] ss:$0 sm:$0xff] }
  0xfb   :  { %v554_v15 = vpop.f32.mrb[2].mxu0  ;;  %v155_v19 = vadd.f32 %v553_v14, %v510_v16  ;;  %756 = vmatprep.subr.bf16.mxu0 %v755_v12 }
  0xfc   :  { %v555_v17 = vpop.f32.mrb[3].mxu0  ;;  %758 = vmatpush3.bf16.msra.mxu0 %v755_v12 }
  0xfd   :  { %v556_v18 = vadd.f32 %v555_v17, %v554_v15 }
  0xff   :  { %v160_v20 = vadd.f32 %v556_v18, %v510_v16 }
 0x101   :  { %v163_v21 = vadd.f32 %v160_v20, %v155_v19 }
 0x103   :  { %v164_v22 = vrot.slane %v163_v21, 4 }
 0x105   :  { %v165_v23 = vadd.f32 %v164_v22, %v163_v21 }
 0x107   :  { %v166_v24 = vrot.slane %v165_v23, 2 }
 0x109   :  { %v167_v25 = vadd.f32 %v166_v24, %v165_v23 }
 0x10b   :  { %v168_v26 = vrot.slane %v167_v25, 1 }
 0x10d   :  { %v169_v27 = vadd.f32 %v168_v26, %v167_v25 }
 0x10f   :  { %v171_v28 = vmul.f32 0.0625, %v169_v27 }
 0x111   :  { %v173_v29 = vsub.f32 %v160_v20, %v171_v28  ;;  %v172_v30 = vsub.f32 %v155_v19, %v171_v28 }
 0x113   :  { %v175_v31 = vmul.f32 %v173_v29, %v173_v29  ;;  %v174_v32 = vmul.f32 %v172_v30, %v172_v30 }
 0x115   :  { %v176_v33 = vadd.f32 %v175_v31, %v174_v32 }
 0x117   :  { %v177_v34 = vrot.slane %v176_v33, 4 }
 0x119   :  { %v178_v35 = vadd.f32 %v177_v34, %v176_v33 }
 0x11b   :  { %v179_v36 = vrot.slane %v178_v35, 2 }
 0x11d   :  { %v180_v37 = vadd.f32 %v179_v36, %v178_v35 }
 0x11f   :  { %v181_v38 = vrot.slane %v180_v37, 1 }
 0x121   :  { %v182_v39 = vadd.f32 %v181_v38, %v180_v37 }
 0x123   :  { %v183_v40 = vmul.f32 0.0625, %v182_v39 }
 0x125   :  { %v184_v41 = vadd.f32 1e-05, %v183_v40  ;;  %v514_v40 = vld [vmem:[%s1115_s7] ss:$0 sm:$0xff] }
 0x127   :  { %762 = vrsqrt.f32 %v184_v41 }
 0x131   :  { %v763_v42 = vpop.eup %762 }
 0x132   :  { %v186_v44 = vmul.f32 %v763_v42, %v172_v30  ;;  %v187_v45 = vmul.f32 %v763_v42, %v173_v29 }
 0x134   :  { %v195_v47 = vmul.f32 %v511_v43, %v186_v44  ;;  %v196_v48 = vmul.f32 %v511_v43, %v187_v45  ;;  %v515_v43 = vld [vmem:[%s1116_s8] ss:$0 sm:$0xff] }
 0x136   :  { %v204_v49 = vadd.f32 %v512_v46, %v195_v47  ;;  %v205_v50 = vadd.f32 %v512_v46, %v196_v48 }
 0x138   :  { %v206_v51 = vmax.f32 %v204_v49, 0.0  ;;  %v207_v52 = vmax.f32 %v205_v50, 0.0  ;;  %v516_v50 = vld [vmem:[%s1118_s10] ss:$0 sm:$0xff] }
 0x13a   :  { %625 = vmatprep.mubr.f32.mxu1 %v206_v51 }
 0x13b   :  { %626 = vmatmul.mubr.f32.vlgmr.msra.gmra.mrb[0].mxu1 %v207_v52 }
 0x20e   :  { %v627_v14 = vpop.f32.mrb[0].mxu1 }
 0x20f   :  { %v303_v15 = vadd.f32 %v627_v14, %v513_v13  ;;  %v297_v16 = vpop.f32.mrb[1].mxu1 }
 0x210   :  { %v298_v17 = vadd.f32 %v513_v13, %v297_v16  ;;  %v517_v13 = vld [vmem:[%s1119_s11] ss:$0 sm:$0xff] }
 0x211   :  { %v518_v16 = vld [vmem:[%s1120_s12] ss:$0 sm:$0xff] }
 0x212   :  { %v306_v18 = vadd.f32 %v303_v15, %v298_v17 }
 0x214   :  { %v307_v19 = vrot.slane %v306_v18, 4 }
 0x216   :  { %v308_v20 = vadd.f32 %v307_v19, %v306_v18 }
 0x218   :  { %v309_v21 = vrot.slane %v308_v20, 2 }
 0x21a   :  { %v310_v22 = vadd.f32 %v309_v21, %v308_v20 }
 0x21c   :  { %v311_v23 = vrot.slane %v310_v22, 1 }
 0x21e   :  { %v312_v24 = vadd.f32 %v311_v23, %v310_v22 }
 0x220   :  { %v313_v25 = vmul.f32 0.0625, %v312_v24 }
 0x222   :  { %v314_v26 = vsub.f32 %v298_v17, %v313_v25  ;;  %v315_v27 = vsub.f32 %v303_v15, %v313_v25 }
 0x224   :  { %v316_v28 = vmul.f32 %v314_v26, %v314_v26  ;;  %v317_v29 = vmul.f32 %v315_v27, %v315_v27 }
 0x226   :  { %v318_v30 = vadd.f32 %v317_v29, %v316_v28 }
 0x228   :  { %v319_v31 = vrot.slane %v318_v30, 4 }
 0x22a   :  { %v320_v32 = vadd.f32 %v319_v31, %v318_v30 }
 0x22c   :  { %v321_v33 = vrot.slane %v320_v32, 2 }
 0x22e   :  { %v322_v34 = vadd.f32 %v321_v33, %v320_v32 }
 0x230   :  { %v323_v35 = vrot.slane %v322_v34, 1 }
 0x232   :  { %v324_v36 = vadd.f32 %v323_v35, %v322_v34 }
 0x234   :  { %v325_v37 = vmul.f32 0.0625, %v324_v36 }
 0x236   :  { %v326_v38 = vadd.f32 1e-05, %v325_v37 }
 0x238   :  { %764 = vrsqrt.f32 %v326_v38 }
 0x242   :  { %v765_v39 = vpop.eup %764 }
 0x243   :  { %v328_v41 = vmul.f32 %v765_v39, %v314_v26  ;;  %v329_v42 = vmul.f32 %v765_v39, %v315_v27 }
 0x245   :  { %v337_v44 = vmul.f32 %v514_v40, %v328_v41  ;;  %v338_v45 = vmul.f32 %v514_v40, %v329_v42 }
 0x247   :  { %v346_v46 = vadd.f32 %v515_v43, %v337_v44  ;;  %v347_v47 = vadd.f32 %v515_v43, %v338_v45 }
 0x249   :  { %v348_v48 = vmax.f32 %v346_v46, 0.0  ;;  %v349_v49 = vmax.f32 %v347_v47, 0.0 }
 0x24b   :  { %660 = vmatprep.mubr.f32.mxu0 %v348_v48 }
 0x24c   :  { %661 = vmatmul.mubr.f32.vlgmr.msra.gmra.mrb[4].mxu0 %v349_v49 }
 0x31f   :  { %v662_v51 = vpop.f32.mrb[4].mxu0 }
 0x320   :  { %v445_v52 = vadd.f32 %v662_v51, %v516_v50  ;;  %v439_v53 = vpop.f32.mrb[5].mxu0 }
 0x321   :  { %v440_v54 = vadd.f32 %v516_v50, %v439_v53 }
 0x323   :  { %v448_v55 = vadd.f32 %v445_v52, %v440_v54 }
 0x325   :  { %v449_v56 = vrot.slane %v448_v55, 4 }
 0x327   :  { %v450_v57 = vadd.f32 %v449_v56, %v448_v55 }
 0x329   :  { %v451_v58 = vrot.slane %v450_v57, 2 }
 0x32b   :  { %v452_v59 = vadd.f32 %v451_v58, %v450_v57 }
 0x32d   :  { %v453_v60 = vrot.slane %v452_v59, 1 }
 0x32f   :  { %v454_v61 = vadd.f32 %v453_v60, %v452_v59 }
 0x331   :  { %v455_v62 = vmul.f32 0.0625, %v454_v61 }
 0x333   :  { %v456_v63 = vsub.f32 %v440_v54, %v455_v62  ;;  %v457_v0 = vsub.f32 %v445_v52, %v455_v62 }
 0x335   :  { %v458_v1 = vmul.f32 %v456_v63, %v456_v63  ;;  %v459_v2 = vmul.f32 %v457_v0, %v457_v0 }
 0x337   :  { %v460_v3 = vadd.f32 %v459_v2, %v458_v1 }
 0x339   :  { %v461_v4 = vrot.slane %v460_v3, 4 }
 0x33b   :  { %v462_v5 = vadd.f32 %v461_v4, %v460_v3 }
 0x33d   :  { %v463_v6 = vrot.slane %v462_v5, 2 }
 0x33f   :  { %v464_v7 = vadd.f32 %v463_v6, %v462_v5 }
 0x341   :  { %v465_v8 = vrot.slane %v464_v7, 1 }
 0x343   :  { %v466_v9 = vadd.f32 %v465_v8, %v464_v7 }
 0x345   :  { %v467_v10 = vmul.f32 0.0625, %v466_v9 }
 0x347   :  { %v468_v11 = vadd.f32 1e-05, %v467_v10 }
 0x349   :  { %766 = vrsqrt.f32 %v468_v11 }
 0x353   :  { %v767_v12 = vpop.eup %766 }
 0x354   :  { %v470_v14 = vmul.f32 %v767_v12, %v456_v63  ;;  %v471_v15 = vmul.f32 %v767_v12, %v457_v0 }
 0x356   :  { %v479_v17 = vmul.f32 %v517_v13, %v470_v14  ;;  %v480_v18 = vmul.f32 %v517_v13, %v471_v15 }
 0x358   :  { %v488_v19 = vadd.f32 %v518_v16, %v479_v17  ;;  %v489_v20 = vadd.f32 %v518_v16, %v480_v18 }
 0x35a   :  { %v490_v21 = vmax.f32 %v488_v19, 0.0  ;;  %v491_v22 = vmax.f32 %v489_v20, 0.0 }
 0x35c   :  { %492 = vst [vmem:[#allocation2] sm:$0xff] %v490_v21  ;;  %493 = vst [vmem:[#allocation2 + $0x8] sm:$0xff] %v491_v22 }
 0x35d   :  { %779 = shalt.err (!%p776_p4)
}
 0x35e   :  { %s780_s2 = scalar_lea.hbm %s1121_s13, 256 }
 0x35f   :  { %p781_p5 = scmp.ne.s32.totalorder %s1121_s13, %s780_s2  ;;  %p784_p6 = scmp.lt.u32.totalorder %s780_s2, %s1121_s13 }
 0x361   :  { %p786_p7 = pnand %p784_p6, %p781_p5 }
 0x363   :  { %789 = shalt.err (!%p786_p7)
}
 0x364   :  { %s793_s28 = smov 128   ;;  %s794_s1 = smov 8  }
 0x365   :  { %505 = dma.vmem_to_hbm [thread:$0]  %s500_s23, 256, %s1121_s13, [#allocation3], %s793_s28, %s793_s28, %s794_s1  }
 0x366   :  { %790 = dma.done.wait [#allocation3], 256  }
 0x367   :  { %791 = vsyncadd [#allocation3], 4294967040 }
 0x368   :  { %509 = vsyncpa [#allocation3], 1 }

// kernel: cnn_forward.2
= control target key start
LH: loop header
LB: loop body
LE: loop exit
PB: predicated region body
PF: predicated region fallthrough
CT: control target
= control target key end

     0   :  { %s4960_s18 = smov 0   ;;  %s6770_s0 = inlined_call_operand.vmem [shape: f32[448,28], index: 0, kind: input, shape index: {}]   ;;  %s6771_s1 = inlined_call_operand.vmem [shape: f32[5,28,144], index: 1, kind: input, shape index: {}]   ;;  %s6772_s2 = inlined_call_operand.vmem [shape: f32[1,144], index: 2, kind: input, shape index: {}]   ;;  %s6773_s3 = inlined_call_operand.vmem [shape: f32[5,72,128], index: 3, kind: input, shape index: {}]   ;;  %s6774_s4 = inlined_call_operand.vmem [shape: f32[1,128], index: 4, kind: input, shape index: {}]   ;;  %s6775_s5 = inlined_call_operand.vmem [shape: f32[16,256], index: 5, kind: output, shape index: {}]  }
   0x1 LB: > { %s4966_s19 = sadd.s32 4294967295, %s4923_s18   ;;  %p3659_p0 = scmp.ge.s32.totalorder %s4923_s18, 1  ;;  %s4923_s18 = sphi %s4960_s18, %s15_s18  }
   0x2   : > { %p188_p1 = scmp.lt.s32.totalorder %s4923_s18, 3 }
   0x4   : > { %p189_p2 = pnand %p3659_p0, %p188_p1 }
   0x6   : > { %192 = sbr.rel (%p189_p2) target bundleno = 1601 (0x641), region = 40 }
   0xd   : > { %v3664_v0 = vld [vmem:[%s6771_s1 + $0x48] sm:$0xff]  ;;  %v3666_v1 = vld [vmem:[%s6771_s1 + $0x58] sm:$0xff]  ;;  %v3663_v2 = vld [vmem:[%s6771_s1 + $0x40] sm:$0xff]  ;;  %vm342_vm0 = vcmask 1043456   ;;  %v4925_v7 = vmov 0.0   ;;  %s216_s7 = smul.u32 28, %s4966_s19  ;;  %v1882_v10 = vlaneseq }
   0xe   : > { %v4428_v3 = vpack.c.bf16 %v3666_v1, %v3664_v0  ;;  %v3665_v4 = vld [vmem:[%s6771_s1 + $0x50] sm:$0xff]  ;;  %v3668_v5 = vld [vmem:[%s6771_s1 + $0x68] sm:$0xff]  ;;  %v3670_v6 = vld [vmem:[%s6771_s1 + $0x78] sm:$0xf]  ;;  %413 = vmatprep.mubr.f32.mxu0 %v4925_v7  ;;  %455 = vmatprep.mubr.f32.mxu1 %v4925_v7  ;;  %vm4926_vm1 = vmmov 1   ;;  %vm269_vm3 = vcmask 228352  }
   0xf   : > { %v4430_v8 = vpack.c.bf16 %v3665_v4, %v3663_v2  ;;  %v4432_v9 = vpack.c.bf16 %v3670_v6, %v3668_v5  ;;  %vm4991_vm2 = vmpackc.low %vm342_vm0, %vm4926_vm1  ;;  %v3667_v11 = vld [vmem:[%s6771_s1 + $0x60] sm:$0xff]  ;;  %v3669_v12 = vld [vmem:[%s6771_s1 + $0x70] sm:$0xf]  ;;  %p217_p3 = scmp.lt.s32.totalorder %s216_s7, 55  ;;  %p222_p4 = scmp.lt.s32.totalorder %s4966_s19, 1 }
  0x10   : > { %4429 = vmatprep.subr.bf16.mxu0 %v4428_v3  ;;  %v252_v13 = vld [vmem:[%s6771_s1 + $0x8] sm:$0xff]  ;;  %v254_v14 = vld [vmem:[%s6771_s1 + $0x18] sm:$0xff]  ;;  %4676 = vmatprep.subr.bf16.mxu1 %v4428_v3  ;;  %v4435_v15 = vpack.c.bf16 %v3669_v12, %v3667_v11  ;;  %v251_v17 = vld [vmem:[%s6771_s1] sm:$0xff] }
  0x11   : > { %4431 = vmatpush1.bf16.msra.mxu0 %v4430_v8  ;;  %4678 = vmatpush1.bf16.msra.mxu1 %v4430_v8  ;;  %s6999_s7 = smov (!%p217_p3, %s216_s7), 55  ;;  %v4438_v16 = vpack.c.bf16 %v254_v14, %v252_v13  ;;  %v253_v18 = vld [vmem:[%s6771_s1 + $0x10] sm:$0xff]  ;;  %v256_v19 = vld [vmem:[%s6771_s1 + $0x28] sm:$0xff]  ;;  %v258_v20 = vld [vmem:[%s6771_s1 + $0x38] sm:$0xf]  ;;  %s7001_s19 = smov (!%p222_p4, %s4966_s19), 1 }
  0x12   : > { %4434 = vmatprep.subr.msk.bf16.mxu0 %vm4991_vm2, %v4432_v9  ;;  %4677 = vmatprep.subr.msk.bf16.mxu1 %vm4991_vm2, %v4432_v9  ;;  %s3660_s26 = sshll.u32 %s6999_s7, 3  ;;  %v4440_v21 = vpack.c.bf16 %v253_v18, %v251_v17  ;;  %v4442_v23 = vpack.c.bf16 %v258_v20, %v256_v19  ;;  %v255_v24 = vld [vmem:[%s6771_s1 + $0x20] sm:$0xff]  ;;  %v257_v25 = vld [vmem:[%s6771_s1 + $0x30] sm:$0xf]  ;;  %v3724_v26 = vld [vmem:[%s6771_s1 + $0x88] sm:$0xff]  ;;  %s4056_s14 = sshll.u32 %s7001_s19, 4 }
  0x13   : > { %s5028_s29 = scalar_lea.vmem %s6770_s0, %s3660_s26  ;;  %v3726_v27 = vld [vmem:[%s6771_s1 + $0x98] sm:$0xff]  ;;  %v4445_v29 = vpack.c.bf16 %v257_v25, %v255_v24  ;;  %v3723_v42 = vld [vmem:[%s6771_s1 + $0x80] sm:$0xff]  ;;  %v3725_v43 = vld [vmem:[%s6771_s1 + $0x90] sm:$0xff]  ;;  %s226_s17 = scalar_lea.vmem %s6775_s5, %s4056_s14 }
  0x14   : > { %v5033_v22 = vld [vmem:[%s5028_s29 + $0x8] sm:$0xff]  ;;  %v5051_v28 = vld [vmem:[%s5028_s29 + $0x10] sm:$0xff]  ;;  %v5054_v30 = vld [vmem:[%s5028_s29 + $0x40] sm:$0xff]  ;;  %v4448_v31 = vpack.c.bf16 %v3726_v27, %v3724_v26  ;;  %v4450_v47 = vpack.c.bf16 %v3725_v43, %v3723_v42  ;;  %v6776_v26 = vmov 0.0|0.0   ;;  %v5465_v27 = vshrl.u32 %v1882_v10, 7  ;;  %s4929_s19 = smov 64  }
  0x15   : > { %4437 = vmatpush1.bf16.msk.msra.mxu0 %vm4991_vm2, %v4435_v15  ;;  %4679 = vmatpush1.bf16.msk.msra.mxu1 %vm4991_vm2, %v4435_v15  ;;  %v5065_v32 = vld [vmem:[%s5028_s29 + $0x18] sm:$0xff]  ;;  %v5070_v33 = vld [vmem:[%s5028_s29 + $0x48] sm:$0xff]  ;;  %v5079_v34 = vld [vmem:[%s5028_s29 + $0x20] sm:$0xff] }
  0x16   : > { %4439 = vmatprep.subr.bf16.mxu0 %v4438_v16  ;;  %v5082_v35 = vld [vmem:[%s5028_s29 + $0x50] sm:$0xff]  ;;  %v5091_v36 = vld [vmem:[%s5028_s29 + $0x28] sm:$0xff]  ;;  %v5094_v37 = vld [vmem:[%s5028_s29 + $0x58] sm:$0xff]  ;;  %4478 = vmatprep.subr.bf16.mxu1 %v6776_v26  ;;  %v5478_v42 = vadd.s32 24, %v5465_v27  ;;  %v5482_v43 = vadd.s32 32, %v5465_v27 }
  0x17   : > { %v5103_v38 = vld [vmem:[%s5028_s29 + $0x30] sm:$0xff]  ;;  %v5106_v39 = vld [vmem:[%s5028_s29 + $0x60] sm:$0xff]  ;;  %v5115_v40 = vld [vmem:[%s5028_s29 + $0x38] sm:$0xff] }
  0x18   : > { %3673 = vmatmul.mubr.msk.f32.vlgmr.msra.gmra.mrb[0].mxu0 %vm269_vm3, %v5033_v22  ;;  %3680 = vmatmul.mubr.msk.f32.vlgmr.msra.gmra.mrb[0].mxu1 %vm269_vm3, %v5054_v30  ;;  %v5118_v41 = vld [vmem:[%s5028_s29 + $0x68] sm:$0xff]  ;;  %v3730_v45 = vld [vmem:[%s6771_s1 + $0xb8] sm:$0xf]  ;;  %v227_v46 = vld [vmem:[%s5028_s29] sm:$0xff] }
  0x19   : > { %4441 = vmatpush1.bf16.msra.mxu0 %v4440_v21  ;;  %419 = vmatprep.mubr.f32.mxu0 %v4925_v7  ;;  %v3728_v44 = vld [vmem:[%s6771_s1 + $0xa8] sm:$0xff]  ;;  %v5140_v48 = vld [vmem:[%s5028_s29 + $0x70] sm:$0xff]  ;;  %v3727_v50 = vld [vmem:[%s6771_s1 + $0xa0] sm:$0xff] }
  0x1a   : > { %4444 = vmatprep.subr.msk.bf16.mxu0 %vm4991_vm2, %v4442_v23  ;;  %461 = vmatprep.mubr.f32.mxu1 %v4925_v7  ;;  %v4452_v49 = vpack.c.bf16 %v3730_v45, %v3728_v44  ;;  %v3729_v51 = vld [vmem:[%s6771_s1 + $0xb0] sm:$0xf]  ;;  %v3758_v52 = vld [vmem:[%s6771_s1 + $0xc8] sm:$0xff]  ;;  %v3760_v53 = vld [vmem:[%s6771_s1 + $0xd8] sm:$0xff]  ;;  %v5485_v44 = vadd.s32 40, %v5465_v27  ;;  %v6859_v45 = vmov 0 }
  0x1b   : > { %v4455_v54 = vpack.c.bf16 %v3729_v51, %v3727_v50  ;;  %v5160_v55 = vld [vmem:[%s5028_s29 + $0x78] sm:$0xff]  ;;  %v4458_v56 = vpack.c.bf16 %v3760_v53, %v3758_v52  ;;  %v5173_v57 = vld [vmem:[%s5028_s29 + $0x80] sm:$0xff]  ;;  %v5182_v58 = vld [vmem:[%s5028_s29 + $0x88] sm:$0xff]  ;;  %v5518_v50 = vadd.s32 56, %v5465_v27  ;;  %v6865_v51 = vmov 0 }
  0x1c   : > { %3674 = vmatmul.mubr.msk.f32.gmra.mrb[2].mxu0 %vm269_vm3, %v5051_v28  ;;  %3681 = vmatmul.mubr.msk.f32.gmra.mrb[2].mxu1 %vm269_vm3, %v5070_v33  ;;  %v5191_v59 = vld [vmem:[%s5028_s29 + $0x90] sm:$0xff]  ;;  %v5200_v60 = vld [vmem:[%s5028_s29 + $0x98] sm:$0xff]  ;;  %v5209_v61 = vld [vmem:[%s5028_s29 + $0xa0] sm:$0xff]  ;;  %v5536_v52 = vadd.s32 64, %v5465_v27  ;;  %v5539_v53 = vadd.s32 72, %v5465_v27 }
  0x1d   : > { %425 = vmatprep.mubr.f32.mxu0 %v4925_v7  ;;  %4447 = vmatpush1.bf16.msk.msra.mxu0 %vm4991_vm2, %v4445_v29  ;;  %v5218_v62 = vld [vmem:[%s5028_s29 + $0xa8] sm:$0xff]  ;;  %v5227_v63 = vld [vmem:[%s5028_s29 + $0xb0] sm:$0xff]  ;;  %v5236_v0 = vld [vmem:[%s5028_s29 + $0xb8] sm:$0xff]  ;;  %v5470_v29 = vadd.s32 8, %v5465_v27 }
  0x1e   : > { %4449 = vmatprep.subr.bf16.mxu0 %v4448_v31  ;;  %467 = vmatprep.mubr.f32.mxu1 %v4925_v7  ;;  %v5257_v1 = vld [vmem:[%s5028_s29 + $0xc0] sm:$0xff]  ;;  %v3759_v3 = vld [vmem:[%s6771_s1 + $0xd0] sm:$0xff]  ;;  %v3762_v4 = vld [vmem:[%s6771_s1 + $0xe8] sm:$0xff] }
  0x1f   : > { %v3757_v2 = vld [vmem:[%s6771_s1 + $0xc0] sm:$0xff]  ;;  %v3764_v5 = vld [vmem:[%s6771_s1 + $0xf8] sm:$0xf]  ;;  %v3763_v11 = vld [vmem:[%s6771_s1 + $0xf0] sm:$0xf] }
  0x20   : > { %3675 = vmatmul.mubr.msk.f32.gmra.mrb[4].mxu0 %vm269_vm3, %v5065_v32  ;;  %3682 = vmatmul.mubr.msk.f32.gmra.mrb[4].mxu1 %vm269_vm3, %v5082_v35  ;;  %v4460_v6 = vpack.c.bf16 %v3759_v3, %v3757_v2  ;;  %v4462_v8 = vpack.c.bf16 %v3764_v5, %v3762_v4  ;;  %v3761_v9 = vld [vmem:[%s6771_s1 + $0xe0] sm:$0xff]  ;;  %v3792_v12 = vld [vmem:[%s6771_s1 + $0x108] sm:$0xff]  ;;  %v3794_v13 = vld [vmem:[%s6771_s1 + $0x118] sm:$0xff]  ;;  %v5560_v2 = vadd.s32 88, %v5465_v27  ;;  %v6871_v3 = vmov 0 }
  0x21   : > { %431 = vmatprep.mubr.f32.mxu0 %v4925_v7  ;;  %473 = vmatprep.mubr.f32.mxu1 %v4925_v7  ;;  %v4465_v14 = vpack.c.bf16 %v3763_v11, %v3761_v9  ;;  %v4468_v15 = vpack.c.bf16 %v3794_v13, %v3792_v12  ;;  %v5389_v16 = vld [vmem:[%s5028_s29 + $0xc8] sm:$0xff]  ;;  %v3791_v17 = vld [vmem:[%s6771_s1 + $0x100] sm:$0xff]  ;;  %v3793_v18 = vld [vmem:[%s6771_s1 + $0x110] sm:$0xff]  ;;  %v5578_v4 = vadd.s32 96, %v5465_v27  ;;  %v5581_v5 = vadd.s32 104, %v5465_v27 }
  0x22   : > { %v3796_v19 = vld [vmem:[%s6771_s1 + $0x128] sm:$0xff]  ;;  %v3798_v20 = vld [vmem:[%s6771_s1 + $0x138] sm:$0xf]  ;;  %v4470_v21 = vpack.c.bf16 %v3793_v18, %v3791_v17  ;;  %v3795_v23 = vld [vmem:[%s6771_s1 + $0x120] sm:$0xff]  ;;  %v5602_v9 = vadd.s32 120, %v5465_v27  ;;  %v6877_v12 = vmov 0 }
  0x23   : > { %v3797_v24 = vld [vmem:[%s6771_s1 + $0x130] sm:$0xf]  ;;  %v6880_v13 = vmov 0 }
  0x24   : > { %3676 = vmatmul.mubr.msk.f32.gmra.mrb[6].mxu0 %vm269_vm3, %v5079_v34  ;;  %3683 = vmatmul.mubr.msk.f32.gmra.mrb[6].mxu1 %vm269_vm3, %v5094_v37  ;;  %v4475_v25 = vpack.c.bf16 %v3797_v24, %v3795_v23  ;;  %v1167_v11 = vld [vmem:[%s5028_s29 + $0xd0] sm:$0xff] }
  0x25   : > { %437 = vmatprep.mubr.f32.mxu0 %v4925_v7  ;;  %479 = vmatprep.mubr.f32.mxu1 %v4925_v7 }
  0x28   : > { %3677 = vmatmul.mubr.msk.f32.gmra.mrb[8].mxu0 %vm269_vm3, %v5091_v36  ;;  %3684 = vmatmul.mubr.msk.f32.gmra.mrb[8].mxu1 %vm269_vm3, %v5106_v39 }
  0x29   : > { %443 = vmatprep.mubr.f32.mxu0 %v4925_v7  ;;  %485 = vmatprep.mubr.f32.mxu1 %v4925_v7 }
  0x2c   : > { %3678 = vmatmul.mubr.msk.f32.gmra.mrb[10].mxu0 %vm269_vm3, %v5103_v38  ;;  %3685 = vmatmul.mubr.msk.f32.gmra.mrb[10].mxu1 %vm269_vm3, %v5118_v41 }
  0x2d   : > { %449 = vmatprep.mubr.f32.mxu0 %v4925_v7  ;;  %491 = vmatprep.mubr.f32.mxu1 %v4925_v7 }
  0x30   : > { %3679 = vmatmul.mubr.msk.f32.gmra.mrb[12].mxu0 %vm269_vm3, %v5115_v40  ;;  %3686 = vmatmul.mubr.msk.f32.gmra.mrb[12].mxu1 %vm269_vm3, %v5140_v48 }
  0x31   : > { %631 = vmatprep.mubr.f32.mxu0 %v4925_v7  ;;  %497 = vmatprep.mubr.f32.mxu1 %v4925_v7 }
  0x34   : > { %3699 = vmatmul.mubr.msk.f32.vlgmr.msra.gmra.mrb[0].mxu0 %vm269_vm3, %v227_v46  ;;  %3687 = vmatmul.mubr.msk.f32.gmra.mrb[14].mxu1 %vm269_vm3, %v5160_v55  ;;  %v6778_v46 = vmov 1.0|1.0  }
  0x35   : > { %4451 = vmatpush1.bf16.msra.mxu0 %v4450_v47  ;;  %637 = vmatprep.mubr.f32.mxu0 %v4925_v7  ;;  %v6862_v47 = vmov 0 }
  0x36   : > { %4454 = vmatprep.subr.msk.bf16.mxu0 %vm4991_vm2, %v4452_v49  ;;  %503 = vmatprep.mubr.f32.mxu1 %v4925_v7  ;;  %v5515_v49 = vadd.s32 48, %v5465_v27 }
  0x38   : > { %3700 = vmatmul.mubr.msk.f32.gmra.mrb[2].mxu0 %vm269_vm3, %v5033_v22  ;;  %3688 = vmatmul.mubr.msk.f32.gmra.mrb[16].mxu1 %vm269_vm3, %v5173_v57  ;;  %v4472_v22 = vpack.c.bf16 %v3798_v20, %v3796_v19 }
  0x39   : > { %643 = vmatprep.mubr.f32.mxu0 %v4925_v7  ;;  %4457 = vmatpush1.bf16.msk.msra.mxu0 %vm4991_vm2, %v4455_v54  ;;  %v6868_v54 = vmov 0 }
  0x3a   : > { %4459 = vmatprep.subr.bf16.mxu0 %v4458_v56  ;;  %509 = vmatprep.mubr.f32.mxu1 %v4925_v7  ;;  %v5557_v56 = vadd.s32 80, %v5465_v27 }
  0x3c   : > { %3701 = vmatmul.mubr.msk.f32.gmra.mrb[4].mxu0 %vm269_vm3, %v5051_v28  ;;  %3689 = vmatmul.mubr.msk.f32.gmra.mrb[18].mxu1 %vm269_vm3, %v5182_v58 }
  0x3d   : > { %649 = vmatprep.mubr.f32.mxu0 %v4925_v7  ;;  %515 = vmatprep.mubr.f32.mxu1 %v4925_v7 }
  0x40   : > { %3702 = vmatmul.mubr.msk.f32.gmra.mrb[6].mxu0 %vm269_vm3, %v5065_v32  ;;  %3690 = vmatmul.mubr.msk.f32.gmra.mrb[20].mxu1 %vm269_vm3, %v5191_v59 }
  0x41   : > { %655 = vmatprep.mubr.f32.mxu0 %v4925_v7  ;;  %521 = vmatprep.mubr.f32.mxu1 %v4925_v7 }
  0x44   : > { %3703 = vmatmul.mubr.msk.f32.gmra.mrb[8].mxu0 %vm269_vm3, %v5079_v34  ;;  %3691 = vmatmul.mubr.msk.f32.gmra.mrb[22].mxu1 %vm269_vm3, %v5200_v60 }
  0x45   : > { %661 = vmatprep.mubr.f32.mxu0 %v4925_v7  ;;  %527 = vmatprep.mubr.f32.mxu1 %v4925_v7 }
  0x48   : > { %3704 = vmatmul.mubr.msk.f32.gmra.mrb[10].mxu0 %vm269_vm3, %v5091_v36  ;;  %3692 = vmatmul.mubr.msk.f32.gmra.mrb[24].mxu1 %vm269_vm3, %v5209_v61 }
  0x49   : > { %667 = vmatprep.mubr.f32.mxu0 %v4925_v7  ;;  %533 = vmatprep.mubr.f32.mxu1 %v4925_v7 }
  0x4c   : > { %3705 = vmatmul.mubr.msk.f32.gmra.mrb[12].mxu0 %vm269_vm3, %v5103_v38  ;;  %3693 = vmatmul.mubr.msk.f32.gmra.mrb[26].mxu1 %vm269_vm3, %v5218_v62 }
  0x4d   : > { %673 = vmatprep.mubr.f32.mxu0 %v4925_v7  ;;  %539 = vmatprep.mubr.f32.mxu1 %v4925_v7 }
  0x50   : > { %3706 = vmatmul.mubr.msk.f32.gmra.mrb[14].mxu0 %vm269_vm3, %v5115_v40  ;;  %3694 = vmatmul.mubr.msk.f32.gmra.mrb[28].mxu1 %vm269_vm3, %v5227_v63 }
  0x51   : > { %679 = vmatprep.mubr.f32.mxu0 %v4925_v7  ;;  %545 = vmatprep.mubr.f32.mxu1 %v4925_v7 }
  0x54   : > { %3707 = vmatmul.mubr.msk.f32.gmra.mrb[16].mxu0 %vm269_vm3, %v5054_v30  ;;  %3695 = vmatmul.mubr.msk.f32.gmra.mrb[30].mxu1 %vm269_vm3, %v5236_v0 }
  0x55   : > { %685 = vmatprep.mubr.f32.mxu0 %v4925_v7  ;;  %551 = vmatprep.mubr.f32.mxu1 %v4925_v7 }
  0x58   : > { %3708 = vmatmul.mubr.msk.f32.gmra.mrb[18].mxu0 %vm269_vm3, %v5070_v33  ;;  %3696 = vmatmul.mubr.msk.f32.gmra.mrb[32].mxu1 %vm269_vm3, %v5257_v1 }
  0x59   : > { %691 = vmatprep.mubr.f32.mxu0 %v4925_v7 }
  0x5c   : > { %3709 = vmatmul.mubr.msk.f32.gmra.mrb[20].mxu0 %vm269_vm3, %v5082_v35 }
  0x5d   : > { %697 = vmatprep.mubr.f32.mxu0 %v4925_v7 }
  0x60   : > { %3710 = vmatmul.mubr.msk.f32.gmra.mrb[22].mxu0 %vm269_vm3, %v5094_v37 }
  0x61   : > { %703 = vmatprep.mubr.f32.mxu0 %v4925_v7 }
  0x64   : > { %3711 = vmatmul.mubr.msk.f32.gmra.mrb[24].mxu0 %vm269_vm3, %v5106_v39 }
  0x65   : > { %709 = vmatprep.mubr.f32.mxu0 %v4925_v7 }
  0x68   : > { %3712 = vmatmul.mubr.msk.f32.gmra.mrb[26].mxu0 %vm269_vm3, %v5118_v41 }
  0x69   : > { %715 = vmatprep.mubr.f32.mxu0 %v4925_v7 }
  0x6c   : > { %3713 = vmatmul.mubr.msk.f32.gmra.mrb[28].mxu0 %vm269_vm3, %v5140_v48 }
  0x6d   : > { %721 = vmatprep.mubr.f32.mxu0 %v4925_v7 }
  0x70   : > { %3714 = vmatmul.mubr.msk.f32.gmra.mrb[30].mxu0 %vm269_vm3, %v5160_v55 }
  0x71   : > { %727 = vmatprep.mubr.f32.mxu0 %v4925_v7 }
  0x74   : > { %3715 = vmatmul.mubr.msk.f32.gmra.mrb[32].mxu0 %vm269_vm3, %v5173_v57 }
  0x75   : > { %733 = vmatprep.mubr.f32.mxu0 %v4925_v7 }
  0x78   : > { %3716 = vmatmul.mubr.msk.f32.gmra.mrb[34].mxu0 %vm269_vm3, %v5182_v58 }
  0x79   : > { %739 = vmatprep.mubr.f32.mxu0 %v4925_v7 }
  0x7c   : > { %3717 = vmatmul.mubr.msk.f32.gmra.mrb[36].mxu0 %vm269_vm3, %v5191_v59 }
  0x7d   : > { %745 = vmatprep.mubr.f32.mxu0 %v4925_v7 }
  0x80   : > { %3718 = vmatmul.mubr.msk.f32.gmra.mrb[38].mxu0 %vm269_vm3, %v5200_v60 }
  0x81   : > { %751 = vmatprep.mubr.f32.mxu0 %v4925_v7 }
  0x84   : > { %3719 = vmatmul.mubr.msk.f32.gmra.mrb[40].mxu0 %vm269_vm3, %v5209_v61 }
  0x85   : > { %757 = vmatprep.mubr.f32.mxu0 %v4925_v7 }
  0x88   : > { %3720 = vmatmul.mubr.msk.f32.gmra.mrb[42].mxu0 %vm269_vm3, %v5218_v62 }
  0x89   : > { %763 = vmatprep.mubr.f32.mxu0 %v4925_v7 }
  0x8c   : > { %3721 = vmatmul.mubr.msk.f32.gmra.mrb[44].mxu0 %vm269_vm3, %v5227_v63 }
  0x8d   : > { %769 = vmatprep.mubr.f32.mxu0 %v4925_v7 }
  0x90   : > { %3722 = vmatmul.mubr.msk.f32.gmra.mrb[46].mxu0 %vm269_vm3, %v5236_v0 }
  0x91   : > { %951 = vmatprep.mubr.f32.mxu0 %v4925_v7 }
  0x94   : > { %3733 = vmatmul.mubr.msk.f32.vlgmr.msra.gmra.mrb[0].mxu0 %vm269_vm3, %v5051_v28  ;;  %v2008_v28 = vand.u32 127, %v1882_v10 }
  0x95   : > { %4461 = vmatpush1.bf16.msra.mxu0 %v4460_v6  ;;  %957 = vmatprep.mubr.f32.mxu0 %v4925_v7  ;;  %v6874_v6 = vmov 0 }
  0x96   : > { %4464 = vmatprep.subr.msk.bf16.mxu0 %vm4991_vm2, %v4462_v8  ;;  %v5472_v31 = vmul.u32 2, %v2008_v28  ;;  %v5599_v8 = vadd.s32 112, %v5465_v27 }
  0x98   : > { %3734 = vmatmul.mubr.msk.f32.gmra.mrb[2].mxu0 %vm269_vm3, %v5065_v32  ;;  %vm2010_vm4 = vcmp.eq.s32.totalorder %v5465_v27, %v5472_v31  ;;  %vm2011_vm5 = vcmp.eq.s32.totalorder %v5470_v29, %v5472_v31  ;;  %vm2013_vm7 = vcmp.eq.s32.totalorder %v5478_v42, %v5472_v31  ;;  %vm2014_vm10 = vcmp.eq.s32.totalorder %v5482_v43, %v5472_v31 }
  0x99   : > { %963 = vmatprep.mubr.f32.mxu0 %v4925_v7  ;;  %4467 = vmatpush1.bf16.msk.msra.mxu0 %vm4991_vm2, %v4465_v14  ;;  %vm5495_vm8 = vmpackc.low %vm2011_vm5, %vm2010_vm4  ;;  %vm2015_vm11 = vcmp.eq.s32.totalorder %v5485_v44, %v5472_v31  ;;  %vm2016_vm13 = vcmp.eq.s32.totalorder %v5515_v49, %v5472_v31  ;;  %vm2017_vm14 = vcmp.eq.s32.totalorder %v5518_v50, %v5472_v31 }
  0x9a   : > { %4469 = vmatprep.subr.bf16.mxu0 %v4468_v15  ;;  %v6860_v45 = vsel %vm5495_vm8, 4294967295, %v6859_v45  ;;  %4480 = vmatpush1.bf16.msk.msra.mxu1 %vm5495_vm8, %v6778_v46  ;;  %vm5527_vm12 = vmpackc.low %vm2015_vm11, %vm2014_vm10  ;;  %vm2018_vm0 = vcmp.eq.s32.totalorder %v5536_v52, %v5472_v31  ;;  %vm2019_vm1 = vcmp.eq.s32.totalorder %v5539_v53, %v5472_v31  ;;  %vm2020_vm4 = vcmp.eq.s32.totalorder %v5557_v56, %v5472_v31 }
  0x9b   : > { %6861 = vst [vmem:[#allocation3_spill] sm:$0xff] %v6860_v45  ;;  %4481 = vmatprep.subr.bf16.mxu1 %v6776_v26  ;;  %v6866_v51 = vsel %vm5527_vm12, 4294967295, %v6865_v51  ;;  %vm5548_vm15 = vmpackc.low %vm2017_vm14, %vm2016_vm13  ;;  %vm2021_vm5 = vcmp.eq.s32.totalorder %v5560_v2, %v5472_v31  ;;  %vm2023_vm10 = vcmp.eq.s32.totalorder %v5581_v5, %v5472_v31  ;;  %vm2024_vm13 = vcmp.eq.s32.totalorder %v5599_v8, %v5472_v31 }
  0x9c   : > { %3735 = vmatmul.mubr.msk.f32.gmra.mrb[4].mxu0 %vm269_vm3, %v5079_v34  ;;  %6867 = vst [vmem:[#allocation5_spill] sm:$0xff] %v6866_v51  ;;  %v6869_v54 = vsel %vm5548_vm15, 4294967295, %v6868_v54  ;;  %vm2025_vm14 = vcmp.eq.s32.totalorder %v5602_v9, %v5472_v31  ;;  %v6884_v45 = vmov 0 }
  0x9d   : > { %969 = vmatprep.mubr.f32.mxu0 %v4925_v7  ;;  %6870 = vst [vmem:[#allocation6_spill] sm:$0xff] %v6869_v54 }
  0xa0   : > { %3736 = vmatmul.mubr.msk.f32.gmra.mrb[6].mxu0 %vm269_vm3, %v5091_v36 }
  0xa1   : > { %975 = vmatprep.mubr.f32.mxu0 %v4925_v7 }
  0xa4   : > { %3737 = vmatmul.mubr.msk.f32.gmra.mrb[8].mxu0 %vm269_vm3, %v5103_v38 }
  0xa5   : > { %981 = vmatprep.mubr.f32.mxu0 %v4925_v7 }
  0xa8   : > { %3738 = vmatmul.mubr.msk.f32.gmra.mrb[10].mxu0 %vm269_vm3, %v5115_v40 }
  0xa9   : > { %987 = vmatprep.mubr.f32.mxu0 %v4925_v7 }
  0xac   : > { %3739 = vmatmul.mubr.msk.f32.gmra.mrb[12].mxu0 %vm269_vm3, %v5054_v30 }
  0xad   : > { %993 = vmatprep.mubr.f32.mxu0 %v4925_v7 }
  0xb0   : > { %3740 = vmatmul.mubr.msk.f32.gmra.mrb[14].mxu0 %vm269_vm3, %v5070_v33 }
  0xb1   : > { %999 = vmatprep.mubr.f32.mxu0 %v4925_v7 }
  0xb4   : > { %3741 = vmatmul.mubr.msk.f32.gmra.mrb[16].mxu0 %vm269_vm3, %v5082_v35 }
  0xb5   : > { %1005 = vmatprep.mubr.f32.mxu0 %v4925_v7 }
  0xb8   : > { %3742 = vmatmul.mubr.msk.f32.gmra.mrb[18].mxu0 %vm269_vm3, %v5094_v37 }
  0xb9   : > { %1011 = vmatprep.mubr.f32.mxu0 %v4925_v7 }
  0xbc   : > { %3743 = vmatmul.mubr.msk.f32.gmra.mrb[20].mxu0 %vm269_vm3, %v5106_v39 }
  0xbd   : > { %1017 = vmatprep.mubr.f32.mxu0 %v4925_v7 }
  0xc0   : > { %3744 = vmatmul.mubr.msk.f32.gmra.mrb[22].mxu0 %vm269_vm3, %v5118_v41 }
  0xc1   : > { %1023 = vmatprep.mubr.f32.mxu0 %v4925_v7 }
  0xc4   : > { %3745 = vmatmul.mubr.msk.f32.gmra.mrb[24].mxu0 %vm269_vm3, %v5140_v48 }
  0xc5   : > { %1029 = vmatprep.mubr.f32.mxu0 %v4925_v7 }
  0xc8   : > { %3746 = vmatmul.mubr.msk.f32.gmra.mrb[26].mxu0 %vm269_vm3, %v5160_v55 }
  0xc9   : > { %1035 = vmatprep.mubr.f32.mxu0 %v4925_v7 }
  0xcc   : > { %3747 = vmatmul.mubr.msk.f32.gmra.mrb[28].mxu0 %vm269_vm3, %v5173_v57 }
  0xcd   : > { %1041 = vmatprep.mubr.f32.mxu0 %v4925_v7 }
  0xd0   : > { %3748 = vmatmul.mubr.msk.f32.gmra.mrb[30].mxu0 %vm269_vm3, %v5182_v58 }
  0xd1   : > { %1047 = vmatprep.mubr.f32.mxu0 %v4925_v7 }
  0xd4   : > { %3749 = vmatmul.mubr.msk.f32.gmra.mrb[32].mxu0 %vm269_vm3, %v5191_v59 }
  0xd5   : > { %1053 = vmatprep.mubr.f32.mxu0 %v4925_v7 }
  0xd8   : > { %3750 = vmatmul.mubr.msk.f32.gmra.mrb[34].mxu0 %vm269_vm3, %v5200_v60 }
  0xd9   : > { %1059 = vmatprep.mubr.f32.mxu0 %v4925_v7 }
  0xdc   : > { %3751 = vmatmul.mubr.msk.f32.gmra.mrb[36].mxu0 %vm269_vm3, %v5209_v61 }
  0xdd   : > { %1065 = vmatprep.mubr.f32.mxu0 %v4925_v7 }
  0xe0   : > { %3752 = vmatmul.mubr.msk.f32.gmra.mrb[38].mxu0 %vm269_vm3, %v5218_v62 }
  0xe1   : > { %1071 = vmatprep.mubr.f32.mxu0 %v4925_v7 }
  0xe4   : > { %3753 = vmatmul.mubr.msk.f32.gmra.mrb[40].mxu0 %vm269_vm3, %v5227_v63 }
  0xe5   : > { %1077 = vmatprep.mubr.f32.mxu0 %v4925_v7 }
  0xe8   : > { %3754 = vmatmul.mubr.msk.f32.gmra.mrb[42].mxu0 %vm269_vm3, %v5236_v0 }
  0xe9   : > { %1083 = vmatprep.mubr.f32.mxu0 %v4925_v7 }
  0xec   : > { %3755 = vmatmul.mubr.msk.f32.gmra.mrb[44].mxu0 %vm269_vm3, %v5257_v1 }
  0xed   : > { %1089 = vmatprep.mubr.f32.mxu0 %v4925_v7 }
  0xf0   : > { %3756 = vmatmul.mubr.msk.f32.gmra.mrb[46].mxu0 %vm269_vm3, %v5389_v16 }
  0xf1   : > { %1319 = vmatprep.mubr.f32.mxu0 %v4925_v7 }
  0xf4   : > { %3767 = vmatmul.mubr.msk.f32.vlgmr.msra.gmra.mrb[0].mxu0 %vm269_vm3, %v5065_v32  ;;  %v5475_v32 = vadd.s32 16, %v5465_v27 }
  0xf5   : > { %4471 = vmatpush1.bf16.msra.mxu0 %v4470_v21  ;;  %1325 = vmatprep.mubr.f32.mxu0 %v4925_v7 }
  0xf6   : > { %4474 = vmatprep.subr.msk.bf16.mxu0 %vm4991_vm2, %v4472_v22  ;;  %vm2012_vm6 = vcmp.eq.s32.totalorder %v5475_v32, %v5472_v31 }
  0xf7   : > { %vm5506_vm9 = vmpackc.low %vm2013_vm7, %vm2012_vm6  ;;  %vm2022_vm7 = vcmp.eq.s32.totalorder %v5578_v4, %v5472_v31 }
  0xf8   : > { %3768 = vmatmul.mubr.msk.f32.gmra.mrb[2].mxu0 %vm269_vm3, %v5079_v34  ;;  %v6863_v47 = vsel %vm5506_vm9, 4294967295, %v6862_v47  ;;  %4483 = vmatpush1.bf16.msk.msra.mxu1 %vm5506_vm9, %v6778_v46  ;;  %vm5590_vm6 = vmpackc.low %vm2021_vm5, %vm2020_vm4 }
  0xf9   : > { %1331 = vmatprep.mubr.f32.mxu0 %v4925_v7  ;;  %4477 = vmatpush1.bf16.msk.msra.mxu0 %vm4991_vm2, %v4475_v25  ;;  %6864 = vst [vmem:[#allocation4_spill] sm:$0xff] %v6863_v47  ;;  %vm5569_vm2 = vmpackc.low %vm2019_vm1, %vm2018_vm0  ;;  %v6875_v6 = vsel %vm5590_vm6, 4294967295, %v6874_v6 }
  0xfa   : > { %4484 = vmatprep.subr.bf16.mxu1 %v6776_v26  ;;  %v6872_v3 = vsel %vm5569_vm2, 4294967295, %v6871_v3  ;;  %6876 = vst [vmem:[#allocation8_spill] sm:$0xff] %v6875_v6  ;;  %vm5612_vm11 = vmpackc.low %vm2023_vm10, %vm2022_vm7  ;;  %v5794_v6 = vadd.s32 1, %v5472_v31  ;;  %vm6828_vm10 = vcmask 130048  }
  0xfb   : > { %6873 = vst [vmem:[#allocation7_spill] sm:$0xff] %v6872_v3  ;;  %v6878_v12 = vsel %vm5612_vm11, 4294967295, %v6877_v12  ;;  %vm5626_vm0 = vmpackc.low %vm2025_vm14, %vm2024_vm13 }
  0xfc   : > { %3769 = vmatmul.mubr.msk.f32.gmra.mrb[4].mxu0 %vm269_vm3, %v5091_v36  ;;  %4486 = vmatpush1.bf16.msk.msra.mxu1 %vm5527_vm12, %v6778_v46  ;;  %6879 = vst [vmem:[#allocation9_spill] sm:$0xff] %v6878_v12  ;;  %v6881_v13 = vsel %vm5626_vm0, 4294967295, %v6880_v13  ;;  %vm2066_vm7 = vcmp.eq.s32.totalorder %v5470_v29, %v5794_v6  ;;  %vm2067_vm14 = vcmp.eq.s32.totalorder %v5475_v32, %v5794_v6  ;;  %v6889_v32 = vmov 0.0|0.0  }
  0xfd   : > { %1337 = vmatprep.mubr.f32.mxu0 %v4925_v7  ;;  %4487 = vmatprep.subr.bf16.mxu1 %v6776_v26  ;;  %6882 = vst [vmem:[#allocation10_spill] sm:$0xff] %v6881_v13 }
 0x100   : > { %3770 = vmatmul.mubr.msk.f32.gmra.mrb[6].mxu0 %vm269_vm3, %v5103_v38  ;;  %4489 = vmatpush1.bf16.msk.msra.mxu1 %vm5548_vm15, %v6778_v46 }
 0x101   : > { %1343 = vmatprep.mubr.f32.mxu0 %v4925_v7  ;;  %4490 = vmatprep.subr.bf16.mxu1 %v6776_v26 }
 0x104   : > { %3771 = vmatmul.mubr.msk.f32.gmra.mrb[8].mxu0 %vm269_vm3, %v5115_v40  ;;  %4492 = vmatpush1.bf16.msk.msra.mxu1 %vm5569_vm2, %v6778_v46 }
 0x105   : > { %1349 = vmatprep.mubr.f32.mxu0 %v4925_v7  ;;  %4493 = vmatprep.subr.bf16.mxu1 %v6776_v26 }
 0x108   : > { %3772 = vmatmul.mubr.msk.f32.gmra.mrb[10].mxu0 %vm269_vm3, %v5054_v30  ;;  %4495 = vmatpush1.bf16.msk.msra.mxu1 %vm5590_vm6, %v6778_v46 }
 0x109   : > { %1355 = vmatprep.mubr.f32.mxu0 %v4925_v7  ;;  %4496 = vmatprep.subr.bf16.mxu1 %v6776_v26 }
 0x10c   : > { %3773 = vmatmul.mubr.msk.f32.gmra.mrb[12].mxu0 %vm269_vm3, %v5070_v33  ;;  %4498 = vmatpush1.bf16.msk.msra.mxu1 %vm5612_vm11, %v6778_v46 }
 0x10d   : > { %1361 = vmatprep.mubr.f32.mxu0 %v4925_v7  ;;  %4499 = vmatprep.subr.bf16.mxu1 %v6776_v26 }
 0x110   : > { %3774 = vmatmul.mubr.msk.f32.gmra.mrb[14].mxu0 %vm269_vm3, %v5082_v35  ;;  %4501 = vmatpush1.bf16.msk.msra.mxu1 %vm5626_vm0, %v6778_v46 }
 0x111   : > { %1367 = vmatprep.mubr.f32.mxu0 %v4925_v7  ;;  %4502 = vmatprep.subr.bf16.mxu1 %v6776_v26 }
 0x114   : > { %3775 = vmatmul.mubr.msk.f32.gmra.mrb[16].mxu0 %vm269_vm3, %v5094_v37 }
 0x115   : > { %1373 = vmatprep.mubr.f32.mxu0 %v4925_v7 }
 0x118   : > { %3776 = vmatmul.mubr.msk.f32.gmra.mrb[18].mxu0 %vm269_vm3, %v5106_v39 }
 0x119   : > { %1379 = vmatprep.mubr.f32.mxu0 %v4925_v7 }
 0x11c   : > { %3777 = vmatmul.mubr.msk.f32.gmra.mrb[20].mxu0 %vm269_vm3, %v5118_v41 }
 0x11d   : > { %1385 = vmatprep.mubr.f32.mxu0 %v4925_v7 }
 0x120   : > { %3778 = vmatmul.mubr.msk.f32.gmra.mrb[22].mxu0 %vm269_vm3, %v5140_v48 }
 0x121   : > { %1391 = vmatprep.mubr.f32.mxu0 %v4925_v7 }
 0x124   : > { %3779 = vmatmul.mubr.msk.f32.gmra.mrb[24].mxu0 %vm269_vm3, %v5160_v55 }
 0x125   : > { %1397 = vmatprep.mubr.f32.mxu0 %v4925_v7 }
 0x128   : > { %3780 = vmatmul.mubr.msk.f32.gmra.mrb[26].mxu0 %vm269_vm3, %v5173_v57 }
 0x129   : > { %1403 = vmatprep.mubr.f32.mxu0 %v4925_v7 }
 0x12c   : > { %3781 = vmatmul.mubr.msk.f32.gmra.mrb[28].mxu0 %vm269_vm3, %v5182_v58 }
 0x12d   : > { %1409 = vmatprep.mubr.f32.mxu0 %v4925_v7 }
 0x130   : > { %3782 = vmatmul.mubr.msk.f32.gmra.mrb[30].mxu0 %vm269_vm3, %v5191_v59 }
 0x131   : > { %1415 = vmatprep.mubr.f32.mxu0 %v4925_v7 }
 0x134   : > { %3783 = vmatmul.mubr.msk.f32.gmra.mrb[32].mxu0 %vm269_vm3, %v5200_v60 }
 0x135   : > { %1421 = vmatprep.mubr.f32.mxu0 %v4925_v7 }
 0x138   : > { %3784 = vmatmul.mubr.msk.f32.gmra.mrb[34].mxu0 %vm269_vm3, %v5209_v61 }
 0x139   : > { %1427 = vmatprep.mubr.f32.mxu0 %v4925_v7 }
 0x13c   : > { %3785 = vmatmul.mubr.msk.f32.gmra.mrb[36].mxu0 %vm269_vm3, %v5218_v62 }
 0x13d   : > { %1433 = vmatprep.mubr.f32.mxu0 %v4925_v7 }
 0x140   : > { %3786 = vmatmul.mubr.msk.f32.gmra.mrb[38].mxu0 %vm269_vm3, %v5227_v63 }
 0x141   : > { %1439 = vmatprep.mubr.f32.mxu0 %v4925_v7 }
 0x144   : > { %3787 = vmatmul.mubr.msk.f32.gmra.mrb[40].mxu0 %vm269_vm3, %v5236_v0 }
 0x145   : > { %1445 = vmatprep.mubr.f32.mxu0 %v4925_v7 }
 0x148   : > { %3788 = vmatmul.mubr.msk.f32.gmra.mrb[42].mxu0 %vm269_vm3, %v5257_v1 }
 0x149   : > { %1451 = vmatprep.mubr.f32.mxu0 %v4925_v7 }
 0x14c   : > { %3789 = vmatmul.mubr.msk.f32.gmra.mrb[44].mxu0 %vm269_vm3, %v5389_v16 }
 0x14d   : > { %1457 = vmatprep.mubr.f32.mxu0 %v4925_v7 }
 0x150   : > { %3790 = vmatmul.mubr.msk.f32.gmra.mrb[46].mxu0 %vm269_vm3, %v1167_v11 }
 0x151   : > { %1687 = vmatprep.mubr.f32.mxu0 %v4925_v7 }
 0x154   : > { %3801 = vmatmul.mubr.msk.f32.vlgmr.msra.gmra.mrb[0].mxu0 %vm269_vm3, %v5079_v34  ;;  %v1535_v34 = vld [vmem:[%s5028_s29 + $0xd8] sm:$0xff] }
 0x155   : > { %1693 = vmatprep.mubr.f32.mxu0 %v4925_v7 }
 0x158   : > { %3802 = vmatmul.mubr.msk.f32.gmra.mrb[2].mxu0 %vm269_vm3, %v5091_v36 }
 0x159   : > { %1699 = vmatprep.mubr.f32.mxu0 %v4925_v7 }
 0x15c   : > { %3803 = vmatmul.mubr.msk.f32.gmra.mrb[4].mxu0 %vm269_vm3, %v5103_v38 }
 0x15d   : > { %1705 = vmatprep.mubr.f32.mxu0 %v4925_v7 }
 0x160   : > { %3804 = vmatmul.mubr.msk.f32.gmra.mrb[6].mxu0 %vm269_vm3, %v5115_v40 }
 0x161   : > { %1711 = vmatprep.mubr.f32.mxu0 %v4925_v7 }
 0x164   : > { %3805 = vmatmul.mubr.msk.f32.gmra.mrb[8].mxu0 %vm269_vm3, %v5054_v30  ;;  %v5698_v30 = vadd.s32 128, %v5465_v27 }
 0x165   : > { %1717 = vmatprep.mubr.f32.mxu0 %v4925_v7 }
 0x166   : > { %vm2026_vm1 = vcmp.eq.s32.totalorder %v5698_v30, %v5472_v31 }
 0x168   : > { %3806 = vmatmul.mubr.msk.f32.gmra.mrb[10].mxu0 %vm269_vm3, %v5070_v33  ;;  %v5701_v33 = vadd.s32 136, %v5465_v27 }
 0x169   : > { %1723 = vmatprep.mubr.f32.mxu0 %v4925_v7 }
 0x16a   : > { %vm2027_vm4 = vcmp.eq.s32.totalorder %v5701_v33, %v5472_v31 }
 0x16b   : > { %vm4503_vm5 = vmpackc.low %vm2027_vm4, %vm2026_vm1  ;;  %vm2068_vm1 = vcmp.eq.s32.totalorder %v5478_v42, %v5794_v6  ;;  %v6890_v42 = vmov 0 }
 0x16c   : > { %3807 = vmatmul.mubr.msk.f32.gmra.mrb[12].mxu0 %vm269_vm3, %v5082_v35  ;;  %4504 = vmatpush1.bf16.msk.msra.mxu1 %vm4503_vm5, %v6778_v46  ;;  %v5716_v35 = vpop.f32.mrb[0].mxu1  ;;  %v1888_v46 = vsub.s32 1, %v5465_v27  ;;  %vm5836_vm4 = vmpackc.low %vm2068_vm1, %vm2067_vm14  ;;  %vm2069_vm5 = vcmp.eq.s32.totalorder %v5482_v43, %v5794_v6  ;;  %v6893_v43 = vmov 0  ;;  %vm2071_vm14 = vcmp.eq.s32.totalorder %v5515_v49, %v5794_v6 }
 0x16d   : > { %1729 = vmatprep.mubr.f32.mxu0 %v4925_v7  ;;  %4505 = vmatprep.subr.bf16.mxu1 %v6776_v26  ;;  %v5718_v36 = vpop.f32.mrb[1].mxu1  ;;  %v1880_v26 = vld [vmem:[%s6772_s2] sm:$0x3]  ;;  %v6891_v42 = vsel %vm5836_vm4, 4294967295, %v6890_v42  ;;  %vm2072_vm1 = vcmp.eq.s32.totalorder %v5518_v50, %v5794_v6  ;;  %v6896_v49 = vmov 0 }
 0x16e   : > { %v5791_v12 = vrot.slane %v1880_v26, %v1888_v46  ;;  %6892 = vst [vmem:[#allocation14_spill] sm:$0xff] %v6891_v42 }
 0x170   : > { %3808 = vmatmul.mubr.msk.f32.gmra.mrb[14].mxu0 %vm269_vm3, %v5094_v37  ;;  %v5720_v37 = vpop.f32.mrb[2].mxu1 }
 0x171   : > { %1735 = vmatprep.mubr.f32.mxu0 %v4925_v7  ;;  %v5722_v38 = vpop.f32.mrb[3].mxu1 }
 0x174   : > { %3809 = vmatmul.mubr.msk.f32.gmra.mrb[16].mxu0 %vm269_vm3, %v5106_v39  ;;  %v5724_v39 = vpop.f32.mrb[4].mxu1 }
 0x175   : > { %1741 = vmatprep.mubr.f32.mxu0 %v4925_v7  ;;  %v5726_v40 = vpop.f32.mrb[5].mxu1 }
 0x178   : > { %3810 = vmatmul.mubr.msk.f32.gmra.mrb[18].mxu0 %vm269_vm3, %v5118_v41  ;;  %v5728_v41 = vpop.f32.mrb[6].mxu1 }
 0x179   : > { %1747 = vmatprep.mubr.f32.mxu0 %v4925_v7 }
 0x17c   : > { %3811 = vmatmul.mubr.msk.f32.gmra.mrb[20].mxu0 %vm269_vm3, %v5140_v48  ;;  %v5730_v48 = vpop.f32.mrb[7].mxu1 }
 0x17d   : > { %1753 = vmatprep.mubr.f32.mxu0 %v4925_v7 }
 0x180   : > { %3812 = vmatmul.mubr.msk.f32.gmra.mrb[22].mxu0 %vm269_vm3, %v5160_v55 }
 0x181   : > { %1759 = vmatprep.mubr.f32.mxu0 %v4925_v7 }
 0x184   : > { %3813 = vmatmul.mubr.msk.f32.gmra.mrb[24].mxu0 %vm269_vm3, %v5173_v57 }
 0x185   : > { %1765 = vmatprep.mubr.f32.mxu0 %v4925_v7 }
 0x188   : > { %3814 = vmatmul.mubr.msk.f32.gmra.mrb[26].mxu0 %vm269_vm3, %v5182_v58 }
 0x189   : > { %1771 = vmatprep.mubr.f32.mxu0 %v4925_v7 }
 0x18c   : > { %3815 = vmatmul.mubr.msk.f32.gmra.mrb[28].mxu0 %vm269_vm3, %v5191_v59 }
 0x18d   : > { %1777 = vmatprep.mubr.f32.mxu0 %v4925_v7 }
 0x190   : > { %3816 = vmatmul.mubr.msk.f32.gmra.mrb[30].mxu0 %vm269_vm3, %v5200_v60 }
 0x191   : > { %1783 = vmatprep.mubr.f32.mxu0 %v4925_v7 }
 0x194   : > { %3817 = vmatmul.mubr.msk.f32.gmra.mrb[32].mxu0 %vm269_vm3, %v5209_v61 }
 0x195   : > { %1789 = vmatprep.mubr.f32.mxu0 %v4925_v7 }
 0x198   : > { %3818 = vmatmul.mubr.msk.f32.gmra.mrb[34].mxu0 %vm269_vm3, %v5218_v62 }
 0x199   : > { %1795 = vmatprep.mubr.f32.mxu0 %v4925_v7 }
 0x19c   : > { %3819 = vmatmul.mubr.msk.f32.gmra.mrb[36].mxu0 %vm269_vm3, %v5227_v63 }
 0x19d   : > { %1801 = vmatprep.mubr.f32.mxu0 %v4925_v7 }
 0x1a0   : > { %3820 = vmatmul.mubr.msk.f32.gmra.mrb[38].mxu0 %vm269_vm3, %v5236_v0 }
 0x1a1   : > { %1807 = vmatprep.mubr.f32.mxu0 %v4925_v7 }
 0x1a4   : > { %3821 = vmatmul.mubr.msk.f32.gmra.mrb[40].mxu0 %vm269_vm3, %v5257_v1 }
 0x1a5   : > { %1813 = vmatprep.mubr.f32.mxu0 %v4925_v7 }
 0x1a8   : > { %3822 = vmatmul.mubr.msk.f32.gmra.mrb[42].mxu0 %vm269_vm3, %v5389_v16 }
 0x1a9   : > { %1819 = vmatprep.mubr.f32.mxu0 %v4925_v7 }
 0x1ac   : > { %3823 = vmatmul.mubr.msk.f32.gmra.mrb[44].mxu0 %vm269_vm3, %v1167_v11 }
 0x1ad   : > { %1825 = vmatprep.mubr.f32.mxu0 %v4925_v7  ;;  %v5732_v7 = vpop.f32.mrb[8].mxu1 }
 0x1ae   : > { %v5734_v55 = vpop.f32.mrb[9].mxu1 }
 0x1af   : > { %v5736_v57 = vpop.f32.mrb[10].mxu1 }
 0x1b0   : > { %3824 = vmatmul.mubr.msk.f32.gmra.mrb[46].mxu0 %vm269_vm3, %v1535_v34  ;;  %v5738_v58 = vpop.f32.mrb[11].mxu1  ;;  %v1884_v34 = vsub.s32 0, %v5465_v27  ;;  %vm2065_vm3 = vcmp.eq.s32.totalorder %v5465_v27, %v5794_v6 }
 0x1b1   : > { %v5740_v59 = vpop.f32.mrb[12].mxu1  ;;  %vm5811_vm13 = vmpackc.low %vm2066_vm7, %vm2065_vm3  ;;  %vm2070_vm3 = vcmp.eq.s32.totalorder %v5485_v44, %v5794_v6 }
 0x1b2   : > { %v5742_v60 = vpop.f32.mrb[13].mxu1  ;;  %v5789_v13 = vrot.slane %v1880_v26, %v1884_v34  ;;  %v6885_v45 = vsel %vm5811_vm13, 4294967295, %v6884_v45  ;;  %vm5861_vm7 = vmpackc.low %vm2070_vm3, %vm2069_vm5  ;;  %vm2073_vm3 = vcmp.eq.s32.totalorder %v5536_v52, %v5794_v6  ;;  %v6899_v52 = vmov 0 }
 0x1b3   : > { %v5744_v61 = vpop.f32.mrb[14].mxu1  ;;  %6886 = vst [vmem:[#allocation12_spill] sm:$0xff] %v6885_v45  ;;  %v6894_v43 = vsel %vm5861_vm7, 4294967295, %v6893_v43  ;;  %vm5886_vm5 = vmpackc.low %vm2072_vm1, %vm2071_vm14  ;;  %vm2075_vm1 = vcmp.eq.s32.totalorder %v5557_v56, %v5794_v6  ;;  %v6902_v56 = vmov 0 }
 0x1b4   : > { %v5746_v62 = vpop.f32.mrb[15].mxu1  ;;  %6895 = vst [vmem:[#allocation15_spill] sm:$0xff] %v6894_v43  ;;  %v6897_v49 = vsel %vm5886_vm5, 4294967295, %v6896_v49 }
 0x1b5   : > { %v5748_v63 = vpop.f32.mrb[16].mxu1  ;;  %6898 = vst [vmem:[#allocation16_spill] sm:$0xff] %v6897_v49 }
 0x1b6   : > { %v5750_v0 = vpop.f32.mrb[17].mxu1 }
 0x1b7   : > { %v5752_v1 = vpop.f32.mrb[18].mxu1 }
 0x1b8   : > { %v5754_v14 = vpop.f32.mrb[19].mxu1 }
 0x1b9   : > { %v5756_v15 = vpop.f32.mrb[20].mxu1 }
 0x1ba   : > { %v5758_v16 = vpop.f32.mrb[21].mxu1 }
 0x1bb   : > { %v5760_v17 = vpop.f32.mrb[22].mxu1 }
 0x1bc   : > { %v5762_v18 = vpop.f32.mrb[23].mxu1 }
 0x1bd   : > { %v5764_v19 = vpop.f32.mrb[24].mxu1 }
 0x1be   : > { %v5766_v20 = vpop.f32.mrb[25].mxu1 }
 0x1bf   : > { %v5768_v21 = vpop.f32.mrb[26].mxu1 }
 0x1c0   : > { %v5770_v22 = vpop.f32.mrb[27].mxu1 }
 0x1c1   : > { %v5772_v23 = vpop.f32.mrb[28].mxu1 }
 0x1c2   : > { %v5774_v24 = vpop.f32.mrb[29].mxu1 }
 0x1c3   : > { %v5776_v25 = vpop.f32.mrb[30].mxu1 }
 0x1c4   : > { %v5778_v10 = vpop.f32.mrb[31].mxu1 }
 0x1c5   : > { %v5780_v28 = vpop.f32.mrb[32].mxu1 }
 0x1c6   : > { %v5782_v11 = vpop.f32.mrb[33].mxu1 }
 0x227   : > { %v1689_v3 = vpop.f32.mrb[0].mxu0 }
 0x228   : > { %v5797_v54 = vadd.f32 %v5789_v13, %v1689_v3  ;;  %v1691_v51 = vpop.f32.mrb[1].mxu0 }
 0x229   : > { %v5800_v47 = vadd.f32 %v5791_v12, %v1691_v51 }
 0x22a   : > { %v6798_v31 = vmax.f32 %v5797_v54, 0.0 }
 0x22b   : > { %6883 = vst [vmem:[#allocation11_spill] sm:$0xff] %v5800_v47  ;;  %v6796_v26 = vmax.f32 %v5800_v47, 0.0  ;;  %v1695_v46 = vpop.f32.mrb[2].mxu0 }
 0x22c   : > { %v5809_v34 = vadd.f32 %v5789_v13, %v1695_v46  ;;  %v1697_v3 = vpop.f32.mrb[3].mxu0  ;;  %v6888_v46 = vmov 1.0|1.0  }
 0x22d   : > { %v5816_v51 = vadd.f32 %v5791_v12, %v1697_v3  ;;  %3879 = vmatprep.mubr.msk.f32.mxu1 %vm6828_vm10, %v6796_v26 }
 0x22e   : > { %2257 = vmatmul.mubr.f32.vlgmr.msra.gmra.mrb[34].mxu1 %v6798_v31  ;;  %v6803_v3 = vmax.f32 %v5809_v34, 0.0 }
 0x22f   : > { %6887 = vst [vmem:[#allocation13_spill] sm:$0xff] %v5816_v51  ;;  %v6801_v27 = vmax.f32 %v5816_v51, 0.0  ;;  %v1701_v29 = vpop.f32.mrb[4].mxu0  ;;  %4507 = vmatpush1.bf16.msk.msra.mxu1 %vm5811_vm13, %v6888_v46 }
 0x230   : > { %v5833_v26 = vadd.f32 %v5789_v13, %v1701_v29  ;;  %v1703_v47 = vpop.f32.mrb[5].mxu0  ;;  %4508 = vmatprep.subr.bf16.mxu1 %v6889_v32 }
 0x231   : > { %v5841_v31 = vadd.f32 %v5791_v12, %v1703_v47  ;;  %3880 = vmatprep.mubr.msk.f32.mxu1 %vm6828_vm10, %v6801_v27 }
 0x232   : > { %2262 = vmatmul.mubr.f32.gmra.mrb[36].mxu1 %v6803_v3  ;;  %v6809_v47 = vmax.f32 %v5833_v26, 0.0 }
 0x233   : > { %v6804_v29 = vmax.f32 %v5841_v31, 0.0  ;;  %v1707_v45 = vpop.f32.mrb[6].mxu0  ;;  %4510 = vmatpush1.bf16.msk.msra.mxu1 %vm5836_vm4, %v6888_v46 }
 0x234   : > { %v5858_v27 = vadd.f32 %v5789_v13, %v1707_v45  ;;  %v1709_v51 = vpop.f32.mrb[7].mxu0  ;;  %4511 = vmatprep.subr.bf16.mxu1 %v6889_v32 }
 0x235   : > { %v5866_v44 = vadd.f32 %v5791_v12, %v1709_v51  ;;  %3881 = vmatprep.mubr.msk.f32.mxu1 %vm6828_vm10, %v6804_v29 }
 0x236   : > { %2267 = vmatmul.mubr.f32.gmra.mrb[38].mxu1 %v6809_v47  ;;  %v6815_v51 = vmax.f32 %v5858_v27, 0.0 }
 0x237   : > { %v6810_v45 = vmax.f32 %v5866_v44, 0.0  ;;  %v1713_v3 = vpop.f32.mrb[8].mxu0  ;;  %4513 = vmatpush1.bf16.msk.msra.mxu1 %vm5861_vm7, %v6888_v46  ;;  %vm2074_vm7 = vcmp.eq.s32.totalorder %v5539_v53, %v5794_v6 }
 0x238   : > { %v5883_v29 = vadd.f32 %v5789_v13, %v1713_v3  ;;  %v1715_v42 = vpop.f32.mrb[9].mxu0  ;;  %4514 = vmatprep.subr.bf16.mxu1 %v6889_v32  ;;  %vm5911_vm14 = vmpackc.low %vm2074_vm7, %vm2073_vm3  ;;  %vm2077_vm3 = vcmp.eq.s32.totalorder %v5578_v4, %v5794_v6 }
 0x239   : > { %v5891_v50 = vadd.f32 %v5791_v12, %v1715_v42  ;;  %3882 = vmatprep.mubr.msk.f32.mxu1 %vm6828_vm10, %v6810_v45  ;;  %v6900_v52 = vsel %vm5911_vm14, 4294967295, %v6899_v52 }
 0x23a   : > { %2272 = vmatmul.mubr.f32.gmra.mrb[40].mxu1 %v6815_v51  ;;  %v6821_v42 = vmax.f32 %v5883_v29, 0.0  ;;  %6901 = vst [vmem:[#allocation17_spill] sm:$0xff] %v6900_v52 }
 0x23b   : > { %v6816_v3 = vmax.f32 %v5891_v50, 0.0  ;;  %v1719_v47 = vpop.f32.mrb[10].mxu0  ;;  %4516 = vmatpush1.bf16.msk.msra.mxu1 %vm5886_vm5, %v6888_v46  ;;  %vm2076_vm5 = vcmp.eq.s32.totalorder %v5560_v2, %v5794_v6 }
 0x23c   : > { %v5908_v45 = vadd.f32 %v5789_v13, %v1719_v47  ;;  %v1721_v43 = vpop.f32.mrb[11].mxu0  ;;  %4517 = vmatprep.subr.bf16.mxu1 %v6889_v32  ;;  %vm5936_vm7 = vmpackc.low %vm2076_vm5, %vm2075_vm1  ;;  %vm2079_vm1 = vcmp.eq.s32.totalorder %v5599_v8, %v5794_v6 }
 0x23d   : > { %v5916_v53 = vadd.f32 %v5791_v12, %v1721_v43  ;;  %3883 = vmatprep.mubr.msk.f32.mxu1 %vm6828_vm10, %v6816_v3  ;;  %v6903_v56 = vsel %vm5936_vm7, 4294967295, %v6902_v56 }
 0x23e   : > { %2277 = vmatmul.mubr.f32.gmra.mrb[42].mxu1 %v6821_v42  ;;  %v1950_v43 = vmax.f32 %v5908_v45, 0.0 }
 0x23f   : > { %v6822_v47 = vmax.f32 %v5916_v53, 0.0  ;;  %v1725_v51 = vpop.f32.mrb[12].mxu0  ;;  %4519 = vmatpush1.bf16.msk.msra.mxu1 %vm5911_vm14, %v6888_v46  ;;  %vm2078_vm14 = vcmp.eq.s32.totalorder %v5581_v5, %v5794_v6 }
 0x240   : > { %v5933_v3 = vadd.f32 %v5789_v13, %v1725_v51  ;;  %v1727_v49 = vpop.f32.mrb[13].mxu0  ;;  %4520 = vmatprep.subr.bf16.mxu1 %v6889_v32  ;;  %vm5959_vm5 = vmpackc.low %vm2078_vm14, %vm2077_vm3  ;;  %vm2081_vm3 = vcmp.eq.s32.totalorder %v5698_v30, %v5794_v6 }
 0x241   : > { %v5941_v2 = vadd.f32 %v5791_v12, %v1727_v49  ;;  %3884 = vmatprep.mubr.msk.f32.mxu1 %vm6828_vm10, %v6822_v47 }
 0x242   : > { %2282 = vmatmul.mubr.f32.gmra.mrb[44].mxu1 %v1950_v43  ;;  %v6827_v49 = vmax.f32 %v5933_v3, 0.0 }
 0x243   : > { %v6829_v51 = vmax.f32 %v5941_v2, 0.0  ;;  %v1731_v42 = vpop.f32.mrb[14].mxu0  ;;  %4522 = vmatpush1.bf16.msk.msra.mxu1 %vm5936_vm7, %v6888_v46  ;;  %vm2080_vm7 = vcmp.eq.s32.totalorder %v5602_v9, %v5794_v6 }
 0x244   : > { %v4680_v47 = vadd.f32 %v1731_v42, %v5716_v35  ;;  %v1733_v52 = vpop.f32.mrb[15].mxu0  ;;  %4523 = vmatprep.subr.bf16.mxu1 %v6889_v32  ;;  %vm5984_vm14 = vmpackc.low %vm2080_vm7, %vm2079_vm1  ;;  %vm6908_vm7 = vcmask 130048  }
 0x245   : > { %v4681_v5 = vadd.f32 %v1733_v52, %v5718_v36  ;;  %3885 = vmatprep.mubr.msk.f32.mxu1 %vm6828_vm10, %v6829_v51  ;;  %vm2082_vm10 = vcmp.eq.s32.totalorder %v5701_v33, %v5794_v6 }
 0x246   : > { %v5972_v35 = vadd.f32 %v4680_v47, %v5789_v13  ;;  %2287 = vmatmul.mubr.f32.gmra.mrb[46].mxu1 %v6827_v49  ;;  %vm4530_vm1 = vmpackc.low %vm2082_vm10, %vm2081_vm3 }
 0x247   : > { %v5977_v42 = vadd.f32 %v4681_v5, %v5791_v12  ;;  %v1737_v36 = vpop.f32.mrb[16].mxu0  ;;  %4525 = vmatpush1.bf16.msk.msra.mxu1 %vm5959_vm5, %v6888_v46  ;;  %vm6909_vm10 = vmmov %vm6908_vm7 }
 0x248   : > { %v4682_v52 = vadd.f32 %v1737_v36, %v5720_v37  ;;  %v1739_v8 = vpop.f32.mrb[17].mxu0  ;;  %4526 = vmatprep.subr.bf16.mxu1 %v6889_v32  ;;  %v6830_v5 = vmax.f32 %v5972_v35, 0.0  ;;  %vm6910_vm3 = vmmov %vm6908_vm7 }
 0x249   : > { %v6833_v47 = vmax.f32 %v5977_v42, 0.0  ;;  %v4683_v49 = vadd.f32 %v1739_v8, %v5722_v38 }
 0x24a   : > { %v5996_v37 = vadd.f32 %v4682_v52, %v5789_v13 }
 0x24b   : > { %v5999_v36 = vadd.f32 %v4683_v49, %v5791_v12  ;;  %v1743_v51 = vpop.f32.mrb[18].mxu0  ;;  %3886 = vmatprep.mubr.msk.f32.mxu1 %vm6908_vm7, %v6833_v47  ;;  %4528 = vmatpush1.bf16.msk.msra.mxu1 %vm5984_vm14, %v6888_v46 }
 0x24c   : > { %v4684_v30 = vadd.f32 %v1743_v51, %v5724_v39  ;;  %v1745_v6 = vpop.f32.mrb[19].mxu0  ;;  %2292 = vmatmul.mubr.f32.gmra.mrb[48].mxu1 %v6830_v5  ;;  %4529 = vmatprep.subr.bf16.mxu1 %v6889_v32  ;;  %v6832_v49 = vmax.f32 %v5996_v37, 0.0  ;;  %v6946_v45 = vmax.f32 %v5996_v37, 0.0 }
 0x24d   : > { %v6831_v33 = vmax.f32 %v5999_v36, 0.0  ;;  %v4685_v38 = vadd.f32 %v1745_v6, %v5726_v40 }
 0x24e   : > { %v6015_v52 = vadd.f32 %v4684_v30, %v5789_v13 }
 0x24f   : > { %v6018_v8 = vadd.f32 %v4685_v38, %v5791_v12  ;;  %v1749_v39 = vpop.f32.mrb[20].mxu0  ;;  %3887 = vmatprep.mubr.msk.f32.mxu1 %vm6908_vm7, %v6831_v33  ;;  %4531 = vmatpush1.bf16.msk.msra.mxu1 %vm4530_vm1, %v6888_v46  ;;  %vm6911_vm1 = vmmov %vm6910_vm3 }
 0x250   : > { %v4686_v32 = vadd.f32 %v1749_v39, %v5728_v41  ;;  %v1751_v51 = vpop.f32.mrb[21].mxu0  ;;  %2297 = vmatmul.mubr.f32.gmra.mrb[50].mxu1 %v6832_v49  ;;  %v6834_v6 = vmax.f32 %v6015_v52, 0.0  ;;  %vm6912_vm7 = vmmov %vm6911_vm1 }
 0x251   : > { %v6835_v40 = vmax.f32 %v6018_v8, 0.0  ;;  %v4687_v30 = vadd.f32 %v1751_v51, %v5730_v48 }
 0x252   : > { %v6031_v38 = vadd.f32 %v4686_v32, %v5789_v13 }
 0x253   : > { %v6034_v5 = vadd.f32 %v4687_v30, %v5791_v12  ;;  %v1755_v33 = vpop.f32.mrb[22].mxu0  ;;  %3888 = vmatprep.mubr.msk.f32.mxu1 %vm6909_vm10, %v6835_v40  ;;  %vm6913_vm10 = vmmov %vm6911_vm1 }
 0x254   : > { %v4688_v41 = vadd.f32 %v1755_v33, %v5732_v7  ;;  %v1757_v39 = vpop.f32.mrb[23].mxu0  ;;  %2302 = vmatmul.mubr.f32.gmra.mrb[52].mxu1 %v6834_v6  ;;  %v6836_v32 = vmax.f32 %v6031_v38, 0.0 }
 0x255   : > { %v6837_v48 = vmax.f32 %v6034_v5, 0.0  ;;  %v4689_v51 = vadd.f32 %v1757_v39, %v5734_v55 }
 0x256   : > { %v6046_v30 = vadd.f32 %v4688_v41, %v5789_v13 }
 0x257   : > { %v6049_v49 = vadd.f32 %v4689_v51, %v5791_v12  ;;  %v1761_v47 = vpop.f32.mrb[24].mxu0  ;;  %3889 = vmatprep.mubr.msk.f32.mxu1 %vm6910_vm3, %v6837_v48  ;;  %vm6914_vm3 = vmmov %vm6911_vm1 }
 0x258   : > { %v4690_v7 = vadd.f32 %v1761_v47, %v5736_v57  ;;  %v1763_v33 = vpop.f32.mrb[25].mxu0  ;;  %2307 = vmatmul.mubr.f32.gmra.mrb[54].mxu1 %v6836_v32  ;;  %v6838_v41 = vmax.f32 %v6046_v30, 0.0 }
 0x259   : > { %v6839_v55 = vmax.f32 %v6049_v49, 0.0  ;;  %v4691_v39 = vadd.f32 %v1763_v33, %v5738_v58 }
 0x25a   : > { %v6061_v51 = vadd.f32 %v4690_v7, %v5789_v13 }
 0x25b   : > { %v6064_v6 = vadd.f32 %v4691_v39, %v5791_v12  ;;  %v1767_v40 = vpop.f32.mrb[26].mxu0  ;;  %3890 = vmatprep.mubr.msk.f32.mxu1 %vm6911_vm1, %v6839_v55 }
 0x25c   : > { %v4692_v57 = vadd.f32 %v1767_v40, %v5740_v59  ;;  %v1769_v47 = vpop.f32.mrb[27].mxu0  ;;  %2312 = vmatmul.mubr.f32.gmra.mrb[56].mxu1 %v6838_v41  ;;  %v6840_v7 = vmax.f32 %v6061_v51, 0.0 }
 0x25d   : > { %v6841_v58 = vmax.f32 %v6064_v6, 0.0  ;;  %v4693_v33 = vadd.f32 %v1769_v47, %v5742_v60  ;;  %v6955_v37 = vmax.f32 %v6064_v6, 0.0  ;;  %v3946_v6 = vld [vmem:[%s6773_s3 + $0x50] sm:$0xff] }
 0x25e   : > { %v6076_v39 = vadd.f32 %v4692_v57, %v5789_v13 }
 0x25f   : > { %v6079_v32 = vadd.f32 %v4693_v33, %v5791_v12  ;;  %v1773_v48 = vpop.f32.mrb[28].mxu0  ;;  %3891 = vmatprep.mubr.msk.f32.mxu1 %vm6912_vm7, %v6841_v58  ;;  %vm6915_vm7 = vmmov %vm6911_vm1 }
 0x260   : > { %v4694_v59 = vadd.f32 %v1773_v48, %v5744_v61  ;;  %v1775_v40 = vpop.f32.mrb[29].mxu0  ;;  %2317 = vmatmul.mubr.f32.gmra.mrb[58].mxu1 %v6840_v7  ;;  %v6842_v57 = vmax.f32 %v6076_v39, 0.0 }
 0x261   : > { %v6843_v60 = vmax.f32 %v6079_v32, 0.0  ;;  %v4695_v47 = vadd.f32 %v1775_v40, %v5746_v62 }
 0x262   : > { %v6091_v33 = vadd.f32 %v4694_v59, %v5789_v13 }
 0x263   : > { %v6094_v41 = vadd.f32 %v4695_v47, %v5791_v12  ;;  %v1779_v55 = vpop.f32.mrb[30].mxu0  ;;  %3892 = vmatprep.mubr.msk.f32.mxu1 %vm6913_vm10, %v6843_v60  ;;  %vm6916_vm10 = vmmov %vm6911_vm1 }
 0x264   : > { %v4696_v61 = vadd.f32 %v1779_v55, %v5748_v63  ;;  %v1781_v48 = vpop.f32.mrb[31].mxu0  ;;  %2322 = vmatmul.mubr.f32.gmra.mrb[60].mxu1 %v6842_v57  ;;  %v6844_v59 = vmax.f32 %v6091_v33, 0.0 }
 0x265   : > { %v6845_v62 = vmax.f32 %v6094_v41, 0.0  ;;  %v4697_v40 = vadd.f32 %v1781_v48, %v5750_v0 }
 0x266   : > { %v6106_v47 = vadd.f32 %v4696_v61, %v5789_v13 }
 0x267   : > { %v6109_v7 = vadd.f32 %v4697_v40, %v5791_v12  ;;  %v1785_v58 = vpop.f32.mrb[32].mxu0  ;;  %3893 = vmatprep.mubr.msk.f32.mxu1 %vm6914_vm3, %v6845_v62  ;;  %vm6917_vm3 = vmmov %vm6911_vm1 }
 0x268   : > { %v4698_v63 = vadd.f32 %v1785_v58, %v5752_v1  ;;  %v1787_v55 = vpop.f32.mrb[33].mxu0  ;;  %2327 = vmatmul.mubr.f32.gmra.mrb[62].mxu1 %v6844_v59  ;;  %v6846_v61 = vmax.f32 %v6106_v47, 0.0 }
 0x269   : > { %v6847_v0 = vmax.f32 %v6109_v7, 0.0  ;;  %v4699_v48 = vadd.f32 %v1787_v55, %v5754_v14 }
 0x26a   : > { %v6121_v40 = vadd.f32 %v4698_v63, %v5789_v13 }
 0x26b   : > { %v6124_v57 = vadd.f32 %v4699_v48, %v5791_v12  ;;  %v1791_v60 = vpop.f32.mrb[34].mxu0  ;;  %3894 = vmatprep.mubr.msk.f32.mxu1 %vm6911_vm1, %v6847_v0 }
 0x26c   : > { %v4700_v1 = vadd.f32 %v1791_v60, %v5756_v15  ;;  %v1793_v58 = vpop.f32.mrb[35].mxu0  ;;  %2332 = vmatmul.mubr.f32.gmra.mrb[64].mxu1 %v6846_v61  ;;  %v6848_v63 = vmax.f32 %v6121_v40, 0.0 }
 0x26d   : > { %v6849_v14 = vmax.f32 %v6124_v57, 0.0  ;;  %v4701_v55 = vadd.f32 %v1793_v58, %v5758_v16 }
 0x26e   : > { %v6136_v48 = vadd.f32 %v4700_v1, %v5789_v13 }
 0x26f   : > { %v6139_v59 = vadd.f32 %v4701_v55, %v5791_v12  ;;  %v1797_v62 = vpop.f32.mrb[36].mxu0  ;;  %3895 = vmatprep.mubr.msk.f32.mxu1 %vm6915_vm7, %v6849_v14  ;;  %vm6918_vm7 = vmmov %vm6911_vm1 }
 0x270   : > { %v4702_v15 = vadd.f32 %v1797_v62, %v5760_v17  ;;  %v1799_v60 = vpop.f32.mrb[37].mxu0  ;;  %2337 = vmatmul.mubr.f32.gmra.mrb[66].mxu1 %v6848_v63  ;;  %v6850_v1 = vmax.f32 %v6136_v48, 0.0 }
 0x271   : > { %v6851_v16 = vmax.f32 %v6139_v59, 0.0  ;;  %v4703_v58 = vadd.f32 %v1799_v60, %v5762_v18 }
 0x272   : > { %v6151_v55 = vadd.f32 %v4702_v15, %v5789_v13 }
 0x273   : > { %v6154_v61 = vadd.f32 %v4703_v58, %v5791_v12  ;;  %v1803_v0 = vpop.f32.mrb[38].mxu0  ;;  %3896 = vmatprep.mubr.msk.f32.mxu1 %vm6916_vm10, %v6851_v16  ;;  %vm6919_vm10 = vmmov %vm6911_vm1 }
 0x274   : > { %v4704_v17 = vadd.f32 %v1803_v0, %v5764_v19  ;;  %v1805_v62 = vpop.f32.mrb[39].mxu0  ;;  %2342 = vmatmul.mubr.f32.gmra.mrb[68].mxu1 %v6850_v1  ;;  %v6852_v15 = vmax.f32 %v6151_v55, 0.0 }
 0x275   : > { %v6853_v18 = vmax.f32 %v6154_v61, 0.0  ;;  %v4705_v60 = vadd.f32 %v1805_v62, %v5766_v20 }
 0x276   : > { %v6166_v58 = vadd.f32 %v4704_v17, %v5789_v13 }
 0x277   : > { %v6169_v63 = vadd.f32 %v4705_v60, %v5791_v12  ;;  %v1809_v14 = vpop.f32.mrb[40].mxu0  ;;  %3897 = vmatprep.mubr.msk.f32.mxu1 %vm6917_vm3, %v6853_v18  ;;  %vm6920_vm3 = vmmov %vm6911_vm1 }
 0x278   : > { %v4706_v19 = vadd.f32 %v1809_v14, %v5768_v21  ;;  %v1811_v0 = vpop.f32.mrb[41].mxu0  ;;  %2347 = vmatmul.mubr.f32.gmra.mrb[70].mxu1 %v6852_v15  ;;  %v6854_v17 = vmax.f32 %v6166_v58, 0.0 }
 0x279   : > { %v6855_v20 = vmax.f32 %v6169_v63, 0.0  ;;  %v4707_v62 = vadd.f32 %v1811_v0, %v5770_v22 }
 0x27a   : > { %v6181_v60 = vadd.f32 %v4706_v19, %v5789_v13 }
 0x27b   : > { %v6184_v1 = vadd.f32 %v4707_v62, %v5791_v12  ;;  %v1815_v16 = vpop.f32.mrb[42].mxu0  ;;  %3898 = vmatprep.mubr.msk.f32.mxu1 %vm6911_vm1, %v6855_v20 }
 0x27c   : > { %v4708_v21 = vadd.f32 %v1815_v16, %v5772_v23  ;;  %v1817_v14 = vpop.f32.mrb[43].mxu0  ;;  %2352 = vmatmul.mubr.f32.gmra.mrb[72].mxu1 %v6854_v17  ;;  %v6856_v19 = vmax.f32 %v6181_v60, 0.0 }
 0x27d   : > { %v1981_v22 = vmax.f32 %v6184_v1, 0.0  ;;  %v4709_v0 = vadd.f32 %v1817_v14, %v5774_v24  ;;  %v3949_v1 = vld [vmem:[%s6773_s3 + $0x68] sm:$0xff] }
 0x27e   : > { %v6196_v62 = vadd.f32 %v4708_v21, %v5789_v13 }
 0x27f   : > { %v6199_v15 = vadd.f32 %v4709_v0, %v5791_v12  ;;  %v1821_v18 = vpop.f32.mrb[44].mxu0  ;;  %3899 = vmatprep.mubr.msk.f32.mxu1 %vm6918_vm7, %v1981_v22  ;;  %vm6923_vm7 = vmmov %vm6911_vm1 }
 0x280   : > { %v4710_v23 = vadd.f32 %v1821_v18, %v5776_v25  ;;  %v1823_v16 = vpop.f32.mrb[45].mxu0  ;;  %2357 = vmatmul.mubr.f32.gmra.mrb[74].mxu1 %v6856_v19  ;;  %v1982_v21 = vmax.f32 %v6196_v62, 0.0  ;;  %v3953_v62 = vld [vmem:[%s6773_s3 + $0x88] sm:$0xff] }
 0x281   : > { %v1983_v24 = vmax.f32 %v6199_v15, 0.0  ;;  %v4711_v14 = vadd.f32 %v1823_v16, %v5778_v10 }
 0x282   : > { %v6211_v0 = vadd.f32 %v4710_v23, %v5789_v13 }
 0x283   : > { %v6214_v17 = vadd.f32 %v4711_v14, %v5791_v12  ;;  %v1827_v20 = vpop.f32.mrb[46].mxu0  ;;  %3900 = vmatprep.mubr.msk.f32.mxu1 %vm6919_vm10, %v1983_v24  ;;  %vm6927_vm10 = vmmov %vm6911_vm1 }
 0x284   : > { %v4712_v25 = vadd.f32 %v1827_v20, %v5780_v28  ;;  %v1829_v18 = vpop.f32.mrb[47].mxu0  ;;  %2362 = vmatmul.mubr.f32.gmra.mrb[76].mxu1 %v1982_v21  ;;  %v1984_v23 = vmax.f32 %v6211_v0, 0.0 }
 0x285   : > { %v1985_v10 = vmax.f32 %v6214_v17, 0.0  ;;  %v4713_v16 = vadd.f32 %v1829_v18, %v5782_v11  ;;  %v6921_v11 = vld [vmem:[#allocation11_spill] sm:$0xff] }
 0x286   : > { %v6226_v14 = vadd.f32 %v4712_v25, %v5789_v13  ;;  %v6922_v13 = vmax.f32 %v6921_v11, 0.0  ;;  %v6925_v25 = vld [vmem:[#allocation13_spill] sm:$0xff]  ;;  %v6932_v11 = vmax.f32 %v5866_v44, 0.0  ;;  %v6942_v44 = vmax.f32 %v5977_v42, 0.0  ;;  %v3952_v17 = vld [vmem:[%s6773_s3 + $0x80] sm:$0xff] }
 0x287   : > { %v6229_v19 = vadd.f32 %v4713_v16, %v5791_v12  ;;  %3901 = vmatprep.mubr.msk.f32.mxu1 %vm6920_vm3, %v1985_v10  ;;  %v6924_v12 = vmax.f32 %v5797_v54, 0.0  ;;  %v6926_v18 = vmax.f32 %v6925_v25, 0.0  ;;  %v6928_v16 = vmax.f32 %v5809_v34, 0.0  ;;  %vm6930_vm3 = vmmov %vm6911_vm1 }
 0x288   : > { %2367 = vmatmul.mubr.f32.gmra.mrb[78].mxu1 %v1984_v23  ;;  %v1986_v20 = vmax.f32 %v6226_v14, 0.0  ;;  %v6931_v14 = vmax.f32 %v5833_v26, 0.0  ;;  %v6933_v54 = vmax.f32 %v5858_v27, 0.0  ;;  %v6936_v34 = vmax.f32 %v5883_v29, 0.0 }
 0x289   : > { %v1987_v28 = vmax.f32 %v6229_v19, 0.0  ;;  %v6929_v19 = vmax.f32 %v5841_v31, 0.0  ;;  %v6937_v31 = vmax.f32 %v5916_v53, 0.0  ;;  %v6939_v26 = vmax.f32 %v5941_v2, 0.0 }
 0x28a   : > { %v6941_v27 = vmax.f32 %v5933_v3, 0.0  ;;  %v6943_v29 = vmax.f32 %v5972_v35, 0.0  ;;  %v6947_v53 = vmax.f32 %v6018_v8, 0.0  ;;  %v6949_v3 = vmax.f32 %v6015_v52, 0.0  ;;  %v3945_v8 = vld [vmem:[%s6773_s3 + $0x48] sm:$0xff] }
 0x28b   : > { %3902 = vmatprep.mubr.msk.f32.mxu1 %vm6911_vm1, %v1987_v28  ;;  %v6952_v2 = vmax.f32 %v6031_v38, 0.0  ;;  %v6953_v35 = vmax.f32 %v6049_v49, 0.0  ;;  %v6954_v42 = vmax.f32 %v6046_v30, 0.0  ;;  %v6960_v52 = vmax.f32 %v6076_v39, 0.0 }
 0x28c   : > { %2372 = vmatmul.mubr.f32.gmra.mrb[80].mxu1 %v1986_v20  ;;  %v6961_v49 = vmax.f32 %v6094_v41, 0.0  ;;  %v6963_v38 = vmax.f32 %v6091_v33, 0.0  ;;  %v6964_v30 = vmax.f32 %v6109_v7, 0.0  ;;  %v6965_v41 = vmax.f32 %v6106_v47, 0.0 }
 0x28d   : > { %3921 = vmatprep.mubr.msk.f32.mxu1 %vm6923_vm7, %v6922_v13  ;;  %v6934_v13 = vmax.f32 %v5891_v50, 0.0  ;;  %vm6935_vm7 = vmmov %vm6911_vm1  ;;  %v6944_v50 = vmax.f32 %v5999_v36, 0.0  ;;  %v6957_v36 = vmax.f32 %v6061_v51, 0.0  ;;  %v6966_v51 = vmax.f32 %v6124_v57, 0.0 }
 0x28e   : > { %v6968_v39 = vmax.f32 %v6121_v40, 0.0  ;;  %v6969_v33 = vmax.f32 %v6139_v59, 0.0  ;;  %v6971_v7 = vmax.f32 %v6136_v48, 0.0  ;;  %v6974_v47 = vmax.f32 %v6151_v55, 0.0  ;;  %v3947_v59 = vld [vmem:[%s6773_s3 + $0x58] sm:$0xff]  ;;  %v3948_v40 = vld [vmem:[%s6773_s3 + $0x60] sm:$0xff] }
 0x28f   : > { %v6975_v57 = vmax.f32 %v6169_v63, 0.0  ;;  %v6976_v48 = vmax.f32 %v6166_v58, 0.0  ;;  %v6978_v63 = vmax.f32 %v6181_v60, 0.0  ;;  %v3950_v55 = vld [vmem:[%s6773_s3 + $0x70] sm:$0xff]  ;;  %v3951_v58 = vld [vmem:[%s6773_s3 + $0x78] sm:$0xff] }
 0x290   : > { %2442 = vmatmul.mubr.f32.vlgmr.msra.gmra.mrb[82].mxu1 %v6924_v12  ;;  %v6972_v12 = vmax.f32 %v6154_v61, 0.0  ;;  %v4536_v61 = vpack.c.bf16 %v3948_v40, %v3947_v59  ;;  %v4540_v15 = vpack.c.bf16 %v3950_v55, %v3949_v1  ;;  %v4544_v60 = vpack.c.bf16 %v3952_v17, %v3951_v58 }
 0x291   : > { %3922 = vmatprep.mubr.msk.f32.mxu1 %vm6927_vm10, %v6926_v18  ;;  %vm6938_vm10 = vmmov %vm6911_vm1 }
 0x294   : > { %2447 = vmatmul.mubr.f32.gmra.mrb[84].mxu1 %v6928_v16 }
 0x295   : > { %3923 = vmatprep.mubr.msk.f32.mxu1 %vm6930_vm3, %v6929_v19  ;;  %vm6940_vm3 = vmmov %vm6911_vm1 }
 0x298   : > { %2452 = vmatmul.mubr.f32.gmra.mrb[86].mxu1 %v6931_v14 }
 0x299   : > { %3924 = vmatprep.mubr.msk.f32.mxu1 %vm6911_vm1, %v6932_v11 }
 0x29c   : > { %2457 = vmatmul.mubr.f32.gmra.mrb[88].mxu1 %v6933_v54 }
 0x29d   : > { %3925 = vmatprep.mubr.msk.f32.mxu1 %vm6935_vm7, %v6934_v13  ;;  %vm6945_vm7 = vmmov %vm6911_vm1 }
 0x2a0   : > { %2462 = vmatmul.mubr.f32.gmra.mrb[90].mxu1 %v6936_v34  ;;  %v2619_v34 = vld [vmem:[%s6773_s3] sm:$0xff] }
 0x2a1   : > { %3926 = vmatprep.mubr.msk.f32.mxu1 %vm6938_vm10, %v6937_v31  ;;  %vm6948_vm10 = vmmov %vm6911_vm1  ;;  %v2620_v31 = vld [vmem:[%s6773_s3 + $0x8] sm:$0xff] }
 0x2a4   : > { %2467 = vmatmul.mubr.f32.gmra.mrb[92].mxu1 %v1950_v43  ;;  %v6950_v43 = vmax.f32 %v6034_v5, 0.0  ;;  %v6958_v5 = vmax.f32 %v6079_v32, 0.0  ;;  %v4532_v32 = vpack.c.bf16 %v3946_v6, %v3945_v8 }
 0x2a5   : > { %3927 = vmatprep.mubr.msk.f32.mxu1 %vm6940_vm3, %v6939_v26  ;;  %vm6951_vm3 = vmmov %vm6911_vm1 }
 0x2a6   : > { %4533 = vmatprep.subr.bf16.mxu1 %v4532_v32 }
 0x2a7   : > { %4535 = vmatpush3.bf16.msra.mxu1 %v4532_v32 }
 0x2a8   : > { %2472 = vmatmul.mubr.f32.gmra.mrb[94].mxu1 %v6941_v27  ;;  %4537 = vmatprep.subr.bf16.mxu1 %v4536_v61  ;;  %v6402_v27 = vpack.c.bf16 %v2620_v31, %v2619_v34 }
 0x2a9   : > { %3928 = vmatprep.mubr.msk.f32.mxu1 %vm6911_vm1, %v6942_v44 }
 0x2ab   : > { %4539 = vmatpush3.bf16.msra.mxu1 %v4536_v61 }
 0x2ac   : > { %2477 = vmatmul.mubr.f32.gmra.mrb[96].mxu1 %v6943_v29  ;;  %4541 = vmatprep.subr.bf16.mxu1 %v4540_v15 }
 0x2ad   : > { %3929 = vmatprep.mubr.msk.f32.mxu1 %vm6945_vm7, %v6944_v50  ;;  %vm6956_vm7 = vmmov %vm6911_vm1 }
 0x2af   : > { %4543 = vmatpush3.bf16.msra.mxu1 %v4540_v15 }
 0x2b0   : > { %2482 = vmatmul.mubr.f32.gmra.mrb[98].mxu1 %v6946_v45  ;;  %4545 = vmatprep.subr.bf16.mxu1 %v4544_v60 }
 0x2b1   : > { %3930 = vmatprep.mubr.msk.f32.mxu1 %vm6948_vm10, %v6947_v53  ;;  %vm6959_vm10 = vmmov %vm6911_vm1 }
 0x2b3   : > { %4547 = vmatpush3.bf16.msra.mxu1 %v4544_v60 }
 0x2b4   : > { %2487 = vmatmul.mubr.f32.gmra.mrb[100].mxu1 %v6949_v3  ;;  %4206 = vmatprep.subr.mxu1 %v3953_v62 }
 0x2b5   : > { %3931 = vmatprep.mubr.msk.f32.mxu1 %vm6951_vm3, %v6950_v43  ;;  %vm6962_vm3 = vmmov %vm6911_vm1 }
 0x2b7   : > { %4207 = vmatpush3.msra.mxu1 %v3953_v62 }
 0x2b8   : > { %2492 = vmatmul.mubr.f32.gmra.mrb[102].mxu1 %v6952_v2  ;;  %4549 = vmatprep.subr.bf16.mxu1 %v6402_v27 }
 0x2b9   : > { %3932 = vmatprep.mubr.msk.f32.mxu1 %vm6911_vm1, %v6953_v35 }
 0x2bc   : > { %2497 = vmatmul.mubr.f32.gmra.mrb[104].mxu1 %v6954_v42 }
 0x2bd   : > { %3933 = vmatprep.mubr.msk.f32.mxu1 %vm6956_vm7, %v6955_v37  ;;  %vm6967_vm7 = vmmov %vm6911_vm1 }
 0x2c0   : > { %2502 = vmatmul.mubr.f32.gmra.mrb[106].mxu1 %v6957_v36 }
 0x2c1   : > { %3934 = vmatprep.mubr.msk.f32.mxu1 %vm6959_vm10, %v6958_v5  ;;  %vm6970_vm10 = vmmov %vm6911_vm1 }
 0x2c4   : > { %2507 = vmatmul.mubr.f32.gmra.mrb[108].mxu1 %v6960_v52 }
 0x2c5   : > { %3935 = vmatprep.mubr.msk.f32.mxu1 %vm6962_vm3, %v6961_v49  ;;  %vm6973_vm3 = vmmov %vm6911_vm1 }
 0x2c8   : > { %2512 = vmatmul.mubr.f32.gmra.mrb[110].mxu1 %v6963_v38 }
 0x2c9   : > { %3936 = vmatprep.mubr.msk.f32.mxu1 %vm6911_vm1, %v6964_v30 }
 0x2cc   : > { %2517 = vmatmul.mubr.f32.gmra.mrb[112].mxu1 %v6965_v41 }
 0x2cd   : > { %3937 = vmatprep.mubr.msk.f32.mxu1 %vm6967_vm7, %v6966_v51  ;;  %vm6977_vm7 = vmmov %vm6911_vm1 }
 0x2d0   : > { %2522 = vmatmul.mubr.f32.gmra.mrb[114].mxu1 %v6968_v39 }
 0x2d1   : > { %3938 = vmatprep.mubr.msk.f32.mxu1 %vm6970_vm10, %v6969_v33  ;;  %vm6979_vm10 = vmmov %vm6911_vm1 }
 0x2d4   : > { %2527 = vmatmul.mubr.f32.gmra.mrb[116].mxu1 %v6971_v7 }
 0x2d5   : > { %3939 = vmatprep.mubr.msk.f32.mxu1 %vm6973_vm3, %v6972_v12  ;;  %vm6980_vm3 = vmmov %vm6911_vm1 }
 0x2d8   : > { %2532 = vmatmul.mubr.f32.gmra.mrb[118].mxu1 %v6974_v47 }
 0x2d9   : > { %3940 = vmatprep.mubr.msk.f32.mxu1 %vm6911_vm1, %v6975_v57 }
 0x2dc   : > { %2537 = vmatmul.mubr.f32.gmra.mrb[120].mxu1 %v6976_v48 }
 0x2dd   : > { %3941 = vmatprep.mubr.msk.f32.mxu1 %vm6977_vm7, %v1981_v22  ;;  %vm2587_vm7 = vcmask 588800  }
 0x2e0   : > { %2542 = vmatmul.mubr.f32.gmra.mrb[122].mxu1 %v6978_v63 }
 0x2e1   : > { %3942 = vmatprep.mubr.msk.f32.mxu1 %vm6979_vm10, %v1983_v24 }
 0x2e4   : > { %2547 = vmatmul.mubr.f32.gmra.mrb[124].mxu1 %v1982_v21 }
 0x2e5   : > { %3943 = vmatprep.mubr.msk.f32.mxu1 %vm6980_vm3, %v1985_v10 }
 0x2e8   : > { %2552 = vmatmul.mubr.f32.gmra.mrb[126].mxu1 %v1984_v23 }
 0x2e9   : > { %3944 = vmatprep.mubr.msk.f32.mxu1 %vm6911_vm1, %v1987_v28 }
 0x2ec   : > { %2557 = vmatmul.mubr.f32.gmra.mrb[128].mxu1 %v1986_v20 }
 0x301   : > { %v6379_v22 = vpop.f32.mrb[34].mxu1 }
 0x302   : > { %v2260_v24 = vpop.f32.mrb[35].mxu1 }
 0x305   : > { %v2263_v21 = vpop.f32.mrb[36].mxu1 }
 0x306   : > { %v2265_v0 = vpop.f32.mrb[37].mxu1 }
 0x309   : > { %v6384_v10 = vpop.f32.mrb[38].mxu1 }
 0x30a   : > { %v2270_v23 = vpop.f32.mrb[39].mxu1 }
 0x30d   : > { %v2273_v28 = vpop.f32.mrb[40].mxu1 }
 0x30e   : > { %v2275_v20 = vpop.f32.mrb[41].mxu1 }
 0x311   : > { %v6386_v25 = vpop.f32.mrb[42].mxu1 }
 0x312   : > { %v2280_v18 = vpop.f32.mrb[43].mxu1 }
 0x315   : > { %v6388_v16 = vpop.f32.mrb[44].mxu1 }
 0x316   : > { %v2285_v19 = vpop.f32.mrb[45].mxu1 }
 0x319   : > { %v6390_v14 = vpop.f32.mrb[46].mxu1 }
 0x31a   : > { %v2290_v11 = vpop.f32.mrb[47].mxu1 }
 0x31f   : > { %v6392_v54 = vpop.f32.mrb[48].mxu1 }
 0x320   : > { %v2295_v13 = vpop.f32.mrb[49].mxu1 }
 0x323   : > { %v6400_v26 = vpop.f32.mrb[50].mxu1 }
 0x324   : > { %v2300_v44 = vpop.f32.mrb[51].mxu1 }
 0x327   : > { %v6405_v29 = vpop.f32.mrb[52].mxu1 }
 0x328   : > { %v2305_v50 = vpop.f32.mrb[53].mxu1 }
 0x32b   : > { %v6407_v45 = vpop.f32.mrb[54].mxu1 }
 0x32c   : > { %v2310_v53 = vpop.f32.mrb[55].mxu1 }
 0x32f   : > { %v6409_v3 = vpop.f32.mrb[56].mxu1 }
 0x330   : > { %v2315_v43 = vpop.f32.mrb[57].mxu1 }
 0x333   : > { %v6411_v2 = vpop.f32.mrb[58].mxu1 }
 0x334   : > { %v2320_v35 = vpop.f32.mrb[59].mxu1 }
 0x337   : > { %v6413_v42 = vpop.f32.mrb[60].mxu1 }
 0x338   : > { %v2325_v37 = vpop.f32.mrb[61].mxu1 }
 0x33b   : > { %v6415_v36 = vpop.f32.mrb[62].mxu1 }
 0x33c   : > { %v2330_v5 = vpop.f32.mrb[63].mxu1 }
 0x33f   : > { %v6417_v52 = vpop.f32.mrb[64].mxu1 }
 0x340   : > { %v2335_v49 = vpop.f32.mrb[65].mxu1 }
 0x343   : > { %v6419_v8 = vpop.f32.mrb[66].mxu1 }
 0x344   : > { %v2340_v6 = vpop.f32.mrb[67].mxu1 }
 0x345   : > { %v2623_v6 = vld [vmem:[%s6773_s3 + $0x20] sm:$0xff] }
 0x347   : > { %v6421_v38 = vpop.f32.mrb[68].mxu1 }
 0x348   : > { %v2345_v32 = vpop.f32.mrb[69].mxu1 }
 0x349   : > { %v2624_v32 = vld [vmem:[%s6773_s3 + $0x28] sm:$0xff] }
 0x34b   : > { %v6423_v30 = vpop.f32.mrb[70].mxu1 }
 0x34c   : > { %v2350_v41 = vpop.f32.mrb[71].mxu1 }
 0x34f   : > { %v6425_v51 = vpop.f32.mrb[72].mxu1 }
 0x350   : > { %v2355_v39 = vpop.f32.mrb[73].mxu1 }
 0x353   : > { %v6427_v33 = vpop.f32.mrb[74].mxu1 }
 0x354   : > { %v2360_v7 = vpop.f32.mrb[75].mxu1 }
 0x357   : > { %v6429_v12 = vpop.f32.mrb[76].mxu1 }
 0x358   : > { %v2365_v47 = vpop.f32.mrb[77].mxu1 }
 0x359   : > { %v2625_v47 = vld [vmem:[%s6773_s3 + $0x30] sm:$0xff] }
 0x35b   : > { %v6431_v57 = vpop.f32.mrb[78].mxu1 }
 0x35c   : > { %v2370_v59 = vpop.f32.mrb[79].mxu1 }
 0x35d   : > { %v2626_v59 = vld [vmem:[%s6773_s3 + $0x38] sm:$0xff] }
 0x35f   : > { %v6433_v40 = vpop.f32.mrb[80].mxu1 }
 0x360   : > { %v2375_v48 = vpop.f32.mrb[81].mxu1 }
 0x363   : > { %v2443_v61 = vpop.f32.mrb[82].mxu1 }
 0x364   : > { %v2562_v63 = vmax.f32 %v6379_v22, %v2443_v61  ;;  %v2445_v1 = vpop.f32.mrb[83].mxu1 }
 0x367   : > { %v2448_v55 = vpop.f32.mrb[84].mxu1 }
 0x368   : > { %v2563_v15 = vmax.f32 %v2263_v21, %v2448_v55  ;;  %v2450_v58 = vpop.f32.mrb[85].mxu1 }
 0x36a   : > { %v2586_v17 = vmax.f32 %v2562_v63, %v2563_v15  ;;  %v4560_v63 = vpack.c.bf16 %v2626_v59, %v2625_v47  ;;  %v3972_v47 = vld [vmem:[%s6773_s3 + $0xa0] sm:$0xff] }
 0x36b   : > { %v2453_v60 = vpop.f32.mrb[86].mxu1 }
 0x36c   : > { %2588 = vst.msk [vmem:[#allocation2] sm:$0xff] %vm2587_vm7, %v2586_v17  ;;  %v2564_v62 = vmax.f32 %v6384_v10, %v2453_v60  ;;  %v2455_v24 = vpop.f32.mrb[87].mxu1  ;;  %v3970_v17 = vld [vmem:[%s6773_s3 + $0x90] sm:$0xff]  ;;  %v3971_v60 = vld [vmem:[%s6773_s3 + $0x98] sm:$0xff] }
 0x36f   : > { %v2458_v0 = vpop.f32.mrb[88].mxu1 }
 0x370   : > { %v2565_v23 = vmax.f32 %v2273_v28, %v2458_v0  ;;  %v2460_v20 = vpop.f32.mrb[89].mxu1  ;;  %v4564_v0 = vpack.c.bf16 %v3971_v60, %v3970_v17  ;;  %v3976_v17 = vld [vmem:[%s6773_s3 + $0xc0] sm:$0xff] }
 0x372   : > { %v2589_v18 = vmax.f32 %v2564_v62, %v2565_v23 }
 0x373   : > { %v2463_v19 = vpop.f32.mrb[90].mxu1 }
 0x374   : > { %2590 = vst.msk [vmem:[#allocation2 + $0x8] sm:$0xff] %vm2587_vm7, %v2589_v18  ;;  %v2566_v22 = vmax.f32 %v6386_v25, %v2463_v19  ;;  %v2465_v11 = vpop.f32.mrb[91].mxu1  ;;  %v2621_v25 = vld [vmem:[%s6773_s3 + $0x10] sm:$0xff] }
 0x377   : > { %v2468_v21 = vpop.f32.mrb[92].mxu1 }
 0x378   : > { %v2567_v13 = vmax.f32 %v6388_v16, %v2468_v21  ;;  %v2470_v34 = vpop.f32.mrb[93].mxu1  ;;  %v2622_v16 = vld [vmem:[%s6773_s3 + $0x18] sm:$0xff] }
 0x379   : > { %v4552_v5 = vpack.c.bf16 %v2622_v16, %v2621_v25 }
 0x37a   : > { %v2591_v31 = vmax.f32 %v2566_v22, %v2567_v13 }
 0x37b   : > { %v2473_v44 = vpop.f32.mrb[94].mxu1  ;;  %v6441_v50 = vld [vmem:[#allocation2 + $0x8] sm:$0xff] }
 0x37c   : > { %2592 = vst.msk [vmem:[#allocation2 + $0x10] sm:$0xff] %vm2587_vm7, %v2591_v31  ;;  %v2568_v10 = vmax.f32 %v6390_v14, %v2473_v44  ;;  %v2475_v28 = vpop.f32.mrb[95].mxu1  ;;  %4208 = vmatprep.mubr.msk.f32.mxu1 %vm2587_vm7, %v6441_v50 }
 0x37f   : > { %v2478_v53 = vpop.f32.mrb[96].mxu1 }
 0x380   : > { %v2569_v43 = vmax.f32 %v6392_v54, %v2478_v53  ;;  %v2480_v35 = vpop.f32.mrb[97].mxu1  ;;  %v4556_v54 = vpack.c.bf16 %v2624_v32, %v2623_v6 }
 0x382   : > { %v2593_v37 = vmax.f32 %v2568_v10, %v2569_v43 }
 0x383   : > { %v2483_v49 = vpop.f32.mrb[98].mxu1  ;;  %v6454_v14 = vld [vmem:[#allocation2 + $0x10] sm:$0xff] }
 0x384   : > { %2594 = vst.msk [vmem:[#allocation2 + $0x18] sm:$0xff] %vm2587_vm7, %v2593_v37  ;;  %v2570_v41 = vmax.f32 %v6400_v26, %v2483_v49  ;;  %v2485_v39 = vpop.f32.mrb[99].mxu1  ;;  %4209 = vmatmul.mubr.msk.f32.vlgmr.msra.gmra.mrb[130].mxu1 %vm2587_vm7, %v6454_v14 }
 0x385   : > { %4551 = vmatpush3.bf16.msra.mxu1 %v6402_v27 }
 0x386   : > { %4553 = vmatprep.subr.bf16.mxu1 %v4552_v5 }
 0x387   : > { %v2488_v7 = vpop.f32.mrb[100].mxu1 }
 0x388   : > { %v2571_v48 = vmax.f32 %v6405_v29, %v2488_v7  ;;  %v2490_v26 = vpop.f32.mrb[101].mxu1  ;;  %v2627_v29 = vld [vmem:[%s6773_s3 + $0x40] sm:$0xff] }
 0x389   : > { %4555 = vmatpush3.bf16.msra.mxu1 %v4552_v5 }
 0x38a   : > { %v2595_v61 = vmax.f32 %v2570_v41, %v2571_v48  ;;  %4557 = vmatprep.subr.bf16.mxu1 %v4556_v54 }
 0x38b   : > { %v2493_v1 = vpop.f32.mrb[102].mxu1  ;;  %v6474_v27 = vld [vmem:[#allocation2 + $0x18] sm:$0xff] }
 0x38c   : > { %2596 = vst.msk [vmem:[#allocation2 + $0x20] sm:$0xff] %vm2587_vm7, %v2595_v61  ;;  %v2572_v55 = vmax.f32 %v6407_v45, %v2493_v1  ;;  %v2495_v15 = vpop.f32.mrb[103].mxu1  ;;  %4211 = vmatprep.mubr.msk.f32.mxu1 %vm2587_vm7, %v6474_v27  ;;  %v3975_v1 = vld [vmem:[%s6773_s3 + $0xb8] sm:$0xff] }
 0x38d   : > { %4559 = vmatpush3.bf16.msra.mxu1 %v4556_v54 }
 0x38e   : > { %4561 = vmatprep.subr.bf16.mxu1 %v4560_v63 }
 0x38f   : > { %v2498_v58 = vpop.f32.mrb[104].mxu1 }
 0x390   : > { %v2573_v45 = vmax.f32 %v6409_v3, %v2498_v58  ;;  %v2500_v62 = vpop.f32.mrb[105].mxu1 }
 0x391   : > { %4563 = vmatpush3.bf16.msra.mxu1 %v4560_v63  ;;  %v3974_v63 = vld [vmem:[%s6773_s3 + $0xb0] sm:$0xff] }
 0x392   : > { %v2597_v24 = vmax.f32 %v2572_v55, %v2573_v45  ;;  %4236 = vmatprep.subr.mxu1 %v2627_v29  ;;  %v4572_v58 = vpack.c.bf16 %v3975_v1, %v3974_v63 }
 0x393   : > { %v2503_v23 = vpop.f32.mrb[106].mxu1  ;;  %v6490_v20 = vld [vmem:[#allocation2 + $0x20] sm:$0xff] }
 0x394   : > { %2598 = vst.msk [vmem:[#allocation2 + $0x28] sm:$0xff] %vm2587_vm7, %v2597_v24  ;;  %v2574_v18 = vmax.f32 %v6411_v2, %v2503_v23  ;;  %v2505_v19 = vpop.f32.mrb[107].mxu1  ;;  %4212 = vmatmul.mubr.msk.f32.gmra.mrb[132].mxu1 %vm2587_vm7, %v6490_v20  ;;  %v3978_v23 = vld [vmem:[%s6773_s3 + $0xd0] sm:$0xff] }
 0x395   : > { %4237 = vmatpush3.msra.mxu1 %v2627_v29  ;;  %v3989_v19 = vld [vmem:[%s6773_s3 + $0xe8] sm:$0xff] }
 0x396   : > { %4565 = vmatprep.subr.bf16.mxu1 %v4564_v0 }
 0x397   : > { %v2508_v22 = vpop.f32.mrb[108].mxu1 }
 0x398   : > { %v2575_v3 = vmax.f32 %v6413_v42, %v2508_v22  ;;  %v2510_v11 = vpop.f32.mrb[109].mxu1  ;;  %v3990_v22 = vld [vmem:[%s6773_s3 + $0xf0] sm:$0xff] }
 0x399   : > { %v4584_v11 = vpack.c.bf16 %v3990_v22, %v3989_v19 }
 0x39a   : > { %v2599_v21 = vmax.f32 %v2574_v18, %v2575_v3  ;;  %v3987_v18 = vld [vmem:[%s6773_s3 + $0xd8] sm:$0xff] }
 0x39b   : > { %v2513_v13 = vpop.f32.mrb[110].mxu1  ;;  %v6497_v34 = vld [vmem:[#allocation2 + $0x28] sm:$0xff] }
 0x39c   : > { %2600 = vst.msk [vmem:[#allocation2 + $0x30] sm:$0xff] %vm2587_vm7, %v2599_v21  ;;  %v2576_v31 = vmax.f32 %v6415_v36, %v2513_v13  ;;  %v2515_v44 = vpop.f32.mrb[111].mxu1  ;;  %4214 = vmatprep.mubr.msk.f32.mxu1 %vm2587_vm7, %v6497_v34  ;;  %v3991_v21 = vld [vmem:[%s6773_s3 + $0xf8] sm:$0xff] }
 0x39d   : > { %v3994_v44 = vld [vmem:[%s6773_s3 + $0x110] sm:$0xff] }
 0x39f   : > { %v2518_v2 = vpop.f32.mrb[112].mxu1 }
 0x3a0   : > { %v2577_v10 = vmax.f32 %v6417_v52, %v2518_v2  ;;  %v2520_v28 = vpop.f32.mrb[113].mxu1 }
 0x3a2   : > { %v2601_v53 = vmax.f32 %v2576_v31, %v2577_v10  ;;  %v3993_v31 = vld [vmem:[%s6773_s3 + $0x108] sm:$0xff]  ;;  %v3995_v10 = vld [vmem:[%s6773_s3 + $0x118] sm:$0xff] }
 0x3a3   : > { %v2523_v25 = vpop.f32.mrb[114].mxu1  ;;  %v6504_v42 = vld [vmem:[#allocation2 + $0x30] sm:$0xff]  ;;  %v4592_v2 = vpack.c.bf16 %v3994_v44, %v3993_v31 }
 0x3a4   : > { %2602 = vst.msk [vmem:[#allocation2 + $0x38] sm:$0xff] %vm2587_vm7, %v2601_v53  ;;  %v2578_v16 = vmax.f32 %v6419_v8, %v2523_v25  ;;  %v2525_v43 = vpop.f32.mrb[115].mxu1  ;;  %4215 = vmatmul.mubr.msk.f32.gmra.mrb[134].mxu1 %vm2587_vm7, %v6504_v42  ;;  %v4004_v53 = vld [vmem:[%s6773_s3 + $0x120] sm:$0xff]  ;;  %v4005_v25 = vld [vmem:[%s6773_s3 + $0x128] sm:$0xff] }
 0x3a5   : > { %v4007_v43 = vld [vmem:[%s6773_s3 + $0x138] sm:$0xff] }
 0x3a7   : > { %v2528_v36 = vpop.f32.mrb[116].mxu1 }
 0x3a8   : > { %v2579_v35 = vmax.f32 %v6421_v38, %v2528_v36  ;;  %v2530_v37 = vpop.f32.mrb[117].mxu1  ;;  %v4596_v36 = vpack.c.bf16 %v4005_v25, %v4004_v53 }
 0x3a9   : > { %v4008_v37 = vld [vmem:[%s6773_s3 + $0x140] sm:$0xff] }
 0x3aa   : > { %v2603_v5 = vmax.f32 %v2578_v16, %v2579_v35  ;;  %v4006_v16 = vld [vmem:[%s6773_s3 + $0x130] sm:$0xff] }
 0x3ab   : > { %v2533_v49 = vpop.f32.mrb[118].mxu1  ;;  %v6511_v52 = vld [vmem:[#allocation2 + $0x38] sm:$0xff]  ;;  %v4600_v35 = vpack.c.bf16 %v4007_v43, %v4006_v16 }
 0x3ac   : > { %2604 = vst.msk [vmem:[#allocation2 + $0x40] sm:$0xff] %vm2587_vm7, %v2603_v5  ;;  %v2580_v6 = vmax.f32 %v6423_v30, %v2533_v49  ;;  %v2535_v32 = vpop.f32.mrb[119].mxu1  ;;  %4217 = vmatprep.mubr.msk.f32.mxu1 %vm2587_vm7, %v6511_v52  ;;  %v3973_v30 = vld [vmem:[%s6773_s3 + $0xa8] sm:$0xff]  ;;  %v4010_v49 = vld [vmem:[%s6773_s3 + $0x150] sm:$0xff] }
 0x3ad   : > { %v4568_v26 = vpack.c.bf16 %v3973_v30, %v3972_v47 }
 0x3af   : > { %v2538_v8 = vpop.f32.mrb[120].mxu1 }
 0x3b0   : > { %v2581_v41 = vmax.f32 %v6425_v51, %v2538_v8  ;;  %v2540_v39 = vpop.f32.mrb[121].mxu1  ;;  %v2611_v51 = vld [vmem:[#allocation2] sm:$0xff] }
 0x3b2   : > { %v2605_v54 = vmax.f32 %v2580_v6, %v2581_v41  ;;  %v4011_v6 = vld [vmem:[%s6773_s3 + $0x158] sm:$0xff]  ;;  %v4012_v41 = vld [vmem:[%s6773_s3 + $0x160] sm:$0xff] }
 0x3b3   : > { %v2543_v7 = vpop.f32.mrb[122].mxu1  ;;  %v6518_v38 = vld [vmem:[#allocation2 + $0x40] sm:$0xff]  ;;  %v4608_v32 = vpack.c.bf16 %v4011_v6, %v4010_v49 }
 0x3b4   : > { %2606 = vst.msk [vmem:[#allocation2 + $0x48] sm:$0xff] %vm2587_vm7, %v2605_v54  ;;  %v2582_v59 = vmax.f32 %v6427_v33, %v2543_v7  ;;  %v2545_v48 = vpop.f32.mrb[123].mxu1  ;;  %4218 = vmatmul.mubr.msk.f32.gmra.mrb[136].mxu1 %vm2587_vm7, %v6518_v38 }
 0x3b5   : > { %4238 = vmatprep.mubr.msk.f32.mxu1 %vm2587_vm7, %v2611_v51 }
 0x3b7   : > { %v2548_v61 = vpop.f32.mrb[124].mxu1 }
 0x3b8   : > { %v2583_v55 = vmax.f32 %v6429_v12, %v2548_v61  ;;  %v2550_v33 = vpop.f32.mrb[125].mxu1  ;;  %4239 = vmatmul.mubr.msk.f32.vlgmr.msra.gmra.mrb[130].mxu1 %vm2587_vm7, %v6441_v50  ;;  %v3977_v12 = vld [vmem:[%s6773_s3 + $0xc8] sm:$0xff] }
 0x3b9   : > { %4567 = vmatpush3.bf16.msra.mxu1 %v4564_v0  ;;  %4241 = vmatprep.mubr.msk.f32.mxu1 %vm2587_vm7, %v6454_v14  ;;  %v4576_v45 = vpack.c.bf16 %v3977_v12, %v3976_v17 }
 0x3ba   : > { %v2607_v15 = vmax.f32 %v2582_v59, %v2583_v55  ;;  %4569 = vmatprep.subr.bf16.mxu1 %v4568_v26  ;;  %v4021_v59 = vld [vmem:[%s6774_s4] ss:$0 sm:$0xff] }
 0x3bb   : > { %v2553_v29 = vpop.f32.mrb[126].mxu1  ;;  %v2883_v28 = vld [vmem:[#allocation2 + $0x48] sm:$0xff] }
 0x3bc   : > { %2608 = vst.msk [vmem:[#allocation2 + $0x50] sm:$0xff] %vm2587_vm7, %v2607_v15  ;;  %v2584_v50 = vmax.f32 %v6431_v57, %v2553_v29  ;;  %v2555_v60 = vpop.f32.mrb[127].mxu1  ;;  %4242 = vmatmul.mubr.msk.f32.gmra.mrb[132].mxu1 %vm2587_vm7, %v6474_v27 }
 0x3bd   : > { %4571 = vmatpush3.bf16.msra.mxu1 %v4568_v26  ;;  %4244 = vmatprep.mubr.msk.f32.mxu1 %vm2587_vm7, %v6490_v20 }
 0x3be   : > { %4573 = vmatprep.subr.bf16.mxu1 %v4572_v58 }
 0x3bf   : > { %v2558_v62 = vpop.f32.mrb[128].mxu1 }
 0x3c0   : > { %v2585_v24 = vmax.f32 %v6433_v40, %v2558_v62  ;;  %v2560_v0 = vpop.f32.mrb[129].mxu1  ;;  %4245 = vmatmul.mubr.msk.f32.gmra.mrb[134].mxu1 %vm2587_vm7, %v6497_v34  ;;  %v3988_v40 = vld [vmem:[%s6773_s3 + $0xe0] sm:$0xff] }
 0x3c1   : > { %4575 = vmatpush3.bf16.msra.mxu1 %v4572_v58  ;;  %4247 = vmatprep.mubr.msk.f32.mxu1 %vm2587_vm7, %v6504_v42  ;;  %v4580_v3 = vpack.c.bf16 %v3988_v40, %v3987_v18  ;;  %v6991_v40 = vld [vmem:[#allocation15_spill] sm:$0xff] }
 0x3c2   : > { %v2609_v57 = vmax.f32 %v2584_v50, %v2585_v24  ;;  %4577 = vmatprep.subr.bf16.mxu1 %v4576_v45 }
 0x3c3   : > { %v3038_v8 = vld [vmem:[#allocation2 + $0x50] sm:$0xff] }
 0x3c4   : > { %2610 = vst.msk [vmem:[#allocation2 + $0x58] sm:$0xff] %vm2587_vm7, %v2609_v57  ;;  %4248 = vmatmul.mubr.msk.f32.gmra.mrb[136].mxu1 %vm2587_vm7, %v6511_v52 }
 0x3c5   : > { %4579 = vmatpush3.bf16.msra.mxu1 %v4576_v45  ;;  %4268 = vmatprep.mubr.msk.f32.mxu1 %vm2587_vm7, %v6454_v14  ;;  %v3992_v14 = vld [vmem:[%s6773_s3 + $0x100] sm:$0xff] }
 0x3c6   : > { %4266 = vmatprep.subr.mxu1 %v3978_v23  ;;  %v4588_v13 = vpack.c.bf16 %v3992_v14, %v3991_v21  ;;  %v6995_v21 = vld [vmem:[#allocation17_spill] sm:$0xff] }
 0x3c9   : > { %4267 = vmatpush3.msra.mxu1 %v3978_v23 }
 0x3ca   : > { %4269 = vmatmul.mubr.msk.f32.vlgmr.msra.gmra.mrb[130].mxu1 %vm2587_vm7, %v6474_v27  ;;  %4581 = vmatprep.subr.bf16.mxu1 %v4580_v3 }
 0x3cb   : > { %4271 = vmatprep.mubr.msk.f32.mxu1 %vm2587_vm7, %v6490_v20  ;;  %4583 = vmatpush3.bf16.msra.mxu1 %v4580_v3 }
 0x3cc   : > { %4585 = vmatprep.subr.bf16.mxu1 %v4584_v11 }
 0x3ce   : > { %4272 = vmatmul.mubr.msk.f32.gmra.mrb[132].mxu1 %vm2587_vm7, %v6497_v34 }
 0x3cf   : > { %4274 = vmatprep.mubr.msk.f32.mxu1 %vm2587_vm7, %v6504_v42  ;;  %4587 = vmatpush3.bf16.msra.mxu1 %v4584_v11  ;;  %v6993_v11 = vld [vmem:[#allocation16_spill] sm:$0xff] }
 0x3d0   : > { %4589 = vmatprep.subr.bf16.mxu1 %v4588_v13 }
 0x3d2   : > { %4275 = vmatmul.mubr.msk.f32.gmra.mrb[134].mxu1 %vm2587_vm7, %v6511_v52 }
 0x3d3   : > { %4277 = vmatprep.mubr.msk.f32.mxu1 %vm2587_vm7, %v6518_v38  ;;  %4591 = vmatpush3.bf16.msra.mxu1 %v4588_v13 }
 0x3d4   : > { %4593 = vmatprep.subr.bf16.mxu1 %v4592_v2 }
 0x3d6   : > { %4278 = vmatmul.mubr.msk.f32.gmra.mrb[136].mxu1 %vm2587_vm7, %v2883_v28 }
 0x3d7   : > { %4595 = vmatpush3.bf16.msra.mxu1 %v4592_v2  ;;  %4298 = vmatprep.mubr.msk.f32.mxu1 %vm2587_vm7, %v6474_v27  ;;  %v4009_v27 = vld [vmem:[%s6773_s3 + $0x148] sm:$0xff] }
 0x3d8   : > { %4296 = vmatprep.subr.mxu1 %v3995_v10  ;;  %v4604_v5 = vpack.c.bf16 %v4009_v27, %v4008_v37 }
 0x3db   : > { %4297 = vmatpush3.msra.mxu1 %v3995_v10 }
 0x3dc   : > { %4299 = vmatmul.mubr.msk.f32.vlgmr.msra.gmra.mrb[130].mxu1 %vm2587_vm7, %v6490_v20  ;;  %4597 = vmatprep.subr.bf16.mxu1 %v4596_v36 }
 0x3dd   : > { %4301 = vmatprep.mubr.msk.f32.mxu1 %vm2587_vm7, %v6497_v34  ;;  %4599 = vmatpush3.bf16.msra.mxu1 %v4596_v36 }
 0x3de   : > { %4601 = vmatprep.subr.bf16.mxu1 %v4600_v35 }
 0x3e0   : > { %4302 = vmatmul.mubr.msk.f32.gmra.mrb[132].mxu1 %vm2587_vm7, %v6504_v42 }
 0x3e1   : > { %4304 = vmatprep.mubr.msk.f32.mxu1 %vm2587_vm7, %v6511_v52  ;;  %4603 = vmatpush3.bf16.msra.mxu1 %v4600_v35 }
 0x3e2   : > { %4605 = vmatprep.subr.bf16.mxu1 %v4604_v5 }
 0x3e4   : > { %4305 = vmatmul.mubr.msk.f32.gmra.mrb[134].mxu1 %vm2587_vm7, %v6518_v38 }
 0x3e5   : > { %4307 = vmatprep.mubr.msk.f32.mxu1 %vm2587_vm7, %v2883_v28  ;;  %4607 = vmatpush3.bf16.msra.mxu1 %v4604_v5 }
 0x3e6   : > { %4609 = vmatprep.subr.bf16.mxu1 %v4608_v32 }
 0x3e8   : > { %4308 = vmatmul.mubr.msk.f32.gmra.mrb[136].mxu1 %vm2587_vm7, %v3038_v8 }
 0x3e9   : > { %4611 = vmatpush3.bf16.msra.mxu1 %v4608_v32  ;;  %4328 = vmatprep.mubr.msk.f32.mxu1 %vm2587_vm7, %v6490_v20 }
 0x3ea   : > { %4326 = vmatprep.subr.mxu1 %v4012_v41 }
 0x3ed   : > { %4327 = vmatpush3.msra.mxu1 %v4012_v41 }
 0x3ee   : > { %4329 = vmatmul.mubr.msk.f32.vlgmr.msra.gmra.mrb[130].mxu1 %vm2587_vm7, %v6497_v34  ;;  %4613 = vmatprep.subr.msk.bf16.mxu1 %vm5495_vm8, %v6888_v46 }
 0x3ef   : > { %4331 = vmatprep.mubr.msk.f32.mxu1 %vm2587_vm7, %v6504_v42  ;;  %4615 = vmatpush3.bf16.msk.msra.mxu1 %vm5495_vm8, %v6888_v46  ;;  %v3193_v42 = vld [vmem:[#allocation2 + $0x58] sm:$0xff]  ;;  %vm6992_vm8 = vnez %v6991_v40 }
 0x3f0   : > { %4617 = vmatprep.subr.msk.bf16.mxu1 %vm5506_vm9, %v6888_v46 }
 0x3f2   : > { %4332 = vmatmul.mubr.msk.f32.gmra.mrb[132].mxu1 %vm2587_vm7, %v6511_v52 }
 0x3f3   : > { %4334 = vmatprep.mubr.msk.f32.mxu1 %vm2587_vm7, %v6518_v38  ;;  %4619 = vmatpush3.bf16.msk.msra.mxu1 %vm5506_vm9, %v6888_v46  ;;  %vm6994_vm9 = vnez %v6993_v11 }
 0x3f4   : > { %4621 = vmatprep.subr.msk.bf16.mxu1 %vm5527_vm12, %v6888_v46 }
 0x3f6   : > { %4335 = vmatmul.mubr.msk.f32.gmra.mrb[134].mxu1 %vm2587_vm7, %v2883_v28 }
 0x3f7   : > { %4337 = vmatprep.mubr.msk.f32.mxu1 %vm2587_vm7, %v3038_v8  ;;  %4623 = vmatpush3.bf16.msk.msra.mxu1 %vm5527_vm12, %v6888_v46  ;;  %vm6996_vm12 = vnez %v6995_v21 }
 0x3f8   : > { %4625 = vmatprep.subr.msk.bf16.mxu1 %vm5548_vm15, %v6888_v46 }
 0x3fa   : > { %4338 = vmatmul.mubr.msk.f32.gmra.mrb[136].mxu1 %vm2587_vm7, %v3193_v42 }
 0x3fb   : > { %4627 = vmatpush3.bf16.msk.msra.mxu1 %vm5548_vm15, %v6888_v46  ;;  %vm6997_vm15 = vnez %v6903_v56 }
 0x3fc   : > { %4629 = vmatprep.subr.msk.bf16.mxu1 %vm5569_vm2, %v6888_v46 }
 0x3ff   : > { %4631 = vmatpush3.bf16.msk.msra.mxu1 %vm5569_vm2, %v6888_v46  ;;  %vm3583_vm2 = vcmask 523264  }
 0x400   : > { %4633 = vmatprep.subr.msk.bf16.mxu1 %vm5590_vm6, %v6888_v46 }
 0x403   : > { %4635 = vmatpush3.bf16.msk.msra.mxu1 %vm5590_vm6, %v6888_v46  ;;  %vm3590_vm6 = vcmask 1048064  }
 0x404   : > { %4637 = vmatprep.subr.msk.bf16.mxu1 %vm5612_vm11, %v6888_v46 }
 0x407   : > { %4639 = vmatpush3.bf16.msk.msra.mxu1 %vm5612_vm11, %v6888_v46 }
 0x408   : > { %4641 = vmatprep.subr.msk.bf16.mxu1 %vm5626_vm0, %v6888_v46 }
 0x40b   : > { %4643 = vmatpush3.bf16.msk.msra.mxu1 %vm5626_vm0, %v6888_v46 }
 0x40c   : > { %4645 = vmatprep.subr.msk.bf16.mxu1 %vm5811_vm13, %v6888_v46 }
 0x4c1   : > { %v4330_v48 = vpop.f32.mrb[130].mxu1 }
 0x4c2   : > { %v3349_v51 = vadd.f32 %v4330_v48, %v4021_v59  ;;  %v3294_v26 = vpop.f32.mrb[131].mxu1 }
 0x4c3   : > { %v3348_v61 = vadd.f32 %v4021_v59, %v3294_v26 }
 0x4c4   : > { %v3357_v55 = vmax.f32 %v3349_v51, 0.0 }
 0x4c5   : > { %v3356_v63 = vmax.f32 %v3348_v61, 0.0  ;;  %v4333_v1 = vpop.f32.mrb[132].mxu1 }
 0x4c6   : > { %v3351_v33 = vadd.f32 %v4333_v1, %v4021_v59  ;;  %v3304_v15 = vpop.f32.mrb[133].mxu1 }
 0x4c7   : > { %v3350_v58 = vadd.f32 %v4021_v59, %v3304_v15  ;;  %4372 = vmatprep.mubr.f32.mxu1 %v3356_v63 }
 0x4c8   : > { %4373 = vmatmul.mubr.f32.vlgmr.msra.gmra.mrb[138].mxu1 %v3357_v55  ;;  %v3359_v12 = vmax.f32 %v3351_v33, 0.0 }
 0x4c9   : > { %v3358_v29 = vmax.f32 %v3350_v58, 0.0  ;;  %4647 = vmatpush3.bf16.msk.msra.mxu1 %vm5811_vm13, %v6888_v46  ;;  %v4336_v17 = vpop.f32.mrb[134].mxu1 }
 0x4ca   : > { %v3353_v50 = vadd.f32 %v4336_v17, %v4021_v59  ;;  %v3314_v60 = vpop.f32.mrb[135].mxu1  ;;  %4649 = vmatprep.subr.msk.bf16.mxu1 %vm5836_vm4, %v6888_v46 }
 0x4cb   : > { %v3352_v62 = vadd.f32 %v4021_v59, %v3314_v60  ;;  %4375 = vmatprep.mubr.f32.mxu1 %v3358_v29 }
 0x4cc   : > { %4376 = vmatmul.mubr.f32.gmra.mrb[140].mxu1 %v3359_v12  ;;  %v3361_v57 = vmax.f32 %v3353_v50, 0.0 }
 0x4cd   : > { %v3360_v24 = vmax.f32 %v3352_v62, 0.0  ;;  %4651 = vmatpush3.bf16.msk.msra.mxu1 %vm5836_vm4, %v6888_v46  ;;  %v4339_v0 = vpop.f32.mrb[136].mxu1 }
 0x4ce   : > { %v3355_v23 = vadd.f32 %v4339_v0, %v4021_v59  ;;  %v3324_v18 = vpop.f32.mrb[137].mxu1  ;;  %4653 = vmatprep.subr.msk.bf16.mxu1 %vm6992_vm8, %v6888_v46 }
 0x4cf   : > { %v3354_v19 = vadd.f32 %v4021_v59, %v3324_v18  ;;  %4378 = vmatprep.mubr.f32.mxu1 %v3360_v24 }
 0x4d0   : > { %4379 = vmatmul.mubr.f32.gmra.mrb[142].mxu1 %v3361_v57  ;;  %v3363_v3 = vmax.f32 %v3355_v23, 0.0 }
 0x4d1   : > { %v3362_v22 = vmax.f32 %v3354_v19, 0.0  ;;  %4655 = vmatpush3.bf16.msk.msra.mxu1 %vm6992_vm8, %v6888_v46 }
 0x4d2   : > { %4657 = vmatprep.subr.msk.bf16.mxu1 %vm6994_vm9, %v6888_v46 }
 0x4d3   : > { %4381 = vmatprep.mubr.f32.mxu1 %v3362_v22 }
 0x4d4   : > { %4382 = vmatmul.mubr.f32.gmra.mrb[144].mxu1 %v3363_v3 }
 0x4d5   : > { %4659 = vmatpush3.bf16.msk.msra.mxu1 %vm6994_vm9, %v6888_v46  ;;  %4416 = vmatprep.mubr.f32.mxu1 %v3356_v63 }
 0x4d6   : > { %4661 = vmatprep.subr.msk.bf16.mxu1 %vm6996_vm12, %v6888_v46 }
 0x4d9   : > { %4663 = vmatpush3.bf16.msk.msra.mxu1 %vm6996_vm12, %v6888_v46 }
 0x4da   : > { %4665 = vmatprep.subr.msk.bf16.mxu1 %vm6997_vm15, %v6888_v46 }
 0x4dd   : > { %4667 = vmatpush3.bf16.msk.msra.mxu1 %vm6997_vm15, %v6888_v46 }
 0x4de   : > { %4669 = vmatprep.subr.msk.bf16.mxu1 %vm5959_vm5, %v6888_v46 }
 0x4e1   : > { %4671 = vmatpush3.bf16.msk.msra.mxu1 %vm5959_vm5, %v6888_v46 }
 0x4e2   : > { %4673 = vmatprep.subr.msk.bf16.mxu1 %vm5984_vm14, %v6888_v46 }
 0x4e5   : > { %4675 = vmatpush3.bf16.msk.msra.mxu1 %vm5984_vm14, %v6888_v46 }
 0x4e8   : > { %4417 = vmatmul.mubr.f32.vlgmr.msra.gmra.mrb[146].mxu1 %v3357_v55 }
 0x4e9   : > { %4419 = vmatprep.mubr.f32.mxu1 %v3358_v29 }
 0x4ec   : > { %4420 = vmatmul.mubr.f32.gmra.mrb[148].mxu1 %v3359_v12 }
 0x4ed   : > { %4422 = vmatprep.mubr.f32.mxu1 %v3360_v24 }
 0x4f0   : > { %4423 = vmatmul.mubr.f32.gmra.mrb[150].mxu1 %v3361_v57 }
 0x4f1   : > { %4425 = vmatprep.mubr.f32.mxu1 %v3362_v22 }
 0x4f4   : > { %4426 = vmatmul.mubr.f32.gmra.mrb[152].mxu1 %v3363_v3 }
 0x59b   : > { %v4374_v56 = vpop.f32.mrb[138].mxu1 }
 0x59c   : > { %v3430_v4 = vpop.f32.mrb[139].mxu1 }
 0x59f   : > { %v4377_v14 = vpop.f32.mrb[140].mxu1 }
 0x5a0   : > { %v3440_v13 = vpop.f32.mrb[141].mxu1 }
 0x5a3   : > { %v4380_v31 = vpop.f32.mrb[142].mxu1 }
 0x5a4   : > { %v3450_v44 = vpop.f32.mrb[143].mxu1 }
 0x5a7   : > { %v4383_v2 = vpop.f32.mrb[144].mxu1 }
 0x5a8   : > { %v3460_v10 = vpop.f32.mrb[145].mxu1 }
 0x5bb   : > { %v4418_v46 = vpop.f32.mrb[146].mxu1 }
 0x5bc   : > { %v3575_v9 = vmax.f32 %v4374_v56, %v4418_v46  ;;  %v3535_v28 = vpop.f32.mrb[147].mxu1 }
 0x5bd   : > { %v3574_v53 = vmax.f32 %v3430_v4, %v3535_v28 }
 0x5bf   : > { %v3582_v25 = vmax.f32 %v3574_v53, %v3575_v9  ;;  %v4421_v16 = vpop.f32.mrb[148].mxu1 }
 0x5c0   : > { %v3577_v43 = vmax.f32 %v4377_v14, %v4421_v16  ;;  %v3545_v36 = vpop.f32.mrb[149].mxu1 }
 0x5c1   : > { %3584 = vst.msk [vmem:[%s226_s17] sm:$0xff] %vm3583_vm2, %v3582_v25  ;;  %v3576_v35 = vmax.f32 %v3440_v13, %v3545_v36 }
 0x5c3   : > { %v4424_v37 = vpop.f32.mrb[150].mxu1  ;;  %v3585_v27 = vmax.f32 %v3576_v35, %v3577_v43 }
 0x5c4   : > { %v3579_v5 = vmax.f32 %v4380_v31, %v4424_v37  ;;  %v3555_v49 = vpop.f32.mrb[151].mxu1 }
 0x5c5   : > { %v3578_v6 = vmax.f32 %v3450_v44, %v3555_v49  ;;  %3587 = vrot.lane.b32.xlu0 %v3585_v27, %s4929_s19 }
 0x5c7   : > { %v3592_v32 = vmax.f32 %v3578_v6, %v3579_v5  ;;  %v4427_v8 = vpop.f32.mrb[152].mxu1 }
 0x5c8   : > { %v3581_v41 = vmax.f32 %v4383_v2, %v4427_v8  ;;  %v3565_v39 = vpop.f32.mrb[153].mxu1 }
 0x5c9   : > { %3593 = vst.msk [vmem:[%s226_s17 + $0x8] sm:$0xff] %vm3583_vm2, %v3592_v32  ;;  %v3580_v54 = vmax.f32 %v3460_v10, %v3565_v39 }
 0x5cb   : > { %v3594_v20 = vmax.f32 %v3580_v54, %v3581_v41 }
 0x5cd   : > { %3596 = vrot.lane.b32.xlu0 %v3594_v20, %s4929_s19 }
 0x637   : > { %v3588_v34 = vpop.permute.xlu0 %3587 }
 0x638   : > { %3591 = vst.msk [vmem:[%s226_s17] sm:$0xff] %vm3590_vm6, %v3588_v34 }
 0x63f   : > { %v3597_v42 = vpop.permute.xlu0 %3596 }
 0x640   : > { %3599 = vst.msk [vmem:[%s226_s17 + $0x8] sm:$0xff] %vm3590_vm6, %v3597_v42 }
 0x641 PF: > { %s15_s18 = sadd.s32 1, %s4923_s18  }
 0x642   : > { %p12_p5 = scmp.ge.s32.totalorder %s15_s18, 4  }
 0x644   :  { %14 = sbr.rel (!%p12_p5) target bundleno = 1 (0x1), region = 78 }

</bundles_post_ra>
